<compile_context>
chip_gen: v6e
topology: v6e:2x2x1
jax: 0.10.0
libtpu: 0.0.40
codegen_flags: <defaults>
</compile_context>

<pallas_src>
import functools
import math

import jax
import jax.numpy as jnp
from jax.experimental import pallas as pl
from jax.experimental.pallas import tpu as pltpu


def _hyper_fusion_kernel(xl_ref, xr_ref, wqv_ref, wk_ref, wo_ref,
                         g1_ref, b1_ref, g2_ref, b2_ref, out_ref, *, eps):
    # program 0 computes the left-stream output, program 1 the right-stream.
    s = pl.program_id(0)

    xl = xl_ref[...].astype(jnp.float32)   # (B, C, N) channel-major
    xr = xr_ref[...].astype(jnp.float32)   # (B, C, N)
    B, C, N = xl.shape

    def layernorm(x, g, b):
        # LayerNorm over the channel axis (== last dim of the (B, N, C) view).
        mu = jnp.mean(x, axis=1, keepdims=True)
        xc = x - mu
        var = jnp.mean(xc * xc, axis=1, keepdims=True)
        return xc * jax.lax.rsqrt(var + jnp.float32(eps)) * g[None] + b[None]

    xln_l = layernorm(xl, g1_ref[...], b1_ref[...])     # (B, C, N)
    xln_r = layernorm(xr, g2_ref[...], b2_ref[...])     # (B, C, N)

    # Exact 0/1 blend keyed on the program id (scalar splat + VPU FMA).
    side = (s == 0).astype(jnp.float32)                 # 1.0 -> left, 0.0 -> right
    xln_own = side * xln_l + (1.0 - side) * xln_r       # source of Q and V
    xln_oth = side * xln_r + (1.0 - side) * xln_l       # source of K
    x_own = side * xl + (1.0 - side) * xr                # residual input

    wqv = wqv_ref[...]    # (2C, C) == [scale * Wq^T ; Wv^T]
    wk = wk_ref[...]      # (C, C)  == Wk^T
    wo = wo_ref[...]      # (C, C)  == Wo^T

    # ---- fused Q/V (+ K) projections and raw scores, per batch ----
    v_list, a_list = [], []
    for b in range(B):
        qv = jnp.dot(wqv, xln_own[b], preferred_element_type=jnp.float32)   # (2C, N)
        k = jnp.dot(wk, xln_oth[b], preferred_element_type=jnp.float32)     # (C, N)
        # A[b][n, j] = sum_c Q[c, n] * K[c, j]   (1/sqrt(C) already inside Wq)
        a = jnp.dot(qv[:C].T, k, preferred_element_type=jnp.float32)        # (N, N)
        v_list.append(qv[C:])                                               # (C, N)
        a_list.append(a)

    # nn.Softmax() without dim on a 3-D tensor -> legacy implicit dim = 0
    # (the batch axis).  Computed without stacking a (B, N, N) tensor.
    m = a_list[0]
    for b in range(1, B):
        m = jnp.maximum(m, a_list[b])
    e_list = [jnp.exp(a - m) for a in a_list]
    denom = e_list[0]
    for b in range(1, B):
        denom = denom + e_list[b]
    inv = 1.0 / denom

    # ---- attention output, Wo projection, residual, store ----
    for b in range(B):
        s_b = e_list[b] * inv                                               # (N, N)
        # out^T[c, n] = sum_j V^T[c, j] * S[n, j]
        ot = jax.lax.dot_general(v_list[b], s_b, (((1,), (1,)), ((), ())),
                                 preferred_element_type=jnp.float32)        # (C, N)
        y = jnp.dot(wo, ot, preferred_element_type=jnp.float32) + x_own[b]  # (C, N)
        out_ref[0, b] = y.astype(out_ref.dtype)


def hyper_fusion(x_l, x_r, params):
    """x_l, x_r: NCHW float32 arrays of shape (B, C, H, W) with C == M."""
    B, C, H, W = x_l.shape
    N = H * W

    # Channel-major working layout -> pure reshapes, zero HBM relayout traffic.
    xl = x_l.reshape(B, C, N)
    xr = x_r.reshape(B, C, N)

    # One-time tiny weight prep (done in plain JAX, outside the kernel):
    # transposes for channel-major matmuls, the 1/sqrt(C) score scale folded
    # into Wq, and Wq/Wv fused into a single projection weight.
    scale = 1.0 / math.sqrt(C)
    wqv_t = jnp.concatenate([params['Wq'].T * scale, params['Wv'].T], axis=0)  # (2C, C)
    wk_t = params['Wk'].T
    wo_t = params['Wo'].T
    g1 = params['g1'].reshape(C, 1)
    b1 = params['b1'].reshape(C, 1)
    g2 = params['g2'].reshape(C, 1)
    b2 = params['b2'].reshape(C, 1)

    full3 = pl.BlockSpec((B, C, N), lambda s: (0, 0, 0))

    def wspec(r, c):
        return pl.BlockSpec((r, c), lambda s: (0, 0))

    flops = 2 * 2 * B * (4 * C * C * N + 2 * N * N * C)
    cost = pl.CostEstimate(
        flops=flops,
        transcendentals=2 * B * N * N,
        bytes_accessed=4 * (6 * B * C * N + 5 * C * C + 4 * C))

    kernel = functools.partial(_hyper_fusion_kernel, eps=1e-5)

    # TODO(synk): for very large N = H*W, tile the query axis (with K/V kept in
    # VMEM scratch) to stay within v7x's 64 MiB VMEM; at these sizes the
    # monolithic per-stream program fits comfortably.
    out = pl.pallas_call(
        kernel,
        out_shape=jax.ShapeDtypeStruct((2, B, C, N), x_l.dtype),
        grid=(2,),
        in_specs=[full3, full3,
                  wspec(2 * C, C), wspec(C, C), wspec(C, C),
                  wspec(C, 1), wspec(C, 1), wspec(C, 1), wspec(C, 1)],
        out_specs=pl.BlockSpec((1, B, C, N), lambda s: (s, 0, 0, 0)),
        compiler_params=pltpu.CompilerParams(
            dimension_semantics=("parallel",)),
        cost_estimate=cost,
    )(xl, xr, wqv_t, wk_t, wo_t, g1, b1, g2, b2)

    out_l = out[0].reshape(B, C, H, W)
    out_r = out[1].reshape(B, C, H, W)
    return out_l, out_r


def _reference(x_l, x_r, params):
    """Pure-JAX reference matching the PyTorch forward exactly."""
    hp = jax.lax.Precision.HIGHEST
    B, C, H, W = x_l.shape
    N = H * W
    xl = jnp.transpose(x_l.reshape(B, C, N), (0, 2, 1)).astype(jnp.float32)
    xr = jnp.transpose(x_r.reshape(B, C, N), (0, 2, 1)).astype(jnp.float32)

    def ln(x, g, b):
        mu = x.mean(-1, keepdims=True)
        var = ((x - mu) ** 2).mean(-1, keepdims=True)
        return (x - mu) / jnp.sqrt(var + 1e-5) * g + b

    mm = lambda a, b: jnp.matmul(a, b, precision=hp)
    xln_l = ln(xl, params['g1'], params['b1'])
    xln_r = ln(xr, params['g2'], params['b2'])
    Ql, Qr = mm(xln_l, params['Wq']), mm(xln_r, params['Wq'])
    Kl, Kr = mm(xln_l, params['Wk']), mm(xln_r, params['Wk'])
    Vl, Vr = mm(xln_l, params['Wv']), mm(xln_r, params['Wv'])
    Al = jnp.einsum('bnm,bkm->bnk', Ql, Kr, precision=hp) / math.sqrt(C)
    Ar = jnp.einsum('bnm,bkm->bnk', Qr, Kl, precision=hp) / math.sqrt(C)
    Sl = jax.nn.softmax(Al, axis=0)   # legacy implicit dim = 0 for 3-D input
    Sr = jax.nn.softmax(Ar, axis=0)
    out_l = xl + mm(jnp.einsum('bnk,bkm->bnm', Sl, Vl, precision=hp), params['Wo'])
    out_r = xr + mm(jnp.einsum('bnk,bkm->bnm', Sr, Vr, precision=hp), params['Wo'])
    out_l = jnp.transpose(out_l, (0, 2, 1)).reshape(B, C, H, W)
    out_r = jnp.transpose(out_r, (0, 2, 1)).reshape(B, C, H, W)
    return out_l, out_r


if __name__ == "__main__":
    B, C, H, W = 2, 32, 16, 16     # N = H*W = 256 -> lane-dense last dim
    M = C

    key = jax.random.PRNGKey(0)
    kq, kk, kv, ko, kxl, kxr = jax.random.split(key, 6)

    # kaiming_normal_(a=sqrt(5)): gain = sqrt(2/(1+a^2)) = sqrt(1/3), fan_in = M
    std = math.sqrt(2.0 / (1.0 + 5.0)) / math.sqrt(M)
    params = {
        'Wq': std * jax.random.normal(kq, (M, M), jnp.float32),
        'Wk': std * jax.random.normal(kk, (M, M), jnp.float32),
        'Wv': std * jax.random.normal(kv, (M, M), jnp.float32),
        'Wo': std * jax.random.normal(ko, (M, M), jnp.float32),
        'g1': jnp.ones((M,), jnp.float32),
        'b1': jnp.zeros((M,), jnp.float32),
        'g2': jnp.ones((M,), jnp.float32),
        'b2': jnp.zeros((M,), jnp.float32),
    }

    x_l = jax.random.normal(kxl, (B, C, H, W), jnp.float32)
    x_r = jax.random.normal(kxr, (B, C, H, W), jnp.float32)

    out_l, out_r = jax.block_until_ready(hyper_fusion(x_l, x_r, params))

    ref_l, ref_r = _reference(x_l, x_r, params)
    assert out_l.shape == (B, C, H, W) and out_r.shape == (B, C, H, W)
    assert jnp.allclose(out_l, ref_l, rtol=2e-4, atol=2e-4)
    assert jnp.allclose(out_r, ref_r, rtol=2e-4, atol=2e-4)

    print("KERNEL_OK")
</pallas_src>

<mosaic_0001>
module attributes {stable_mosaic.version = 11 : i64} {
  func.func @_hyper_fusion_kernel(%arg0: i32, %arg1: memref<2x32x256xf32, #tpu.memory_space<vmem>>, %arg2: memref<2x32x256xf32, #tpu.memory_space<vmem>>, %arg3: memref<64x32xf32, #tpu.memory_space<vmem>>, %arg4: memref<32x32xf32, #tpu.memory_space<vmem>>, %arg5: memref<32x32xf32, #tpu.memory_space<vmem>>, %arg6: memref<32x1xf32, #tpu.memory_space<vmem>>, %arg7: memref<32x1xf32, #tpu.memory_space<vmem>>, %arg8: memref<32x1xf32, #tpu.memory_space<vmem>>, %arg9: memref<32x1xf32, #tpu.memory_space<vmem>>, %arg10: memref<1x2x32x256xf32, #tpu.memory_space<vmem>>) attributes {dimension_semantics = [#tpu.dimension_semantics<parallel>], iteration_bounds = array<i64: 2>, scalar_prefetch = 0 : i64, scratch_operands = 0 : i64, tpu.core_type = #tpu.core_type<tc>, window_params = [{pipeline_mode = #tpu.pipeline_mode<synchronous>, transform_indices = @transform_0, window_bounds = array<i64: 2, 32, 256>}, {pipeline_mode = #tpu.pipeline_mode<synchronous>, transform_indices = @transform_1, window_bounds = array<i64: 2, 32, 256>}, {pipeline_mode = #tpu.pipeline_mode<synchronous>, transform_indices = @transform_2, window_bounds = array<i64: 64, 32>}, {pipeline_mode = #tpu.pipeline_mode<synchronous>, transform_indices = @transform_3, window_bounds = array<i64: 32, 32>}, {pipeline_mode = #tpu.pipeline_mode<synchronous>, transform_indices = @transform_4, window_bounds = array<i64: 32, 32>}, {pipeline_mode = #tpu.pipeline_mode<synchronous>, transform_indices = @transform_5, window_bounds = array<i64: 32, 1>}, {pipeline_mode = #tpu.pipeline_mode<synchronous>, transform_indices = @transform_6, window_bounds = array<i64: 32, 1>}, {pipeline_mode = #tpu.pipeline_mode<synchronous>, transform_indices = @transform_7, window_bounds = array<i64: 32, 1>}, {pipeline_mode = #tpu.pipeline_mode<synchronous>, transform_indices = @transform_8, window_bounds = array<i64: 32, 1>}, {transform_indices = @transform_9, window_bounds = array<i64: 1, 2, 32, 256>}]} {
    %c0 = arith.constant 0 : index
    %c0_0 = arith.constant 0 : index
    %c0_1 = arith.constant 0 : index
    %0 = vector.load %arg1[%c0, %c0_0, %c0_1] : memref<2x32x256xf32, #tpu.memory_space<vmem>>, vector<2x32x256xf32>
    %c0_2 = arith.constant 0 : index
    %c0_3 = arith.constant 0 : index
    %c0_4 = arith.constant 0 : index
    %1 = vector.load %arg2[%c0_2, %c0_3, %c0_4] : memref<2x32x256xf32, #tpu.memory_space<vmem>>, vector<2x32x256xf32>
    %c0_5 = arith.constant 0 : index
    %c0_6 = arith.constant 0 : index
    %2 = vector.load %arg6[%c0_5, %c0_6] : memref<32x1xf32, #tpu.memory_space<vmem>>, vector<32x1xf32>
    %c0_7 = arith.constant 0 : index
    %c0_8 = arith.constant 0 : index
    %3 = vector.load %arg7[%c0_7, %c0_8] : memref<32x1xf32, #tpu.memory_space<vmem>>, vector<32x1xf32>
    %cst = arith.constant dense<0.000000e+00> : vector<2x256xf32>
    %4 = vector.multi_reduction <add>, %0, %cst [1] : vector<2x32x256xf32> to vector<2x256xf32>
    %5 = vector.shape_cast %4 : vector<2x256xf32> to vector<2x1x256xf32>
    %cst_9 = arith.constant 3.200000e+01 : f32
    %6 = vector.broadcast %cst_9 : f32 to vector<2x1x256xf32>
    %7 = arith.divf %5, %6 : vector<2x1x256xf32>
    %8 = vector.broadcast %7 : vector<2x1x256xf32> to vector<2x32x256xf32>
    %9 = arith.subf %0, %8 : vector<2x32x256xf32>
    %10 = arith.mulf %9, %9 : vector<2x32x256xf32>
    %cst_10 = arith.constant dense<0.000000e+00> : vector<2x256xf32>
    %11 = vector.multi_reduction <add>, %10, %cst_10 [1] : vector<2x32x256xf32> to vector<2x256xf32>
    %12 = vector.shape_cast %11 : vector<2x256xf32> to vector<2x1x256xf32>
    %cst_11 = arith.constant 3.200000e+01 : f32
    %13 = vector.broadcast %cst_11 : f32 to vector<2x1x256xf32>
    %14 = arith.divf %12, %13 : vector<2x1x256xf32>
    %cst_12 = arith.constant 9.99999974E-6 : f32
    %15 = vector.broadcast %cst_12 : f32 to vector<2x1x256xf32>
    %16 = arith.addf %14, %15 : vector<2x1x256xf32>
    %17 = math.rsqrt %16 : vector<2x1x256xf32>
    %18 = vector.broadcast %17 : vector<2x1x256xf32> to vector<2x32x256xf32>
    %19 = arith.mulf %9, %18 : vector<2x32x256xf32>
    %20 = vector.shape_cast %2 : vector<32x1xf32> to vector<1x32x1xf32>
    %21 = vector.broadcast %20 : vector<1x32x1xf32> to vector<2x32x256xf32>
    %22 = arith.mulf %19, %21 : vector<2x32x256xf32>
    %23 = vector.shape_cast %3 : vector<32x1xf32> to vector<1x32x1xf32>
    %24 = vector.broadcast %23 : vector<1x32x1xf32> to vector<2x32x256xf32>
    %25 = arith.addf %22, %24 : vector<2x32x256xf32>
    %c0_13 = arith.constant 0 : index
    %c0_14 = arith.constant 0 : index
    %26 = vector.load %arg8[%c0_13, %c0_14] : memref<32x1xf32, #tpu.memory_space<vmem>>, vector<32x1xf32>
    %c0_15 = arith.constant 0 : index
    %c0_16 = arith.constant 0 : index
    %27 = vector.load %arg9[%c0_15, %c0_16] : memref<32x1xf32, #tpu.memory_space<vmem>>, vector<32x1xf32>
    %cst_17 = arith.constant dense<0.000000e+00> : vector<2x256xf32>
    %28 = vector.multi_reduction <add>, %1, %cst_17 [1] : vector<2x32x256xf32> to vector<2x256xf32>
    %29 = vector.shape_cast %28 : vector<2x256xf32> to vector<2x1x256xf32>
    %cst_18 = arith.constant 3.200000e+01 : f32
    %30 = vector.broadcast %cst_18 : f32 to vector<2x1x256xf32>
    %31 = arith.divf %29, %30 : vector<2x1x256xf32>
    %32 = vector.broadcast %31 : vector<2x1x256xf32> to vector<2x32x256xf32>
    %33 = arith.subf %1, %32 : vector<2x32x256xf32>
    %34 = arith.mulf %33, %33 : vector<2x32x256xf32>
    %cst_19 = arith.constant dense<0.000000e+00> : vector<2x256xf32>
    %35 = vector.multi_reduction <add>, %34, %cst_19 [1] : vector<2x32x256xf32> to vector<2x256xf32>
    %36 = vector.shape_cast %35 : vector<2x256xf32> to vector<2x1x256xf32>
    %cst_20 = arith.constant 3.200000e+01 : f32
    %37 = vector.broadcast %cst_20 : f32 to vector<2x1x256xf32>
    %38 = arith.divf %36, %37 : vector<2x1x256xf32>
    %cst_21 = arith.constant 9.99999974E-6 : f32
    %39 = vector.broadcast %cst_21 : f32 to vector<2x1x256xf32>
    %40 = arith.addf %38, %39 : vector<2x1x256xf32>
    %41 = math.rsqrt %40 : vector<2x1x256xf32>
    %42 = vector.broadcast %41 : vector<2x1x256xf32> to vector<2x32x256xf32>
    %43 = arith.mulf %33, %42 : vector<2x32x256xf32>
    %44 = vector.shape_cast %26 : vector<32x1xf32> to vector<1x32x1xf32>
    %45 = vector.broadcast %44 : vector<1x32x1xf32> to vector<2x32x256xf32>
    %46 = arith.mulf %43, %45 : vector<2x32x256xf32>
    %47 = vector.shape_cast %27 : vector<32x1xf32> to vector<1x32x1xf32>
    %48 = vector.broadcast %47 : vector<1x32x1xf32> to vector<2x32x256xf32>
    %49 = arith.addf %46, %48 : vector<2x32x256xf32>
    %c0_i32 = arith.constant 0 : i32
    %50 = arith.cmpi eq, %arg0, %c0_i32 : i32
    %51 = arith.extui %50 : i1 to i32
    %52 = arith.sitofp %51 : i32 to f32
    %53 = vector.broadcast %52 : f32 to vector<2x32x256xf32>
    %54 = arith.mulf %53, %25 : vector<2x32x256xf32>
    %cst_22 = arith.constant 1.000000e+00 : f32
    %55 = arith.subf %cst_22, %52 : f32
    %56 = vector.broadcast %55 : f32 to vector<2x32x256xf32>
    %57 = arith.mulf %56, %49 : vector<2x32x256xf32>
    %58 = arith.addf %54, %57 : vector<2x32x256xf32>
    %59 = vector.broadcast %52 : f32 to vector<2x32x256xf32>
    %60 = arith.mulf %59, %49 : vector<2x32x256xf32>
    %cst_23 = arith.constant 1.000000e+00 : f32
    %61 = arith.subf %cst_23, %52 : f32
    %62 = vector.broadcast %61 : f32 to vector<2x32x256xf32>
    %63 = arith.mulf %62, %25 : vector<2x32x256xf32>
    %64 = arith.addf %60, %63 : vector<2x32x256xf32>
    %65 = vector.broadcast %52 : f32 to vector<2x32x256xf32>
    %66 = arith.mulf %65, %0 : vector<2x32x256xf32>
    %cst_24 = arith.constant 1.000000e+00 : f32
    %67 = arith.subf %cst_24, %52 : f32
    %68 = vector.broadcast %67 : f32 to vector<2x32x256xf32>
    %69 = arith.mulf %68, %1 : vector<2x32x256xf32>
    %70 = arith.addf %66, %69 : vector<2x32x256xf32>
    %c0_25 = arith.constant 0 : index
    %c0_26 = arith.constant 0 : index
    %71 = vector.load %arg3[%c0_25, %c0_26] : memref<64x32xf32, #tpu.memory_space<vmem>>, vector<64x32xf32>
    %c0_27 = arith.constant 0 : index
    %c0_28 = arith.constant 0 : index
    %72 = vector.load %arg4[%c0_27, %c0_28] : memref<32x32xf32, #tpu.memory_space<vmem>>, vector<32x32xf32>
    %c0_29 = arith.constant 0 : index
    %c0_30 = arith.constant 0 : index
    %73 = vector.load %arg5[%c0_29, %c0_30] : memref<32x32xf32, #tpu.memory_space<vmem>>, vector<32x32xf32>
    %74 = vector.extract_strided_slice %58 {offsets = [0, 0, 0], sizes = [1, 32, 256], strides = [1, 1, 1]} : vector<2x32x256xf32> to vector<1x32x256xf32>
    %75 = vector.shape_cast %74 : vector<1x32x256xf32> to vector<32x256xf32>
    %cst_31 = arith.constant dense<0.000000e+00> : vector<64x256xf32>
    %76 = tpu.matmul %71, %75, %cst_31 {dimension_numbers = #tpu.dot_dimension_numbers<[1], [0], [0], [1], [0, 0, 1, 1], [], []>} : vector<64x32xf32>, vector<32x256xf32>, vector<64x256xf32> -> vector<64x256xf32>
    %77 = vector.extract_strided_slice %64 {offsets = [0, 0, 0], sizes = [1, 32, 256], strides = [1, 1, 1]} : vector<2x32x256xf32> to vector<1x32x256xf32>
    %78 = vector.shape_cast %77 : vector<1x32x256xf32> to vector<32x256xf32>
    %cst_32 = arith.constant dense<0.000000e+00> : vector<32x256xf32>
    %79 = tpu.matmul %72, %78, %cst_32 {dimension_numbers = #tpu.dot_dimension_numbers<[1], [0], [0], [1], [0, 0, 1, 1], [], []>} : vector<32x32xf32>, vector<32x256xf32>, vector<32x256xf32> -> vector<32x256xf32>
    %80 = vector.extract_strided_slice %76 {offsets = [0, 0], sizes = [32, 256], strides = [1, 1]} : vector<64x256xf32> to vector<32x256xf32>
    %81 = tpu.transpose %80, [1, 0] : vector<32x256xf32> -> vector<256x32xf32>
    %cst_33 = arith.constant dense<0.000000e+00> : vector<256x256xf32>
    %82 = tpu.matmul %81, %79, %cst_33 {dimension_numbers = #tpu.dot_dimension_numbers<[1], [0], [0], [1], [0, 0, 1, 1], [], []>} : vector<256x32xf32>, vector<32x256xf32>, vector<256x256xf32> -> vector<256x256xf32>
    %83 = vector.extract_strided_slice %76 {offsets = [32, 0], sizes = [32, 256], strides = [1, 1]} : vector<64x256xf32> to vector<32x256xf32>
    %84 = vector.extract_strided_slice %58 {offsets = [1, 0, 0], sizes = [1, 32, 256], strides = [1, 1, 1]} : vector<2x32x256xf32> to vector<1x32x256xf32>
    %85 = vector.shape_cast %84 : vector<1x32x256xf32> to vector<32x256xf32>
    %cst_34 = arith.constant dense<0.000000e+00> : vector<64x256xf32>
    %86 = tpu.matmul %71, %85, %cst_34 {dimension_numbers = #tpu.dot_dimension_numbers<[1], [0], [0], [1], [0, 0, 1, 1], [], []>} : vector<64x32xf32>, vector<32x256xf32>, vector<64x256xf32> -> vector<64x256xf32>
    %87 = vector.extract_strided_slice %64 {offsets = [1, 0, 0], sizes = [1, 32, 256], strides = [1, 1, 1]} : vector<2x32x256xf32> to vector<1x32x256xf32>
    %88 = vector.shape_cast %87 : vector<1x32x256xf32> to vector<32x256xf32>
    %cst_35 = arith.constant dense<0.000000e+00> : vector<32x256xf32>
    %89 = tpu.matmul %72, %88, %cst_35 {dimension_numbers = #tpu.dot_dimension_numbers<[1], [0], [0], [1], [0, 0, 1, 1], [], []>} : vector<32x32xf32>, vector<32x256xf32>, vector<32x256xf32> -> vector<32x256xf32>
    %90 = vector.extract_strided_slice %86 {offsets = [0, 0], sizes = [32, 256], strides = [1, 1]} : vector<64x256xf32> to vector<32x256xf32>
    %91 = tpu.transpose %90, [1, 0] : vector<32x256xf32> -> vector<256x32xf32>
    %cst_36 = arith.constant dense<0.000000e+00> : vector<256x256xf32>
    %92 = tpu.matmul %91, %89, %cst_36 {dimension_numbers = #tpu.dot_dimension_numbers<[1], [0], [0], [1], [0, 0, 1, 1], [], []>} : vector<256x32xf32>, vector<32x256xf32>, vector<256x256xf32> -> vector<256x256xf32>
    %93 = vector.extract_strided_slice %86 {offsets = [32, 0], sizes = [32, 256], strides = [1, 1]} : vector<64x256xf32> to vector<32x256xf32>
    %94 = arith.maximumf %82, %92 : vector<256x256xf32>
    %95 = arith.subf %82, %94 : vector<256x256xf32>
    %96 = math.exp %95 : vector<256x256xf32>
    %97 = arith.subf %92, %94 : vector<256x256xf32>
    %98 = math.exp %97 : vector<256x256xf32>
    %99 = arith.addf %96, %98 : vector<256x256xf32>
    %cst_37 = arith.constant 1.000000e+00 : f32
    %100 = vector.broadcast %cst_37 : f32 to vector<256x256xf32>
    %101 = arith.divf %100, %99 : vector<256x256xf32>
    %102 = arith.mulf %96, %101 : vector<256x256xf32>
    %cst_38 = arith.constant dense<0.000000e+00> : vector<32x256xf32>
    %103 = tpu.matmul %83, %102, %cst_38 {dimension_numbers = #tpu.dot_dimension_numbers<[1], [1], [0], [0], [0, 0, 1, 0], [], []>} : vector<32x256xf32>, vector<256x256xf32>, vector<32x256xf32> -> vector<32x256xf32>
    %cst_39 = arith.constant dense<0.000000e+00> : vector<32x256xf32>
    %104 = tpu.matmul %73, %103, %cst_39 {dimension_numbers = #tpu.dot_dimension_numbers<[1], [0], [0], [1], [0, 0, 1, 1], [], []>} : vector<32x32xf32>, vector<32x256xf32>, vector<32x256xf32> -> vector<32x256xf32>
    %105 = vector.extract_strided_slice %70 {offsets = [0, 0, 0], sizes = [1, 32, 256], strides = [1, 1, 1]} : vector<2x32x256xf32> to vector<1x32x256xf32>
    %106 = vector.shape_cast %105 : vector<1x32x256xf32> to vector<32x256xf32>
    %107 = arith.addf %104, %106 : vector<32x256xf32>
    %c0_40 = arith.constant 0 : index
    %c0_41 = arith.constant 0 : index
    %c0_42 = arith.constant 0 : index
    %c0_43 = arith.constant 0 : index
    %108 = vector.load %arg10[%c0_40, %c0_41, %c0_42, %c0_43] : memref<1x2x32x256xf32, #tpu.memory_space<vmem>>, vector<1x1x32x256xf32>
    %109 = vector.shape_cast %108 : vector<1x1x32x256xf32> to vector<32x256xf32>
    %110 = vector.shape_cast %107 : vector<32x256xf32> to vector<1x1x32x256xf32>
    tpu.vector_store %arg10[%c0_40, %c0_41, %c0_42, %c0_43], %110 {strides = array<i32>} : memref<1x2x32x256xf32, #tpu.memory_space<vmem>>, vector<1x1x32x256xf32>,
    %111 = arith.mulf %98, %101 : vector<256x256xf32>
    %cst_44 = arith.constant dense<0.000000e+00> : vector<32x256xf32>
    %112 = tpu.matmul %93, %111, %cst_44 {dimension_numbers = #tpu.dot_dimension_numbers<[1], [1], [0], [0], [0, 0, 1, 0], [], []>} : vector<32x256xf32>, vector<256x256xf32>, vector<32x256xf32> -> vector<32x256xf32>
    %cst_45 = arith.constant dense<0.000000e+00> : vector<32x256xf32>
    %113 = tpu.matmul %73, %112, %cst_45 {dimension_numbers = #tpu.dot_dimension_numbers<[1], [0], [0], [1], [0, 0, 1, 1], [], []>} : vector<32x32xf32>, vector<32x256xf32>, vector<32x256xf32> -> vector<32x256xf32>
    %114 = vector.extract_strided_slice %70 {offsets = [1, 0, 0], sizes = [1, 32, 256], strides = [1, 1, 1]} : vector<2x32x256xf32> to vector<1x32x256xf32>
    %115 = vector.shape_cast %114 : vector<1x32x256xf32> to vector<32x256xf32>
    %116 = arith.addf %113, %115 : vector<32x256xf32>
    %c0_46 = arith.constant 0 : index
    %c1 = arith.constant 1 : index
    %c0_47 = arith.constant 0 : index
    %c0_48 = arith.constant 0 : index
    %117 = vector.load %arg10[%c0_46, %c1, %c0_47, %c0_48] : memref<1x2x32x256xf32, #tpu.memory_space<vmem>>, vector<1x1x32x256xf32>
    %118 = vector.shape_cast %117 : vector<1x1x32x256xf32> to vector<32x256xf32>
    %119 = vector.shape_cast %116 : vector<32x256xf32> to vector<1x1x32x256xf32>
    tpu.vector_store %arg10[%c0_46, %c1, %c0_47, %c0_48], %119 {strides = array<i32>} : memref<1x2x32x256xf32, #tpu.memory_space<vmem>>, vector<1x1x32x256xf32>,
    return
  }
  func.func @transform_0(%arg0: i32) -> (i32, i32, i32) {
    %c0_i32 = arith.constant 0 : i32
    %c0_i32_0 = arith.constant 0 : i32
    %c0_i32_1 = arith.constant 0 : i32
    %c0_i32_2 = arith.constant 0 : i32
    return %c0_i32, %c0_i32_0, %c0_i32_1 : i32, i32, i32
  }
  func.func @transform_1(%arg0: i32) -> (i32, i32, i32) {
    %c0_i32 = arith.constant 0 : i32
    %c0_i32_0 = arith.constant 0 : i32
    %c0_i32_1 = arith.constant 0 : i32
    %c0_i32_2 = arith.constant 0 : i32
    return %c0_i32, %c0_i32_0, %c0_i32_1 : i32, i32, i32
  }
  func.func @transform_2(%arg0: i32) -> (i32, i32) {
    %c0_i32 = arith.constant 0 : i32
    %c0_i32_0 = arith.constant 0 : i32
    %c0_i32_1 = arith.constant 0 : i32
    return %c0_i32, %c0_i32_0 : i32, i32
  }
  func.func @transform_3(%arg0: i32) -> (i32, i32) {
    %c0_i32 = arith.constant 0 : i32
    %c0_i32_0 = arith.constant 0 : i32
    %c0_i32_1 = arith.constant 0 : i32
    return %c0_i32, %c0_i32_0 : i32, i32
  }
  func.func @transform_4(%arg0: i32) -> (i32, i32) {
    %c0_i32 = arith.constant 0 : i32
    %c0_i32_0 = arith.constant 0 : i32
    %c0_i32_1 = arith.constant 0 : i32
    return %c0_i32, %c0_i32_0 : i32, i32
  }
  func.func @transform_5(%arg0: i32) -> (i32, i32) {
    %c0_i32 = arith.constant 0 : i32
    %c0_i32_0 = arith.constant 0 : i32
    %c0_i32_1 = arith.constant 0 : i32
    return %c0_i32, %c0_i32_0 : i32, i32
  }
  func.func @transform_6(%arg0: i32) -> (i32, i32) {
    %c0_i32 = arith.constant 0 : i32
    %c0_i32_0 = arith.constant 0 : i32
    %c0_i32_1 = arith.constant 0 : i32
    return %c0_i32, %c0_i32_0 : i32, i32
  }
  func.func @transform_7(%arg0: i32) -> (i32, i32) {
    %c0_i32 = arith.constant 0 : i32
    %c0_i32_0 = arith.constant 0 : i32
    %c0_i32_1 = arith.constant 0 : i32
    return %c0_i32, %c0_i32_0 : i32, i32
  }
  func.func @transform_8(%arg0: i32) -> (i32, i32) {
    %c0_i32 = arith.constant 0 : i32
    %c0_i32_0 = arith.constant 0 : i32
    %c0_i32_1 = arith.constant 0 : i32
    return %c0_i32, %c0_i32_0 : i32, i32
  }
  func.func @transform_9(%arg0: i32) -> (i32, i32, i32, i32) {
    %c0_i32 = arith.constant 0 : i32
    %c0_i32_0 = arith.constant 0 : i32
    %c0_i32_1 = arith.constant 0 : i32
    %c0_i32_2 = arith.constant 0 : i32
    return %arg0, %c0_i32, %c0_i32_0, %c0_i32_1 : i32, i32, i32, i32
  }
}

</mosaic_0001>

<bundles_post_ra>
// kernel: tpu_custom_call.1
= control target key start
LH: loop header
LB: loop body
LE: loop exit
PB: predicated region body
PF: predicated region fallthrough
CT: control target
= control target key end

     0   :  { %14 = vsyncpa [#allocation3], 0  ;;  %s6811_s0 = inlined_call_operand.vmem [shape: f32[2,32,256], index: 0, kind: input, shape index: {}]   ;;  %s6812_s1 = inlined_call_operand.hbm [shape: f32[2,32,256], index: 1, kind: input, shape index: {}]   ;;  %s6813_s2 = inlined_call_operand.vmem [shape: f32[64,32], index: 2, kind: input, shape index: {}]   ;;  %s6814_s3 = inlined_call_operand.vmem [shape: f32[32,32], index: 3, kind: input, shape index: {}]   ;;  %s6815_s4 = inlined_call_operand.vmem [shape: f32[32,32], index: 4, kind: input, shape index: {}]   ;;  %s6816_s5 = inlined_call_operand.vmem [shape: f32[32,1], index: 5, kind: input, shape index: {}]   ;;  %s6817_s6 = inlined_call_operand.vmem [shape: f32[32,1], index: 6, kind: input, shape index: {}]   ;;  %s6818_s7 = inlined_call_operand.vmem [shape: f32[32,1], index: 7, kind: input, shape index: {}]   ;;  %s6819_s8 = inlined_call_operand.vmem [shape: f32[32,1], index: 8, kind: input, shape index: {}]   ;;  %s6820_s9 = inlined_call_operand.hbm [shape: f32[2,2,32,256], index: 9, kind: output, shape index: {}]  }
   0x1   :  { %15 = vsyncpa [#allocation4], 0 }
   0x2   :  { %17 = vsyncpa [#allocation4 + $0x1], 0  ;;  %s4225_s30 = smov 0   ;;  %s4227_s10 = smov 0  }
   0x3   :  { %s4229_s11 = smov 0   ;;  %s4231_s12 = smov 0  }
   0x4 LB: > { %s4246_s13 = sadd.s32 4294967295, %s4165_s12   ;;  %s3461_s14 = sadd.s32 4294967294, %s4165_s12   ;;  %s4165_s12 = sphi %s4231_s12, %s7199_s12   ;;  %s4161_s11 = sphi %s4229_s11, %s7198_s11   ;;  %s4157_s10 = sphi %s4227_s10, %s7197_s10   ;;  %s4153_s30 = sphi %s4225_s30, %s7196_s30  }
   0x5   : > { %s4250_s15 = sadd.s32 1, %s4165_s12   ;;  %s219_s16 = sadd.s32 1, %s4161_s11 }
   0x6   : > { %s216_s17 = ssub.s32 %s4165_s12, %s4250_s15  ;;  %p229_p0 = scmp.ne.s32.totalorder %s4161_s11, %s4157_s10 }
   0x7   : > { %p217_p1 = scmp.eq.s32.totalorder %s216_s17, 0  ;;  %p230_p2 = scmp.eq.s32.totalorder %s4246_s13, 1 }
   0x8   : > { %p235_p3 = scmp.ne.s32.totalorder %s4157_s10, %s4153_s30  ;;  %p236_p4 = scmp.eq.s32.totalorder %s3461_s14, 1 }
   0x9   : > { %s4261_s18 = scalar_select %p217_p1, %s4161_s11, %s219_s16  }
   0xa   : > { %p4263_p5 = por %p230_p2, %p229_p0  ;;  %p4267_p6 = por %p236_p4, %p235_p3 }
   0xb   : > { %p3462_p7 = scmp.ge.s32.totalorder %s4165_s12, 1  ;;  %p243_p8 = scmp.lt.s32.totalorder %s4165_s12, 3 }
   0xc   : > { %s6909_s20 = scalar_select %p4267_p6, 1, 0 }
   0xd   : > { %p3599_p9 = scmp.eq.s32.totalorder %s4246_s13, 0  ;;  %p4274_p10 = pnand %p3462_p7, %p243_p8 }
   0xe   : > { %s4167_s22 = smov [#allocation2]  }
   0xf   : > { %s258_s23 = sshll.u32 %s4167_s22, 4  ;;  %p3591_p11 = pneg %p4274_p10  ;;  %s259_s23 = int_to_ptr.vmem [resolvable:$true] %s258_s23 }
  0x10   : > { %s4086_s24 = scalar_lea.vmem %s259_s23, 2048  ;;  %p4094_p3 = scmp.lt.s32.totalorder %s259_s23, %s259_s23 }
  0x11   : > { %p3592_p12 = pnand %p3599_p9, %p3591_p11  ;;  %p4087_p0 = scmp.ne.s32.totalorder %s259_s23, %s4086_s24 }
  0x12   : > { %p4095_p4 = scmp.lt.s32.totalorder %s4086_s24, %s4086_s24 }
  0x13   : > { %p4077_p13 = pneg %p3592_p12 }
  0x14   : > { %p4096_p6 = por %p4095_p4, %p4094_p3 }
  0x15   : > { %p4089_p1 = pnand %p4087_p0, %p4077_p13 }
  0x17   : > { %p4090_p2 = pneg %p4089_p1 }
  0x19   : > { %p4097_p7 = pnand %p4096_p6, %p4090_p2 }
  0x1b   : > { %4100 = shalt.err (!%p4097_p7)
}
  0x1c   : > { %s4168_s25 = smov 256   ;;  %s4169_s26 = smov 16  }
  0x1d   : > { %3594 = dma.hbm_to_vmem [thread:$0]  (!%p3592_p12), %s6812_s1, 2048, %s259_s23, [#allocation3], %s4168_s25, %s4168_s25, %s4169_s26  }
  0x1e   : > { %295 = sbr.rel (%p4274_p10) target bundleno = 1470 (0x5be), region = 56 }
  0x23   : > { %4144 = dma.done.wait (%p3599_p9), [#allocation3], 2048  }
  0x24   : > { %4146 = vsyncadd (%p3599_p9), [#allocation3], 4294965248  ;;  %v4170_v0 = vmov 0   ;;  %v361_v1 = vld [vmem:[%s6816_s5 + $0x18] sm:$0xff]  ;;  %v360_v2 = vld [vmem:[%s6816_s5 + $0x10] sm:$0xff]  ;;  %vm957_vm0 = vcmask 261120  }
  0x25   : > { %3642 = vset.pattern.permute.xlu1 %v4170_v0  ;;  %3641 = vset.pattern.permute.xlu0 %v4170_v0  ;;  %v578_v3 = vld [vmem:[%s6818_s7 + $0x18] sm:$0xff]  ;;  %v577_v5 = vld [vmem:[%s6818_s7 + $0x10] sm:$0xff]  ;;  %v4312_v7 = vld [vmem:[%s6811_s0] sm:$0xff]  ;;  %s792_s21 = scalar_select %p3599_p9, 1, 0 }
  0x26   : > { %520 = vperm.xlu0 %3641, %v361_v1   ;;  %515 = vperm.xlu1 %3642, %v360_v2   ;;  %v365_v4 = vld [vmem:[%s6817_s6 + $0x18] sm:$0xff]  ;;  %v4317_v8 = vld [vmem:[%s6811_s0 + $0x8] sm:$0xff]  ;;  %v4322_v9 = vld [vmem:[%s6811_s0 + $0x10] sm:$0xff]  ;;  %s3576_s24 = sshll.u32 %s4246_s13, 11  ;;  %s4172_s14 = smov [#allocation5]  }
  0x27   : > { %v582_v6 = vld [vmem:[%s6819_s8 + $0x18] sm:$0xff]  ;;  %v364_v11 = vld [vmem:[%s6817_s6 + $0x10] sm:$0xff]  ;;  %v359_v12 = vld [vmem:[%s6816_s5 + $0x8] sm:$0xff]  ;;  %v366_v17 = vadd.f32 %v4322_v9, %v4312_v7  ;;  %s793_s22 = scvt.s32.f32 %s792_s21  ;;  %s6763_s28 = scalar_lea.hbm %s6820_s9, %s3576_s24 }
  0x28   : > { %v4327_v10 = vld [vmem:[%s6811_s0 + $0x18] sm:$0xff]  ;;  %v4338_v13 = vld [vmem:[%s6811_s0 + $0x40] sm:$0xff]  ;;  %v4343_v14 = vld [vmem:[%s6811_s0 + $0x50] sm:$0xff]  ;;  %s4105_s16 = sshll.u32 %s4172_s14, 4  ;;  %s4106_s16 = int_to_ptr.vmem [resolvable:$false] %s4105_s16 }
  0x29   : > { %v4348_v15 = vld [vmem:[%s6811_s0 + $0x48] sm:$0xff]  ;;  %v4353_v16 = vld [vmem:[%s6811_s0 + $0x58] sm:$0xff]  ;;  %v375_v18 = vadd.f32 %v4327_v10, %v4317_v8  ;;  %v4362_v19 = vld [vmem:[%s6811_s0 + $0x20] sm:$0xff]  ;;  %v384_v21 = vadd.f32 %v4343_v14, %v4338_v13  ;;  %s811_s23 = ssub.f32 1.0, %s793_s22  ;;  %s4107_s21 = scalar_lea.vmem %s4106_s16, 4096 }
  0x2a   : > { %736 = vperm.xlu0 %3641, %v578_v3   ;;  %556 = vperm.xlu1 %3642, %v365_v4   ;;  %v4367_v20 = vld [vmem:[%s6811_s0 + $0x28] sm:$0xff]  ;;  %v581_v22 = vld [vmem:[%s6819_s8 + $0x10] sm:$0xff]  ;;  %v4380_v24 = vld [vmem:[%s6811_s0 + $0x60] sm:$0xff]  ;;  %v393_v25 = vadd.f32 %v4353_v16, %v4348_v15  ;;  %v367_v28 = vadd.f32 %v366_v17, %v4362_v19 }
  0x2b   : > { %v576_v23 = vld [vmem:[%s6818_s7 + $0x8] sm:$0xff]  ;;  %v4387_v26 = vld [vmem:[%s6811_s0 + $0x30] sm:$0xff]  ;;  %v376_v29 = vadd.f32 %v375_v18, %v4367_v20  ;;  %v4399_v30 = vld [vmem:[%s6811_s0 + $0x38] sm:$0xff]  ;;  %v385_v33 = vadd.f32 %v384_v21, %v4380_v24 }
  0x2c   : > { %v4392_v27 = vld [vmem:[%s6811_s0 + $0x68] sm:$0xff]  ;;  %v4401_v31 = vld [vmem:[#allocation2] sm:$0xff]  ;;  %v4403_v32 = vld [vmem:[#allocation2 + $0x10] sm:$0xff]  ;;  %v368_v41 = vadd.f32 %v367_v28, %v4387_v26 }
  0x2d   : > { %v4406_v34 = vld [vmem:[#allocation2 + $0x8] sm:$0xff]  ;;  %v4408_v35 = vld [vmem:[#allocation2 + $0x18] sm:$0xff]  ;;  %v358_v37 = vld [vmem:[%s6816_s5] sm:$0xff]  ;;  %v394_v39 = vadd.f32 %v393_v25, %v4392_v27  ;;  %v377_v42 = vadd.f32 %v376_v29, %v4399_v30  ;;  %v583_v45 = vadd.f32 %v4403_v32, %v4401_v31 }
  0x2e   : > { %731 = vperm.xlu0 %3641, %v577_v5   ;;  %772 = vperm.xlu1 %3642, %v582_v6   ;;  %v363_v36 = vld [vmem:[%s6817_s6 + $0x8] sm:$0xff]  ;;  %v4419_v38 = vld [vmem:[%s6811_s0 + $0x70] sm:$0xff]  ;;  %v4425_v40 = vld [vmem:[%s6811_s0 + $0x78] sm:$0xff]  ;;  %v592_v47 = vadd.f32 %v4408_v35, %v4406_v34  ;;  %v369_v56 = vrot.slane %v368_v41, 4 }
  0x2f   : > { %v4429_v43 = vld [vmem:[#allocation2 + $0x40] sm:$0xff]  ;;  %v4431_v44 = vld [vmem:[#allocation2 + $0x50] sm:$0xff]  ;;  %v580_v48 = vld [vmem:[%s6819_s8 + $0x8] sm:$0xff]  ;;  %v386_v49 = vadd.f32 %v385_v33, %v4419_v38  ;;  %v395_v52 = vadd.f32 %v394_v39, %v4425_v40  ;;  %v378_v57 = vrot.slane %v377_v42, 4 }
  0x30   : > { %v4435_v46 = vld [vmem:[#allocation2 + $0x20] sm:$0xff]  ;;  %v4443_v50 = vld [vmem:[#allocation2 + $0x28] sm:$0xff]  ;;  %v4451_v54 = vld [vmem:[#allocation2 + $0x58] sm:$0xff]  ;;  %v601_v55 = vadd.f32 %v4431_v44, %v4429_v43  ;;  %v370_v6 = vadd.f32 %v369_v56, %v368_v41 }
  0x31   : > { %v575_v51 = vld [vmem:[%s6818_s7] sm:$0xff]  ;;  %v4449_v53 = vld [vmem:[#allocation2 + $0x48] sm:$0xff]  ;;  %v584_v59 = vadd.f32 %v583_v45, %v4435_v46  ;;  %v4458_v60 = vld [vmem:[#allocation2 + $0x30] sm:$0xff]  ;;  %v593_v61 = vadd.f32 %v592_v47, %v4443_v50  ;;  %v387_v62 = vrot.slane %v386_v49, 4  ;;  %v396_v3 = vrot.slane %v395_v52, 4 }
  0x32   : > { %551 = vperm.xlu1 %3642, %v364_v11   ;;  %510 = vperm.xlu0 %3641, %v359_v12   ;;  %v4455_v58 = vld [vmem:[#allocation2 + $0x60] sm:$0xff]  ;;  %v4461_v63 = vld [vmem:[#allocation2 + $0x38] sm:$0xff]  ;;  %v610_v0 = vadd.f32 %v4451_v54, %v4449_v53  ;;  %v4471_v4 = vld [vmem:[#allocation2 + $0x68] sm:$0xff]  ;;  %v379_v11 = vadd.f32 %v378_v57, %v377_v42  ;;  %v371_v29 = vrot.slane %v370_v6, 2 }
  0x33   : > { %v579_v1 = vld [vmem:[%s6819_s8] sm:$0xff]  ;;  %6911 = vst [vmem:[#allocation8_spill] sm:$0xff] %v4471_v4  ;;  %v602_v5 = vadd.f32 %v601_v55, %v4455_v58  ;;  %v4474_v12 = vld [vmem:[#allocation2 + $0x70] sm:$0xff]  ;;  %v585_v17 = vadd.f32 %v584_v59, %v4458_v60  ;;  %v594_v18 = vadd.f32 %v593_v61, %v4461_v63  ;;  %v388_v21 = vadd.f32 %v387_v62, %v386_v49  ;;  %v4479_v25 = vld [vmem:[#allocation2 + $0x78] sm:$0xff] }
  0x34   : > { %v362_v2 = vld [vmem:[%s6817_s6] sm:$0xff]  ;;  %6912 = vst [vmem:[#allocation9_spill] sm:$0xff] %v4474_v12  ;;  %6913 = vst [vmem:[#allocation10_spill] sm:$0xff] %v4479_v25  ;;  %v380_v33 = vrot.slane %v379_v11, 2  ;;  %v372_v47 = vadd.f32 %v371_v29, %v370_v6 }
  0x35   : > { %v603_v28 = vadd.f32 %v602_v5, %v4474_v12  ;;  %v389_v39 = vrot.slane %v388_v21, 2 }
  0x36   : > { %767 = vperm.xlu1 %3642, %v581_v22   ;;  %726 = vperm.xlu0 %3641, %v576_v23   ;;  %v611_v22 = vadd.f32 %v610_v0, %v4471_v4  ;;  %v397_v23 = vadd.f32 %v396_v3, %v395_v52  ;;  %v373_v59 = vrot.slane %v372_v47, 1 }
  0x37   : > { %v604_v45 = vrot.slane %v603_v28, 4  ;;  %v390_v55 = vadd.f32 %v389_v39, %v388_v21 }
  0x38   : > { %v612_v41 = vadd.f32 %v611_v22, %v4479_v25  ;;  %v398_v42 = vrot.slane %v397_v23, 2  ;;  %v374_v12 = vadd.f32 %v373_v59, %v372_v47 }
  0x39   : > { %v605_v57 = vadd.f32 %v604_v45, %v603_v28 }
  0x3a   : > { %546 = vperm.xlu1 %3642, %v363_v36   ;;  %505 = vperm.xlu0 %3641, %v358_v37   ;;  %v586_v36 = vrot.slane %v585_v17, 4  ;;  %v595_v37 = vrot.slane %v594_v18, 4  ;;  %v613_v56 = vrot.slane %v612_v41, 4  ;;  %v399_v52 = vadd.f32 %v398_v42, %v397_v23 }
  0x3b   : > { %v606_v5 = vrot.slane %v605_v57, 2  ;;  %v403_v21 = vmul.f32 0.03125, %v374_v12 }
  0x3c   : > { %v596_v49 = vadd.f32 %v595_v37, %v594_v18  ;;  %v400_v3 = vrot.slane %v399_v52, 1 }
  0x3d   : > { %v607_v18 = vadd.f32 %v606_v5, %v605_v57  ;;  %v4490_v45 = vsub.f32 %v4322_v9, %v403_v21  ;;  %v4496_v12 = vsub.f32 %v4362_v19, %v403_v21 }
  0x3e   : > { %762 = vperm.xlu1 %3642, %v580_v48   ;;  %721 = vperm.xlu0 %3641, %v575_v51   ;;  %v381_v48 = vadd.f32 %v380_v33, %v379_v11  ;;  %v587_v51 = vadd.f32 %v586_v36, %v585_v17  ;;  %v597_v0 = vrot.slane %v596_v49, 2  ;;  %v401_v17 = vadd.f32 %v400_v3, %v399_v52 }
  0x3f   : > { %v608_v39 = vrot.slane %v607_v18, 1 }
  0x40   : > { %v382_v61 = vrot.slane %v381_v48, 1  ;;  %v588_v62 = vrot.slane %v587_v51, 2  ;;  %v598_v4 = vadd.f32 %v597_v0, %v596_v49  ;;  %v406_v37 = vmul.f32 0.03125, %v401_v17 }
  0x42   : > { %757 = vperm.xlu1 %3642, %v579_v1   ;;  %541 = vperm.xlu0 %3641, %v362_v2   ;;  %v391_v1 = vrot.slane %v390_v55, 1  ;;  %v614_v2 = vadd.f32 %v613_v56, %v612_v41  ;;  %v383_v22 = vadd.f32 %v382_v61, %v381_v48  ;;  %v589_v25 = vadd.f32 %v588_v62, %v587_v51 }
  0x43   : > { %v599_v28 = vrot.slane %v598_v4, 1  ;;  %v4484_v41 = vsub.f32 %v4312_v7, %v403_v21  ;;  %v4502_v7 = vsub.f32 %v4387_v26, %v403_v21 }
  0x44   : > { %v392_v6 = vadd.f32 %v391_v1, %v390_v55  ;;  %v615_v11 = vrot.slane %v614_v2, 2  ;;  %v404_v29 = vmul.f32 0.03125, %v383_v22  ;;  %v590_v23 = vrot.slane %v589_v25, 1 }
  0x45   : > { %v600_v49 = vadd.f32 %v599_v28, %v598_v4  ;;  %v609_v4 = vadd.f32 %v608_v39, %v607_v18  ;;  %v429_v57 = vmul.f32 %v4502_v7, %v4502_v7  ;;  %v6824_v22 = vmov 0.0  }
  0x46   : > { %v405_v33 = vmul.f32 0.03125, %v392_v6  ;;  %v616_v36 = vadd.f32 %v615_v11, %v614_v2  ;;  %v4487_v42 = vsub.f32 %v4317_v8, %v404_v29  ;;  %v591_v47 = vadd.f32 %v590_v23, %v589_v25  ;;  %1046 = vmatprep.mubr.f32.mxu0 %v6824_v22  ;;  %1070 = vmatprep.mubr.f32.mxu1 %v6824_v22 }
  0x47   : > { %v4493_v48 = vsub.f32 %v4327_v10, %v404_v29  ;;  %v4499_v51 = vsub.f32 %v4367_v20, %v404_v29  ;;  %v4505_v8 = vsub.f32 %v4399_v30, %v404_v29  ;;  %v4511_v10 = vsub.f32 %v4348_v15, %v406_v37 }
  0x48   : > { %v4508_v9 = vsub.f32 %v4338_v13, %v405_v33  ;;  %v617_v25 = vrot.slane %v616_v36, 1  ;;  %v4514_v19 = vsub.f32 %v4343_v14, %v405_v33  ;;  %v4517_v20 = vsub.f32 %v4353_v16, %v406_v37 }
  0x49   : > { %v4520_v26 = vsub.f32 %v4380_v24, %v405_v33  ;;  %v4523_v30 = vsub.f32 %v4392_v27, %v406_v37  ;;  %v4526_v13 = vsub.f32 %v4419_v38, %v405_v33  ;;  %v619_v55 = vmul.f32 0.03125, %v591_v47 }
  0x4a   : > { %v4529_v15 = vsub.f32 %v4425_v40, %v406_v37  ;;  %v423_v14 = vmul.f32 %v4484_v41, %v4484_v41  ;;  %v424_v16 = vmul.f32 %v4487_v42, %v4487_v42  ;;  %v620_v56 = vmul.f32 0.03125, %v600_v49 }
  0x4b   : > { %v425_v24 = vmul.f32 %v4490_v45, %v4490_v45  ;;  %v426_v27 = vmul.f32 %v4493_v48, %v4493_v48  ;;  %v427_v38 = vmul.f32 %v4496_v12, %v4496_v12  ;;  %v618_v52 = vadd.f32 %v617_v25, %v616_v36 }
  0x4c   : > { %v428_v40 = vmul.f32 %v4499_v51, %v4499_v51  ;;  %v430_v59 = vmul.f32 %v4505_v8, %v4505_v8  ;;  %v621_v61 = vmul.f32 0.03125, %v609_v4  ;;  %v431_v62 = vmul.f32 %v4508_v9, %v4508_v9 }
  0x4d   : > { %v4550_v0 = vsub.f32 %v4401_v31, %v619_v55  ;;  %v4553_v1 = vsub.f32 %v4403_v32, %v619_v55  ;;  %v432_v2 = vmul.f32 %v4511_v10, %v4511_v10  ;;  %v4558_v3 = vsub.f32 %v4406_v34, %v620_v56 }
  0x4e   : > { %v4561_v5 = vsub.f32 %v4408_v35, %v620_v56  ;;  %v433_v31 = vmul.f32 %v4514_v19, %v4514_v19  ;;  %v434_v32 = vmul.f32 %v4517_v20, %v4517_v20  ;;  %v435_v6 = vmul.f32 %v4520_v26, %v4520_v26 }
  0x4f   : > { %v622_v11 = vmul.f32 0.03125, %v618_v52  ;;  %v436_v34 = vmul.f32 %v4523_v30, %v4523_v30  ;;  %v437_v35 = vmul.f32 %v4526_v13, %v4526_v13  ;;  %v4576_v17 = vsub.f32 %v4429_v43, %v621_v61 }
  0x50   : > { %v4579_v18 = vsub.f32 %v4431_v44, %v621_v61  ;;  %v439_v21 = vadd.f32 %v425_v24, %v423_v14  ;;  %v4582_v29 = vsub.f32 %v4435_v46, %v619_v55  ;;  %v639_v23 = vmul.f32 %v4550_v0, %v4550_v0 }
  0x51   : > { %v641_v28 = vmul.f32 %v4553_v1, %v4553_v1  ;;  %v448_v33 = vadd.f32 %v426_v27, %v424_v16  ;;  %v4589_v36 = vsub.f32 %v4443_v50, %v620_v56  ;;  %v640_v43 = vmul.f32 %v4558_v3, %v4558_v3 }
  0x52   : > { %v642_v44 = vmul.f32 %v4561_v5, %v4561_v5  ;;  %v438_v46 = vmul.f32 %v4529_v15, %v4529_v15  ;;  %v457_v37 = vadd.f32 %v433_v31, %v431_v62  ;;  %v4598_v39 = vsub.f32 %v4449_v53, %v622_v11 }
  0x53   : > { %v4601_v47 = vsub.f32 %v4451_v54, %v622_v11  ;;  %v466_v49 = vadd.f32 %v434_v32, %v432_v2  ;;  %v4604_v50 = vsub.f32 %v4455_v58, %v621_v61  ;;  %v647_v25 = vmul.f32 %v4576_v17, %v4576_v17  ;;  %v6916_v2 = vld [vmem:[#allocation8_spill] sm:$0xff]  ;;  %v6917_v32 = vld [vmem:[#allocation9_spill] sm:$0xff] }
  0x54   : > { %6914 = vst [vmem:[#allocation11_spill] sm:$0xff] %v4598_v39  ;;  %v649_v4 = vmul.f32 %v4579_v18, %v4579_v18  ;;  %v440_v14 = vadd.f32 %v439_v21, %v427_v38  ;;  %v4611_v16 = vsub.f32 %v4458_v60, %v619_v55  ;;  %v643_v53 = vmul.f32 %v4582_v29, %v4582_v29 }
  0x55   : > { %6915 = vst [vmem:[#allocation12_spill] sm:$0xff] %v4601_v47  ;;  %v655_v24 = vadd.f32 %v641_v28, %v639_v23  ;;  %v449_v54 = vadd.f32 %v448_v33, %v428_v40  ;;  %v4616_v27 = vsub.f32 %v4461_v63, %v620_v56  ;;  %v644_v58 = vmul.f32 %v4589_v36, %v4589_v36 }
  0x56   : > { %v664_v52 = vadd.f32 %v642_v44, %v640_v43  ;;  %v458_v62 = vadd.f32 %v457_v37, %v435_v6  ;;  %v4621_v31 = vsub.f32 %v6916_v2, %v622_v11  ;;  %v648_v60 = vmul.f32 %v4598_v39, %v4598_v39  ;;  %v6918_v37 = vld [vmem:[#allocation10_spill] sm:$0xff] }
  0x57   : > { %v650_v55 = vmul.f32 %v4601_v47, %v4601_v47  ;;  %v467_v38 = vadd.f32 %v466_v49, %v436_v34  ;;  %v4628_v40 = vsub.f32 %v6917_v32, %v621_v61  ;;  %v651_v63 = vmul.f32 %v4604_v50, %v4604_v50 }
  0x58   : > { %v673_v56 = vadd.f32 %v649_v4, %v647_v25  ;;  %v441_v21 = vadd.f32 %v440_v14, %v429_v57  ;;  %v645_v6 = vmul.f32 %v4611_v16, %v4611_v16  ;;  %v656_v23 = vadd.f32 %v655_v24, %v643_v53 }
  0x59   : > { %v450_v28 = vadd.f32 %v449_v54, %v430_v59  ;;  %v646_v33 = vmul.f32 %v4616_v27, %v4616_v27  ;;  %v665_v43 = vadd.f32 %v664_v52, %v644_v58  ;;  %v459_v44 = vadd.f32 %v458_v62, %v437_v35 }
  0x5a   : > { %v4637_v34 = vsub.f32 %v6918_v37, %v622_v11  ;;  %v652_v61 = vmul.f32 %v4621_v31, %v4621_v31  ;;  %v682_v49 = vadd.f32 %v650_v55, %v648_v60  ;;  %v468_v2 = vadd.f32 %v467_v38, %v438_v46 }
  0x5b   : > { %v653_v57 = vmul.f32 %v4628_v40, %v4628_v40  ;;  %v674_v25 = vadd.f32 %v673_v56, %v651_v63  ;;  %v442_v4 = vrot.slane %v441_v21, 4  ;;  %v657_v14 = vadd.f32 %v656_v23, %v645_v6 }
  0x5c   : > { %v451_v59 = vrot.slane %v450_v28, 4  ;;  %v666_v53 = vadd.f32 %v665_v43, %v646_v33  ;;  %v460_v24 = vrot.slane %v459_v44, 4  ;;  %v654_v35 = vmul.f32 %v4637_v34, %v4637_v34 }
  0x5d   : > { %v683_v54 = vadd.f32 %v682_v49, %v652_v61  ;;  %v469_v11 = vrot.slane %v468_v2, 4  ;;  %v675_v58 = vadd.f32 %v674_v25, %v653_v57  ;;  %v443_v52 = vadd.f32 %v442_v4, %v441_v21 }
  0x5e   : > { %v658_v62 = vrot.slane %v657_v14, 4  ;;  %v452_v32 = vadd.f32 %v451_v59, %v450_v28  ;;  %v667_v60 = vrot.slane %v666_v53, 4  ;;  %v461_v46 = vadd.f32 %v460_v24, %v459_v44 }
  0x5f   : > { %v684_v55 = vadd.f32 %v683_v54, %v654_v35  ;;  %v470_v38 = vadd.f32 %v469_v11, %v468_v2  ;;  %v676_v37 = vrot.slane %v675_v58, 4  ;;  %v444_v63 = vrot.slane %v443_v52, 2 }
  0x60   : > { %v659_v56 = vadd.f32 %v658_v62, %v657_v14  ;;  %v453_v6 = vrot.slane %v452_v32, 2  ;;  %v668_v23 = vadd.f32 %v667_v60, %v666_v53  ;;  %v462_v33 = vrot.slane %v461_v46, 2 }
  0x61   : > { %v685_v43 = vrot.slane %v684_v55, 4  ;;  %v471_v22 = vrot.slane %v470_v38, 2  ;;  %v677_v39 = vadd.f32 %v676_v37, %v675_v58  ;;  %v445_v47 = vadd.f32 %v444_v63, %v443_v52 }
  0x62   : > { %v660_v61 = vrot.slane %v659_v56, 2  ;;  %v454_v49 = vadd.f32 %v453_v6, %v452_v32  ;;  %v669_v57 = vrot.slane %v668_v23, 2  ;;  %v463_v21 = vadd.f32 %v462_v33, %v461_v46 }
  0x63   : > { %v686_v25 = vadd.f32 %v685_v43, %v684_v55  ;;  %v472_v28 = vadd.f32 %v471_v22, %v470_v38  ;;  %v678_v4 = vrot.slane %v677_v39, 2  ;;  %v446_v44 = vrot.slane %v445_v47, 1 }
  0x64   : > { %v661_v59 = vadd.f32 %v660_v61, %v659_v56  ;;  %v455_v2 = vrot.slane %v454_v49, 1  ;;  %v670_v24 = vadd.f32 %v669_v57, %v668_v23  ;;  %v464_v35 = vrot.slane %v463_v21, 1 }
  0x65   : > { %v687_v14 = vrot.slane %v686_v25, 2  ;;  %v473_v54 = vrot.slane %v472_v28, 1  ;;  %v679_v53 = vadd.f32 %v678_v4, %v677_v39  ;;  %v447_v11 = vadd.f32 %v446_v44, %v445_v47 }
  0x66   : > { %v662_v62 = vrot.slane %v661_v59, 1  ;;  %v456_v60 = vadd.f32 %v455_v2, %v454_v49  ;;  %v671_v58 = vrot.slane %v670_v24, 1  ;;  %v465_v52 = vadd.f32 %v464_v35, %v463_v21 }
  0x67   : > { %v688_v37 = vadd.f32 %v687_v14, %v686_v25  ;;  %v474_v32 = vadd.f32 %v473_v54, %v472_v28  ;;  %v680_v63 = vrot.slane %v679_v53, 1  ;;  %v475_v46 = vmul.f32 0.03125, %v447_v11 }
  0x68   : > { %v663_v55 = vadd.f32 %v662_v62, %v661_v59  ;;  %v476_v22 = vmul.f32 0.03125, %v456_v60  ;;  %v672_v38 = vadd.f32 %v671_v58, %v670_v24  ;;  %v477_v6 = vmul.f32 0.03125, %v465_v52 }
  0x69   : > { %v689_v56 = vrot.slane %v688_v37, 1  ;;  %v478_v33 = vmul.f32 0.03125, %v474_v32  ;;  %v681_v23 = vadd.f32 %v680_v63, %v679_v53  ;;  %v479_v43 = vadd.f32 1e-05, %v475_v46 }
  0x6a   : > { %v691_v61 = vmul.f32 0.03125, %v663_v55  ;;  %v480_v57 = vadd.f32 1e-05, %v476_v22  ;;  %v692_v39 = vmul.f32 0.03125, %v672_v38  ;;  %v481_v47 = vadd.f32 1e-05, %v477_v6 }
  0x6b   : > { %v690_v49 = vadd.f32 %v689_v56, %v688_v37  ;;  %v482_v4 = vadd.f32 1e-05, %v478_v33  ;;  %v693_v21 = vmul.f32 0.03125, %v681_v23  ;;  %3643 = vrsqrt.f32 %v479_v43 }
  0x6c   : > { %v695_v25 = vadd.f32 1e-05, %v691_v61  ;;  %3645 = vrsqrt.f32 %v480_v57  ;;  %v696_v28 = vadd.f32 1e-05, %v692_v39  ;;  %v4648_v58 = vstv %s793_s22  ;;  %s323_s22 = sand.u32 1, %s4157_s10  }
  0x6d   : > { %3647 = vrsqrt.f32 %v481_v47  ;;  %v694_v44 = vmul.f32 0.03125, %v690_v49  ;;  %v697_v59 = vadd.f32 1e-05, %v693_v21  ;;  %6919 = vst [vmem:[#allocation8_spill] sm:$0xff] %v4648_v58  ;;  %v4650_v52 = vstv %s811_s23  ;;  %s3466_s25 = sshll.u32 %s323_s22, 7  ;;  %s6771_s13 = scalar_lea.sflag [#allocation4], %s323_s22 }
  0x6e   : > { %3649 = vrsqrt.f32 %v482_v4  ;;  %6920 = vst [vmem:[#allocation9_spill] sm:$0xff] %v4650_v52  ;;  %v6921_v4 = vld [vmem:[#allocation12_spill] sm:$0xff]  ;;  %s6687_s17 = scalar_lea.vmem [#allocation5], %s3466_s25 }
  0x6f   : > { %3651 = vrsqrt.f32 %v695_v25  ;;  %v698_v2 = vadd.f32 1e-05, %v694_v44  ;;  %s3399_s25 = sshll.u32 %s6687_s17, 4  ;;  %s6765_s25 = int_to_ptr.vmem [resolvable:$true] %s3399_s25 }
  0x70   : > { %3653 = vrsqrt.f32 %v696_v28  ;;  %s4101_s29 = scalar_lea.vmem %s6765_s25, 2048  ;;  %p4108_p10 = scmp.lt.s32.totalorder %s6765_s25, %s4106_s16 }
  0x71   : > { %3655 = vrsqrt.f32 %v697_v59  ;;  %p4102_p6 = scmp.ne.s32.totalorder %s6765_s25, %s4101_s29  ;;  %p4109_p11 = scmp.lt.s32.totalorder %s4107_s21, %s4101_s29 }
  0x72   : > { %3657 = vrsqrt.f32 %v698_v2  ;;  %v6922_v2 = vld [vmem:[#allocation11_spill] sm:$0xff] }
  0x73   : > { %p4103_p8 = pnand %p4102_p6, %p4263_p5  ;;  %p4110_p12 = por %p4109_p11, %p4108_p10 }
  0x75   : > { %p4104_p9 = pneg %p4103_p8 }
  0x77   : > { %p4111_p13 = pnand %p4110_p12, %p4104_p9 }
  0x78   : > { %v3644_v24 = vpop.eup %3643 }
  0x79   : > { %v3646_v35 = vpop.eup %3645  ;;  %v493_v62 = vmul.f32 %v3644_v24, %v4502_v7  ;;  %v491_v63 = vmul.f32 %v3644_v24, %v4496_v12  ;;  %v4656_v55 = vmul.f32 %v3644_v24, %v4490_v45  ;;  %v4672_v45 = vmul.f32 %v3644_v24, %v4484_v41 }
  0x7a   : > { %v3648_v14 = vpop.eup %3647  ;;  %v494_v32 = vmul.f32 %v3646_v35, %v4505_v8  ;;  %v492_v46 = vmul.f32 %v3646_v35, %v4499_v51  ;;  %v4663_v33 = vmul.f32 %v3646_v35, %v4493_v48 }
  0x7b   : > { %v3650_v54 = vpop.eup %3649  ;;  %v501_v22 = vmul.f32 %v3648_v14, %v4526_v13  ;;  %v499_v7 = vmul.f32 %v3648_v14, %v4520_v26  ;;  %v4666_v8 = vmul.f32 %v3648_v14, %v4514_v19  ;;  %v4680_v48 = vmul.f32 %v3648_v14, %v4508_v9 }
  0x7c   : > { %v3652_v53 = vpop.eup %3651  ;;  %v502_v38 = vmul.f32 %v3650_v54, %v4529_v15  ;;  %v500_v6 = vmul.f32 %v3650_v54, %v4523_v30  ;;  %v4669_v12 = vmul.f32 %v3650_v54, %v4517_v20  ;;  %v4677_v30 = vmul.f32 %v3646_v35, %v4487_v42 }
  0x7d   : > { %v3654_v37 = vpop.eup %3653  ;;  %v709_v13 = vmul.f32 %v3652_v53, %v4611_v16  ;;  %v707_v19 = vmul.f32 %v3652_v53, %v4582_v29  ;;  %v4684_v20 = vmul.f32 %v3652_v53, %v4553_v1  ;;  %v4687_v41 = vmul.f32 %v3650_v54, %v4511_v10 }
  0x7e   : > { %v3656_v56 = vpop.eup %3655  ;;  %v710_v26 = vmul.f32 %v3654_v37, %v4616_v27  ;;  %v4690_v23 = vmul.f32 %v3652_v53, %v4550_v0  ;;  %v708_v42 = vmul.f32 %v3654_v37, %v4589_v36  ;;  %v4695_v43 = vmul.f32 %v3654_v37, %v4561_v5 }
  0x7f   : > { %v3658_v16 = vpop.eup %3657  ;;  %v717_v27 = vmul.f32 %v3656_v56, %v4628_v40  ;;  %v4698_v9 = vmul.f32 %v3654_v37, %v4558_v3  ;;  %v715_v1 = vmul.f32 %v3656_v56, %v4604_v50  ;;  %v4702_v10 = vmul.f32 %v3656_v56, %v4579_v18 }
  0x80   : > { %v4705_v0 = vmul.f32 %v3656_v56, %v4576_v17  ;;  %v718_v5 = vmul.f32 %v3658_v16, %v4637_v34  ;;  %v716_v3 = vmul.f32 %v3658_v16, %v4621_v31  ;;  %v4710_v21 = vmul.f32 %v3658_v16, %v6921_v4 }
  0x81   : > { %v4717_v24 = vmul.f32 %v3658_v16, %v6922_v2 }
  0xa1   : > { %v521_v11 = vpop.permute.xlu0 %520  ;;  %v516_v60 = vpop.permute.xlu1 %515 }
  0xa2   : > { %v530_v29 = vmul.f32 %v521_v11, %v494_v32  ;;  %v529_v61 = vmul.f32 %v521_v11, %v493_v62  ;;  %v537_v57 = vmul.f32 %v521_v11, %v501_v22  ;;  %v538_v28 = vmul.f32 %v521_v11, %v502_v38 }
  0xa3   : > { %v527_v44 = vmul.f32 %v516_v60, %v491_v63  ;;  %v528_v59 = vmul.f32 %v516_v60, %v492_v46  ;;  %v535_v35 = vmul.f32 %v516_v60, %v499_v7  ;;  %v536_v62 = vmul.f32 %v516_v60, %v500_v6 }
  0xa5   : > { %v737_v51 = vpop.permute.xlu0 %736  ;;  %v557_v15 = vpop.permute.xlu1 %556 }
  0xa6   : > { %v745_v40 = vmul.f32 %v737_v51, %v709_v13  ;;  %v746_v39 = vmul.f32 %v737_v51, %v710_v26  ;;  %v566_v49 = vadd.f32 %v557_v15, %v530_v29  ;;  %v4712_v50 = vadd.f32 %v557_v15, %v537_v57 }
  0xa7   : > { %v565_v17 = vadd.f32 %v557_v15, %v529_v61  ;;  %v753_v34 = vmul.f32 %v737_v51, %v717_v27  ;;  %v754_v37 = vmul.f32 %v737_v51, %v718_v5  ;;  %v4722_v32 = vadd.f32 %v557_v15, %v538_v28 }
  0xa8   : > { %v802_v11 = vmul.f32 %v4648_v58, %v566_v49  ;;  %v4727_v63 = vmul.f32 %v4648_v58, %v4712_v50  ;;  %v4748_v57 = vmul.f32 %v4650_v52, %v566_v49 }
  0xa9   : > { %v732_v36 = vpop.permute.xlu0 %731  ;;  %v773_v47 = vpop.permute.xlu1 %772  ;;  %v801_v38 = vmul.f32 %v4648_v58, %v565_v17 }
  0xaa   : > { %v4714_v18 = vadd.f32 %v773_v47, %v746_v39  ;;  %v781_v25 = vadd.f32 %v773_v47, %v745_v40  ;;  %v743_v46 = vmul.f32 %v732_v36, %v707_v19  ;;  %v4729_v22 = vadd.f32 %v773_v47, %v753_v34 }
  0xab   : > { %v744_v7 = vmul.f32 %v732_v36, %v708_v42  ;;  %v751_v56 = vmul.f32 %v732_v36, %v715_v1  ;;  %v752_v13 = vmul.f32 %v732_v36, %v716_v3  ;;  %v4732_v16 = vadd.f32 %v773_v47, %v754_v37 }
  0xac   : > { %v820_v54 = vmul.f32 %v4650_v52, %v4714_v18  ;;  %v819_v53 = vmul.f32 %v4650_v52, %v781_v25  ;;  %v4742_v42 = vmul.f32 %v4650_v52, %v4729_v22  ;;  %v4745_v1 = vmul.f32 %v4650_v52, %v565_v17 }
  0xad   : > { %v552_v14 = vpop.permute.xlu1 %551  ;;  %v511_v31 = vpop.permute.xlu0 %510  ;;  %v4752_v40 = vmul.f32 %v4648_v58, %v4722_v32 }
  0xae   : > { %v836_v26 = vadd.f32 %v820_v54, %v802_v11  ;;  %v563_v60 = vadd.f32 %v552_v14, %v527_v44  ;;  %v4734_v6 = vadd.f32 %v552_v14, %v528_v59  ;;  %v835_v27 = vadd.f32 %v819_v53, %v801_v38 }
  0xaf   : > { %v4736_v29 = vadd.f32 %v552_v14, %v535_v35  ;;  %v4754_v39 = vadd.f32 %v552_v14, %v536_v62  ;;  %v525_v36 = vmul.f32 %v511_v31, %v4656_v55  ;;  %v526_v47 = vmul.f32 %v511_v31, %v4663_v33 }
  0xb0   : > { %1006 = vmatprep.subr.mxu0 %v836_v26  ;;  %3577 = vmatprep.subr.mxu1 %v836_v26  ;;  %v533_v3 = vmul.f32 %v511_v31, %v4666_v8  ;;  %v534_v4 = vmul.f32 %v511_v31, %v4669_v12  ;;  %v4770_v55 = vmul.f32 %v4650_v52, %v563_v60 }
  0xb1   : > { %v768_v51 = vpop.permute.xlu1 %767  ;;  %v727_v15 = vpop.permute.xlu0 %726  ;;  %1007 = vmatpush1.msra.mxu0 %v835_v27  ;;  %3581 = vmatpush1.msra.mxu1 %v835_v27  ;;  %v4767_v59 = vmul.f32 %v4648_v58, %v4736_v29  ;;  %v4773_v33 = vmul.f32 %v4648_v58, %v781_v25  ;;  %v800_v8 = vmul.f32 %v4648_v58, %v4734_v6 }
  0xb2   : > { %v779_v19 = vadd.f32 %v768_v51, %v743_v46  ;;  %v4738_v61 = vadd.f32 %v768_v51, %v744_v7  ;;  %v4758_v5 = vadd.f32 %v768_v51, %v751_v56  ;;  %v4777_v12 = vadd.f32 %v768_v51, %v752_v13 }
  0xb3   : > { %v741_v2 = vmul.f32 %v727_v15, %v4684_v20  ;;  %v742_v35 = vmul.f32 %v727_v15, %v4695_v43  ;;  %v799_v34 = vmul.f32 %v4648_v58, %v563_v60  ;;  %v749_v25 = vmul.f32 %v727_v15, %v4702_v10 }
  0xb4   : > { %v818_v28 = vmul.f32 %v4650_v52, %v4738_v61  ;;  %v817_v44 = vmul.f32 %v4650_v52, %v779_v19  ;;  %v4784_v14 = vmul.f32 %v4650_v52, %v4758_v5  ;;  %v4787_v31 = vmul.f32 %v4648_v58, %v779_v19 }
  0xb5   : > { %v547_v17 = vpop.permute.xlu1 %546  ;;  %v506_v49 = vpop.permute.xlu0 %505  ;;  %v750_v53 = vmul.f32 %v727_v15, %v4710_v21  ;;  %v852_v21 = vmul.f32 %v4648_v58, %v4714_v18  ;;  %v828_v13 = vmul.f32 %v4650_v52, %v4732_v16 }
  0xb6   : > { %v834_v54 = vadd.f32 %v818_v28, %v800_v8  ;;  %v561_v62 = vadd.f32 %v547_v17, %v525_v36  ;;  %v4791_v37 = vadd.f32 %v547_v17, %v526_v47  ;;  %v833_v43 = vadd.f32 %v817_v44, %v799_v34 }
  0xb7   : > { %v4793_v46 = vadd.f32 %v547_v17, %v533_v3  ;;  %v4797_v56 = vadd.f32 %v547_v17, %v534_v4  ;;  %v523_v10 = vmul.f32 %v506_v49, %v4672_v45  ;;  %v524_v26 = vmul.f32 %v506_v49, %v4677_v30 }
  0xb8   : > { %1008 = vmatprep.subr.mxu0 %v834_v54  ;;  %3578 = vmatprep.subr.mxu1 %v834_v54  ;;  %v531_v60 = vmul.f32 %v506_v49, %v4680_v48  ;;  %v532_v51 = vmul.f32 %v506_v49, %v4687_v41  ;;  %v4819_v48 = vmul.f32 %v4650_v52, %v561_v62 }
  0xb9   : > { %v763_v20 = vpop.permute.xlu1 %762  ;;  %v722_v11 = vpop.permute.xlu0 %721  ;;  %1009 = vmatpush1.msra.mxu0 %v833_v43  ;;  %3582 = vmatpush1.msra.mxu1 %v833_v43  ;;  %v4816_v30 = vmul.f32 %v4648_v58, %v4793_v46  ;;  %v797_v17 = vmul.f32 %v4648_v58, %v561_v62  ;;  %v884_v8 = vadd.f32 %v4748_v57, %v852_v21 }
  0xba   : > { %v777_v38 = vadd.f32 %v763_v20, %v741_v2  ;;  %v4795_v7 = vadd.f32 %v763_v20, %v742_v35  ;;  %v740_v15 = vmul.f32 %v722_v11, %v4698_v9  ;;  %v4808_v27 = vadd.f32 %v763_v20, %v749_v25 }
  0xbb   : > { %v739_v45 = vmul.f32 %v722_v11, %v4690_v23  ;;  %v798_v9 = vmul.f32 %v4648_v58, %v4791_v37  ;;  %v4824_v49 = vadd.f32 %v763_v20, %v750_v53  ;;  %v747_v28 = vmul.f32 %v722_v11, %v4705_v0 }
  0xbc   : > { %v816_v18 = vmul.f32 %v4650_v52, %v4795_v7  ;;  %v815_v47 = vmul.f32 %v4650_v52, %v777_v38  ;;  %v4830_v2 = vmul.f32 %v4650_v52, %v4808_v27  ;;  %v847_v35 = vmul.f32 %v4648_v58, %v777_v38 }
  0xbd   : > { %v758_v19 = vpop.permute.xlu1 %757  ;;  %v542_v36 = vpop.permute.xlu0 %541  ;;  %v748_v34 = vmul.f32 %v722_v11, %v4717_v24  ;;  %v844_v62 = vadd.f32 %v828_v13, %v4752_v40  ;;  %v883_v20 = vadd.f32 %v4745_v1, %v4773_v33  ;;  %v850_v43 = vmul.f32 %v4648_v58, %v4738_v61  ;;  %v4856_v1 = vld [vmem:[%s6813_s2] sm:$0xff] }
  0xbe   : > { %v776_v41 = vadd.f32 %v758_v19, %v740_v15  ;;  %v775_v3 = vadd.f32 %v758_v19, %v739_v45  ;;  %v559_v23 = vadd.f32 %v542_v36, %v523_v10  ;;  %v560_v4 = vadd.f32 %v542_v36, %v524_v26  ;;  %v4862_v61 = vld [vmem:[%s6813_s2 + $0x20] sm:$0xff] }
  0xbf   : > { %v832_v44 = vadd.f32 %v816_v18, %v798_v9  ;;  %v831_v25 = vadd.f32 %v815_v47, %v797_v17  ;;  %v4841_v24 = vadd.f32 %v758_v19, %v747_v28  ;;  %v826_v38 = vmul.f32 %v4650_v52, %v4777_v12 }
  0xc0   : > { %v796_v54 = vmul.f32 %v4648_v58, %v560_v4  ;;  %v814_v53 = vmul.f32 %v4650_v52, %v776_v41  ;;  %v795_v0 = vmul.f32 %v4648_v58, %v559_v23  ;;  %v813_v57 = vmul.f32 %v4650_v52, %v775_v3 }
  0xc1   : > { %1010 = vmatprep.subr.mxu0 %v832_v44  ;;  %3579 = vmatprep.subr.mxu1 %v832_v44  ;;  %v4847_v10 = vadd.f32 %v758_v19, %v748_v34  ;;  %v4849_v21 = vadd.f32 %v542_v36, %v531_v60  ;;  %v4851_v26 = vadd.f32 %v542_v36, %v532_v51  ;;  %v6923_v17 = vmov 0.0  }
  0xc2   : > { %1011 = vmatpush1.msra.mxu0 %v831_v25  ;;  %3583 = vmatpush1.msra.mxu1 %v831_v25  ;;  %v830_v11 = vadd.f32 %v814_v53, %v796_v54  ;;  %v829_v15 = vadd.f32 %v813_v57, %v795_v0  ;;  %v845_v40 = vmul.f32 %v4648_v58, %v775_v3 }
  0xc3   : > { %v866_v33 = vmul.f32 %v4650_v52, %v4734_v6  ;;  %v808_v13 = vmul.f32 %v4648_v58, %v4754_v39  ;;  %v843_v60 = vadd.f32 %v4742_v42, %v4727_v63  ;;  %v881_v51 = vadd.f32 %v4770_v55, %v4787_v31 }
  0xc4   : > { %1012 = vmatprep.subr.mxu0 %v830_v11  ;;  %3580 = vmatprep.subr.mxu1 %v830_v11  ;;  %v848_v45 = vmul.f32 %v4648_v58, %v4795_v7  ;;  %v824_v36 = vmul.f32 %v4650_v52, %v4824_v49  ;;  %v864_v63 = vmul.f32 %v4650_v52, %v4791_v37  ;;  %v948_v11 = vld [vmem:[%s6813_s2 + $0x38] sm:$0xff] }
  0xc5   : > { %1013 = vmatpush1.msra.mxu0 %v829_v15  ;;  %3584 = vmatpush1.msra.mxu1 %v829_v15  ;;  %v882_v19 = vadd.f32 %v866_v33, %v850_v43  ;;  %v842_v6 = vadd.f32 %v826_v38, %v808_v13  ;;  %v806_v42 = vmul.f32 %v4648_v58, %v4797_v56 }
  0xc6   : > { %3467 = vmatmul.mubr.msk.f32.vlgmr.msra.gmra.mxu0 %vm957_vm0, %v4856_v1  ;;  %1131 = vmatprep.subr.mxu1 %v884_v8  ;;  %v846_v55 = vmul.f32 %v4648_v58, %v776_v41  ;;  %v862_v31 = vmul.f32 %v4650_v52, %v560_v4  ;;  %v804_v7 = vmul.f32 %v4648_v58, %v4851_v26  ;;  %v4896_v41 = vld [vmem:[%s6813_s2 + $0x8] sm:$0xff] }
  0xc7   : > { %1637 = vmatprep.subr.mxu0 %v844_v62  ;;  %3471 = vmatmul.mubr.msk.f32.vlgmr.msra.gmra.mxu1 %vm957_vm0, %v4862_v61  ;;  %v822_v18 = vmul.f32 %v4650_v52, %v4847_v10  ;;  %v861_v47 = vmul.f32 %v4650_v52, %v559_v23  ;;  %v841_v37 = vadd.f32 %v4784_v14, %v4767_v59 }
  0xc8   : > { %1132 = vmatpush1.msra.mxu1 %v883_v20  ;;  %1638 = vmatpush1.msra.mxu0 %v843_v60  ;;  %v880_v9 = vadd.f32 %v864_v63, %v848_v45  ;;  %v821_v3 = vmul.f32 %v4650_v52, %v4841_v24  ;;  %v803_v4 = vmul.f32 %v4648_v58, %v4849_v21 }
  0xc9   : > { %1133 = vmatprep.subr.mxu1 %v882_v19  ;;  %1639 = vmatprep.subr.mxu0 %v842_v6  ;;  %v840_v23 = vadd.f32 %v824_v36, %v806_v42  ;;  %v879_v59 = vadd.f32 %v4819_v48, %v847_v35  ;;  %v839_v14 = vadd.f32 %v4830_v2, %v4816_v30  ;;  %v943_v30 = vld [vmem:[%s6813_s2 + $0x10] sm:$0xff]  ;;  %v4919_v2 = vld [vmem:[%s6813_s2 + $0x28] sm:$0xff] }
  0xca   : > { %1052 = vmatprep.mubr.f32.mxu0 %v6923_v17  ;;  %1134 = vmatpush1.msra.mxu1 %v881_v51  ;;  %v860_v28 = vmul.f32 %v4648_v58, %v4732_v16  ;;  %v878_v44 = vadd.f32 %v862_v31, %v846_v55  ;;  %v838_v8 = vadd.f32 %v822_v18, %v804_v7  ;;  %v947_v35 = vld [vmem:[%s6813_s2 + $0x30] sm:$0xff] }
  0xcb   : > { %1640 = vmatpush1.msra.mxu0 %v841_v37  ;;  %1135 = vmatprep.subr.mxu1 %v880_v9  ;;  %v877_v34 = vadd.f32 %v861_v47, %v845_v40  ;;  %v876_v25 = vmul.f32 %v4650_v52, %v4722_v32  ;;  %v837_v48 = vadd.f32 %v821_v3, %v803_v4  ;;  %v944_v32 = vld [vmem:[%s6813_s2 + $0x18] sm:$0xff] }
  0xcc   : > { %3468 = vmatmul.mubr.msk.f32.gmra.mxu0 %vm957_vm0, %v4896_v41  ;;  %1641 = vmatprep.subr.mxu0 %v840_v23  ;;  %v859_v54 = vmul.f32 %v4648_v58, %v4729_v22  ;;  %v858_v53 = vmul.f32 %v4648_v58, %v4777_v12  ;;  %v875_v0 = vmul.f32 %v4650_v52, %v4712_v50  ;;  %v952_v40 = vld [vmem:[%s6814_s3 + $0x18] sm:$0xff] }
  0xcd   : > { %1136 = vmatpush1.msra.mxu1 %v879_v59  ;;  %1642 = vmatpush1.msra.mxu0 %v839_v14  ;;  %v892_v16 = vadd.f32 %v876_v25, %v860_v28  ;;  %v857_v57 = vmul.f32 %v4648_v58, %v4758_v5  ;;  %v874_v62 = vmul.f32 %v4650_v52, %v4754_v39 }
  0xce   : > { %1137 = vmatprep.subr.mxu1 %v878_v44  ;;  %1643 = vmatprep.subr.mxu0 %v838_v8  ;;  %v856_v22 = vmul.f32 %v4648_v58, %v4824_v49  ;;  %v873_v12 = vmul.f32 %v4650_v52, %v4736_v29  ;;  %v871_v50 = vmul.f32 %v4650_v52, %v4793_v46 }
  0xcf   : > { %1058 = vmatprep.mubr.f32.mxu0 %v6923_v17  ;;  %1138 = vmatpush1.msra.mxu1 %v877_v34  ;;  %v855_v5 = vmul.f32 %v4648_v58, %v4808_v27  ;;  %v891_v20 = vadd.f32 %v875_v0, %v859_v54  ;;  %v890_v39 = vadd.f32 %v874_v62, %v858_v53 }
  0xd0   : > { %1644 = vmatpush1.msra.mxu0 %v837_v48  ;;  %1076 = vmatprep.mubr.f32.mxu1 %v6923_v17  ;;  %v872_v49 = vmul.f32 %v4650_v52, %v4797_v56  ;;  %v854_v29 = vmul.f32 %v4648_v58, %v4847_v10  ;;  %v870_v46 = vmul.f32 %v4650_v52, %v4851_v26  ;;  %v949_v10 = vld [vmem:[%s6814_s3] sm:$0xff]  ;;  %v950_v26 = vld [vmem:[%s6814_s3 + $0x8] sm:$0xff] }
  0xd1   : > { %3469 = vmatmul.mubr.msk.f32.gmra.mxu0 %vm957_vm0, %v943_v30  ;;  %1750 = vmatprep.subr.mxu0 %v892_v16  ;;  %v853_v27 = vmul.f32 %v4648_v58, %v4841_v24  ;;  %v869_v43 = vmul.f32 %v4650_v52, %v4849_v21  ;;  %v889_v38 = vadd.f32 %v873_v12, %v857_v57 }
  0xd2   : > { %1064 = vmatprep.mubr.f32.mxu0 %v6923_v17  ;;  %3472 = vmatmul.mubr.msk.f32.gmra.mxu1 %vm957_vm0, %v4919_v2  ;;  %v888_v15 = vadd.f32 %v872_v49, %v856_v22  ;;  %v887_v56 = vadd.f32 %v871_v50, %v855_v5  ;;  %v886_v24 = vadd.f32 %v870_v46, %v854_v29 }
  0xd3   : > { %1082 = vmatprep.mubr.f32.mxu1 %v6923_v17  ;;  %v885_v21 = vadd.f32 %v869_v43, %v853_v27 }
  0xd5   : > { %3470 = vmatmul.mubr.msk.f32.gmra.mxu0 %vm957_vm0, %v944_v32 }
  0xd6   : > { %1677 = vmatprep.mubr.f32.mxu0 %v6923_v17  ;;  %3473 = vmatmul.mubr.msk.f32.gmra.mxu1 %vm957_vm0, %v947_v35 }
  0xd7   : > { %1088 = vmatprep.mubr.f32.mxu1 %v6923_v17 }
  0xd9   : > { %3511 = vmatmul.mubr.msk.f32.vlgmr.msra.gmra.mxu0 %vm957_vm0, %v4856_v1  ;;  %v951_v1 = vld [vmem:[%s6814_s3 + $0x10] sm:$0xff] }
  0xda   : > { %1751 = vmatpush1.msra.mxu0 %v891_v20  ;;  %1683 = vmatprep.mubr.f32.mxu0 %v6923_v17 }
  0xdb   : > { %1752 = vmatprep.subr.mxu0 %v890_v39  ;;  %3474 = vmatmul.mubr.msk.f32.gmra.mxu1 %vm957_vm0, %v948_v11 }
  0xdc   : > { %1753 = vmatpush1.msra.mxu0 %v889_v38  ;;  %1171 = vmatprep.mubr.f32.mxu1 %v6923_v17 }
  0xdd   : > { %1754 = vmatprep.subr.mxu0 %v888_v15  ;;  %3512 = vmatmul.mubr.msk.f32.gmra.mxu0 %vm957_vm0, %v4896_v41 }
  0xde   : > { %1755 = vmatpush1.msra.mxu0 %v887_v56  ;;  %1689 = vmatprep.mubr.f32.mxu0 %v6923_v17 }
  0xdf   : > { %1756 = vmatprep.subr.mxu0 %v886_v24  ;;  %3475 = vmatmul.mubr.msk.f32.vlgmr.msra.gmra.mxu1 %vm957_vm0, %v949_v10 }
  0xe0   : > { %1757 = vmatpush1.msra.mxu0 %v885_v21  ;;  %1177 = vmatprep.mubr.f32.mxu1 %v6923_v17 }
  0xe1   : > { %3513 = vmatmul.mubr.msk.f32.gmra.mxu0 %vm957_vm0, %v943_v30 }
  0xe2   : > { %1695 = vmatprep.mubr.f32.mxu0 %v6923_v17 }
  0xe3   : > { %3476 = vmatmul.mubr.msk.f32.gmra.mxu1 %vm957_vm0, %v950_v26 }
  0xe4   : > { %1183 = vmatprep.mubr.f32.mxu1 %v6923_v17 }
  0xe5   : > { %3514 = vmatmul.mubr.msk.f32.gmra.mxu0 %vm957_vm0, %v944_v32 }
  0xe6   : > { %1701 = vmatprep.mubr.f32.mxu0 %v6923_v17 }
  0xe7   : > { %3477 = vmatmul.mubr.msk.f32.gmra.mxu1 %vm957_vm0, %v951_v1 }
  0xe8   : > { %1189 = vmatprep.mubr.f32.mxu1 %v6923_v17 }
  0xe9   : > { %3515 = vmatmul.mubr.msk.f32.gmra.mxu0 %vm957_vm0, %v4862_v61 }
  0xea   : > { %1707 = vmatprep.mubr.f32.mxu0 %v6923_v17 }
  0xeb   : > { %3478 = vmatmul.mubr.msk.f32.gmra.mxu1 %vm957_vm0, %v952_v40 }
  0xec   : > { %1420 = vmatprep.mubr.f32.mxu1 %v6923_v17 }
  0xed   : > { %3516 = vmatmul.mubr.msk.f32.gmra.mxu0 %vm957_vm0, %v4919_v2 }
  0xee   : > { %1713 = vmatprep.mubr.f32.mxu0 %v6923_v17 }
  0xf1   : > { %3517 = vmatmul.mubr.msk.f32.gmra.mxu0 %vm957_vm0, %v947_v35 }
  0xf2   : > { %1719 = vmatprep.mubr.f32.mxu0 %v6923_v17 }
  0xf5   : > { %3518 = vmatmul.mubr.msk.f32.gmra.mxu0 %vm957_vm0, %v948_v11 }
  0xf6   : > { %1790 = vmatprep.mubr.f32.mxu0 %v6923_v17 }
  0xf9   : > { %3519 = vmatmul.mubr.msk.f32.vlgmr.msra.gmra.mxu0 %vm957_vm0, %v949_v10 }
  0xfa   : > { %1796 = vmatprep.mubr.f32.mxu0 %v6923_v17 }
  0xfd   : > { %3520 = vmatmul.mubr.msk.f32.gmra.mxu0 %vm957_vm0, %v950_v26 }
  0xfe   : > { %1802 = vmatprep.mubr.f32.mxu0 %v6923_v17 }
 0x101   : > { %3521 = vmatmul.mubr.msk.f32.gmra.mxu0 %vm957_vm0, %v951_v1 }
 0x102   : > { %1808 = vmatprep.mubr.f32.mxu0 %v6923_v17 }
 0x105   : > { %3522 = vmatmul.mubr.msk.f32.gmra.mxu0 %vm957_vm0, %v952_v40 }
 0x106   : > { %2039 = vmatprep.mubr.f32.mxu0 %v6923_v17 }
 0x186   : > { %v1048_v61 = vpop.f32.mrf.mxu0 }
 0x187   : > { %1196 = vxpose.xlu0.b32.start [1/4] (short) %v1048_v61, 128  ;;  %v5018_v13 = vpop.f32.mrf.mxu1 }
 0x188   : > { %v1050_v33 = vpop.f32.mrf.mxu0  ;;  %6924 = vst [vmem:[#allocation10_spill] sm:$0xff] %v5018_v13 }
 0x189   : > { %v5020_v45 = vpop.f32.mrf.mxu1 }
 0x18c   : > { %v1054_v60 = vpop.f32.mrf.mxu0 }
 0x18d   : > { %1197 = vxpose.xlu0.b32.cont [2/4] (short) %v1054_v60, 128 }
 0x18e   : > { %v1056_v51 = vpop.f32.mrf.mxu0 }
 0x191   : > { %v1060_v19 = vpop.f32.mrf.mxu0 }
 0x192   : > { %1198 = vxpose.xlu0.b32.cont [3/4] (short) %v1060_v19, 128  ;;  %v5022_v6 = vpop.f32.mrf.mxu1 }
 0x193   : > { %6925 = vst [vmem:[#allocation12_spill] sm:$0xff] %v5022_v6  ;;  %v1062_v36 = vpop.f32.mrf.mxu0 }
 0x194   : > { %v5024_v63 = vpop.f32.mrf.mxu1 }
 0x195   : > { %6926 = vst [vmem:[#allocation11_spill] sm:$0xff] %v5024_v63  ;;  %v1066_v42 = vpop.f32.mrf.mxu0 }
 0x196   : > { %1199 = vxpose.xlu0.b32.end [4/4] (short) %v1066_v42, 128  ;;  %v5026_v55 = vpop.f32.mrf.mxu1 }
 0x197   : > { %6927 = vst [vmem:[#allocation13_spill] sm:$0xff] %v5026_v55  ;;  %v1068_v31 = vpop.f32.mrf.mxu0 }
 0x198   : > { %v5028_v7 = vpop.f32.mrf.mxu1 }
 0x199   : > { %6928 = vst [vmem:[#allocation14_spill] sm:$0xff] %v5028_v7  ;;  %v1679_v18 = vpop.f32.mrf.mxu0 }
 0x19a   : > { %1815 = vxpose.xlu1.b32.start [1/4] (short) %v1679_v18, 128 }
 0x19b   : > { %v1681_v47 = vpop.f32.mrf.mxu0  ;;  %v5030_v37 = vpop.f32.mrf.mxu1 }
 0x19c   : > { %6929 = vst [vmem:[#allocation15_spill] sm:$0xff] %v5030_v37 }
 0x19d   : > { %v1685_v41 = vpop.f32.mrf.mxu0  ;;  %v5032_v9 = vpop.f32.mrf.mxu1 }
 0x19e   : > { %6930 = vst [vmem:[#allocation16_spill] sm:$0xff] %v5032_v9  ;;  %1816 = vxpose.xlu1.b32.cont [2/4] (short) %v1685_v41, 128 }
 0x19f   : > { %v1687_v3 = vpop.f32.mrf.mxu0  ;;  %v1173_v4 = vpop.f32.mrf.mxu1 }
 0x1a1   : > { %v1691_v23 = vpop.f32.mrf.mxu0  ;;  %v1175_v59 = vpop.f32.mrf.mxu1 }
 0x1a2   : > { %1817 = vxpose.xlu1.b32.cont [3/4] (short) %v1691_v23, 128 }
 0x1a3   : > { %v1693_v14 = vpop.f32.mrf.mxu0  ;;  %v1179_v28 = vpop.f32.mrf.mxu1 }
 0x1a5   : > { %v1697_v44 = vpop.f32.mrf.mxu0  ;;  %v1181_v8 = vpop.f32.mrf.mxu1 }
 0x1a6   : > { %1818 = vxpose.xlu1.b32.end [4/4] (short) %v1697_v44, 128 }
 0x1a7   : > { %v1699_v34 = vpop.f32.mrf.mxu0  ;;  %v1185_v25 = vpop.f32.mrf.mxu1 }
 0x1a9   : > { %v5034_v48 = vpop.f32.mrf.mxu0  ;;  %v1187_v30 = vpop.f32.mrf.mxu1 }
 0x1aa   : > { %6931 = vst [vmem:[#allocation17_spill] sm:$0xff] %v5034_v48 }
 0x1ab   : > { %v5036_v16 = vpop.f32.mrf.mxu0  ;;  %v1191_v2 = vpop.f32.mrf.mxu1 }
 0x1ad   : > { %v5038_v32 = vpop.f32.mrf.mxu0  ;;  %v1193_v35 = vpop.f32.mrf.mxu1 }
 0x1ae   : > { %6932 = vst [vmem:[#allocation18_spill] sm:$0xff] %v5038_v32  ;;  %1380 = vmatprep.subr.mxu1 %v1193_v35 }
 0x1af   : > { %v5040_v54 = vpop.f32.mrf.mxu0  ;;  %1381 = vmatpush1.msra.mxu1 %v1191_v2 }
 0x1b0   : > { %6933 = vst [vmem:[#allocation19_spill] sm:$0xff] %v5040_v54  ;;  %1382 = vmatprep.subr.mxu1 %v1187_v30 }
 0x1b1   : > { %v5042_v53 = vpop.f32.mrf.mxu0  ;;  %1383 = vmatpush1.msra.mxu1 %v1185_v25 }
 0x1b2   : > { %6934 = vst [vmem:[#allocation20_spill] sm:$0xff] %v5042_v53  ;;  %1384 = vmatprep.subr.mxu1 %v1181_v8 }
 0x1b3   : > { %v5044_v0 = vpop.f32.mrf.mxu0  ;;  %1385 = vmatpush1.msra.mxu1 %v1179_v28 }
 0x1b4   : > { %6935 = vst [vmem:[#allocation21_spill] sm:$0xff] %v5044_v0  ;;  %1386 = vmatprep.subr.mxu1 %v1175_v59 }
 0x1b5   : > { %v5046_v57 = vpop.f32.mrf.mxu0  ;;  %1387 = vmatpush1.msra.mxu1 %v1173_v4 }
 0x1b6   : > { %6936 = vst [vmem:[#allocation22_spill] sm:$0xff] %v5046_v57 }
 0x1b7   : > { %v5048_v62 = vpop.f32.mrf.mxu0 }
 0x1b8   : > { %6937 = vst [vmem:[#allocation23_spill] sm:$0xff] %v5048_v62 }
 0x1b9   : > { %v1792_v22 = vpop.f32.mrf.mxu0 }
 0x1bb   : > { %v1794_v12 = vpop.f32.mrf.mxu0 }
 0x1bd   : > { %v1798_v50 = vpop.f32.mrf.mxu0 }
 0x1bf   : > { %v1800_v5 = vpop.f32.mrf.mxu0 }
 0x1c1   : > { %v1804_v20 = vpop.f32.mrf.mxu0 }
 0x1c3   : > { %v1806_v11 = vpop.f32.mrf.mxu0 }
 0x1c5   : > { %v1810_v39 = vpop.f32.mrf.mxu0 }
 0x1c7   : > { %1228 = vxpose.xlu0.b32.start [1/4] (short) %v1050_v33, 128  ;;  %v1812_v49 = vpop.f32.mrf.mxu0 }
 0x1c8   : > { %1999 = vmatprep.subr.mxu0 %v1812_v49 }
 0x1c9   : > { %2000 = vmatpush1.msra.mxu0 %v1810_v39 }
 0x1ca   : > { %2001 = vmatprep.subr.mxu0 %v1806_v11 }
 0x1cb   : > { %1229 = vxpose.xlu0.b32.cont [2/4] (short) %v1056_v51, 128  ;;  %2002 = vmatpush1.msra.mxu0 %v1804_v20 }
 0x1cc   : > { %2003 = vmatprep.subr.mxu0 %v1800_v5 }
 0x1cd   : > { %2004 = vmatpush1.msra.mxu0 %v1798_v50 }
 0x1ce   : > { %2005 = vmatprep.subr.mxu0 %v1794_v12 }
 0x1cf   : > { %1230 = vxpose.xlu0.b32.cont [3/4] (short) %v1062_v36, 128  ;;  %2006 = vmatpush1.msra.mxu0 %v1792_v22 }
 0x1d3   : > { %1231 = vxpose.xlu0.b32.end [4/4] (short) %v1068_v31, 128 }
 0x1d7   : > { %1847 = vxpose.xlu1.b32.start [1/4] (short) %v1681_v47, 128 }
 0x1db   : > { %1848 = vxpose.xlu1.b32.cont [2/4] (short) %v1687_v3, 128 }
 0x1df   : > { %1849 = vxpose.xlu1.b32.cont [3/4] (short) %v1693_v14, 128 }
 0x1e3   : > { %1850 = vxpose.xlu1.b32.end [4/4] (short) %v1699_v34, 128 }
 0x206   : > { %v1212_v29 = vpop.trf.xlu0 }
 0x207   : > { %3479 = vmatmul.mubr.msk.f32.vlgmr.msra.gmra.mxu1 %vm957_vm0, %v1212_v29 }
 0x208   : > { %1426 = vmatprep.mubr.f32.mxu1 %v6923_v17 }
 0x20a   : > { %v1213_v46 = vpop.trf.xlu0 }
 0x20b   : > { %3480 = vmatmul.mubr.msk.f32.gmra.mxu1 %vm957_vm0, %v1213_v46 }
 0x20c   : > { %1432 = vmatprep.mubr.f32.mxu1 %v6923_v17 }
 0x20e   : > { %v1214_v27 = vpop.trf.xlu0 }
 0x20f   : > { %3481 = vmatmul.mubr.msk.f32.gmra.mxu1 %vm957_vm0, %v1214_v27 }
 0x210   : > { %1438 = vmatprep.mubr.f32.mxu1 %v6923_v17 }
 0x212   : > { %v1215_v43 = vpop.trf.xlu0 }
 0x213   : > { %3482 = vmatmul.mubr.msk.f32.gmra.mxu1 %vm957_vm0, %v1215_v43 }
 0x214   : > { %1444 = vmatprep.mubr.f32.mxu1 %v6923_v17 }
 0x216   : > { %v1216_v38 = vpop.trf.xlu0  ;;  %v1831_v15 = vpop.trf.xlu1 }
 0x217   : > { %3483 = vmatmul.mubr.msk.f32.gmra.mxu1 %vm957_vm0, %v1216_v38  ;;  %3523 = vmatmul.mubr.msk.f32.vlgmr.msra.gmra.mxu0 %vm957_vm0, %v1831_v15 }
 0x218   : > { %1450 = vmatprep.mubr.f32.mxu1 %v6923_v17  ;;  %2045 = vmatprep.mubr.f32.mxu0 %v6923_v17 }
 0x21a   : > { %v1217_v56 = vpop.trf.xlu0  ;;  %v1832_v10 = vpop.trf.xlu1 }
 0x21b   : > { %3484 = vmatmul.mubr.msk.f32.gmra.mxu1 %vm957_vm0, %v1217_v56  ;;  %3524 = vmatmul.mubr.msk.f32.gmra.mxu0 %vm957_vm0, %v1832_v10 }
 0x21c   : > { %1456 = vmatprep.mubr.f32.mxu1 %v6923_v17  ;;  %2051 = vmatprep.mubr.f32.mxu0 %v6923_v17 }
 0x21e   : > { %v1218_v24 = vpop.trf.xlu0  ;;  %v1833_v21 = vpop.trf.xlu1 }
 0x21f   : > { %3485 = vmatmul.mubr.msk.f32.gmra.mxu1 %vm957_vm0, %v1218_v24  ;;  %3525 = vmatmul.mubr.msk.f32.gmra.mxu0 %vm957_vm0, %v1833_v21 }
 0x220   : > { %1462 = vmatprep.mubr.f32.mxu1 %v6923_v17  ;;  %2057 = vmatprep.mubr.f32.mxu0 %v6923_v17 }
 0x222   : > { %v1219_v26 = vpop.trf.xlu0  ;;  %v1834_v1 = vpop.trf.xlu1 }
 0x223   : > { %3486 = vmatmul.mubr.msk.f32.gmra.mxu1 %vm957_vm0, %v1219_v26  ;;  %3526 = vmatmul.mubr.msk.f32.gmra.mxu0 %vm957_vm0, %v1834_v1 }
 0x224   : > { %1468 = vmatprep.mubr.f32.mxu1 %v6923_v17  ;;  %2063 = vmatprep.mubr.f32.mxu0 %v6923_v17 }
 0x226   : > { %v1220_v40 = vpop.trf.xlu0  ;;  %v1835_v61 = vpop.trf.xlu1 }
 0x227   : > { %3487 = vmatmul.mubr.msk.f32.gmra.mxu1 %vm957_vm0, %v1220_v40  ;;  %3527 = vmatmul.mubr.msk.f32.gmra.mxu0 %vm957_vm0, %v1835_v61 }
 0x228   : > { %1474 = vmatprep.mubr.f32.mxu1 %v6923_v17  ;;  %2069 = vmatprep.mubr.f32.mxu0 %v6923_v17 }
 0x22a   : > { %v1221_v33 = vpop.trf.xlu0  ;;  %v1836_v60 = vpop.trf.xlu1 }
 0x22b   : > { %3488 = vmatmul.mubr.msk.f32.gmra.mxu1 %vm957_vm0, %v1221_v33  ;;  %3528 = vmatmul.mubr.msk.f32.gmra.mxu0 %vm957_vm0, %v1836_v60 }
 0x22c   : > { %1480 = vmatprep.mubr.f32.mxu1 %v6923_v17  ;;  %2075 = vmatprep.mubr.f32.mxu0 %v6923_v17 }
 0x22e   : > { %v1222_v51 = vpop.trf.xlu0  ;;  %v1837_v19 = vpop.trf.xlu1 }
 0x22f   : > { %3489 = vmatmul.mubr.msk.f32.gmra.mxu1 %vm957_vm0, %v1222_v51  ;;  %3529 = vmatmul.mubr.msk.f32.gmra.mxu0 %vm957_vm0, %v1837_v19 }
 0x230   : > { %1486 = vmatprep.mubr.f32.mxu1 %v6923_v17  ;;  %2081 = vmatprep.mubr.f32.mxu0 %v6923_v17 }
 0x232   : > { %v1223_v36 = vpop.trf.xlu0  ;;  %v1838_v42 = vpop.trf.xlu1 }
 0x233   : > { %3490 = vmatmul.mubr.msk.f32.gmra.mxu1 %vm957_vm0, %v1223_v36  ;;  %3530 = vmatmul.mubr.msk.f32.gmra.mxu0 %vm957_vm0, %v1838_v42 }
 0x234   : > { %1492 = vmatprep.mubr.f32.mxu1 %v6923_v17  ;;  %2087 = vmatprep.mubr.f32.mxu0 %v6923_v17 }
 0x236   : > { %v1224_v31 = vpop.trf.xlu0  ;;  %v1839_v18 = vpop.trf.xlu1 }
 0x237   : > { %3491 = vmatmul.mubr.msk.f32.gmra.mxu1 %vm957_vm0, %v1224_v31  ;;  %3531 = vmatmul.mubr.msk.f32.gmra.mxu0 %vm957_vm0, %v1839_v18 }
 0x238   : > { %1498 = vmatprep.mubr.f32.mxu1 %v6923_v17  ;;  %2093 = vmatprep.mubr.f32.mxu0 %v6923_v17 }
 0x23a   : > { %v1225_v47 = vpop.trf.xlu0  ;;  %v1840_v41 = vpop.trf.xlu1 }
 0x23b   : > { %3492 = vmatmul.mubr.msk.f32.gmra.mxu1 %vm957_vm0, %v1225_v47  ;;  %3532 = vmatmul.mubr.msk.f32.gmra.mxu0 %vm957_vm0, %v1840_v41 }
 0x23c   : > { %1504 = vmatprep.mubr.f32.mxu1 %v6923_v17  ;;  %2099 = vmatprep.mubr.f32.mxu0 %v6923_v17 }
 0x23e   : > { %v1226_v3 = vpop.trf.xlu0  ;;  %v1841_v4 = vpop.trf.xlu1 }
 0x23f   : > { %3493 = vmatmul.mubr.msk.f32.gmra.mxu1 %vm957_vm0, %v1226_v3  ;;  %3533 = vmatmul.mubr.msk.f32.gmra.mxu0 %vm957_vm0, %v1841_v4 }
 0x240   : > { %1510 = vmatprep.mubr.f32.mxu1 %v6923_v17  ;;  %2105 = vmatprep.mubr.f32.mxu0 %v6923_v17 }
 0x242   : > { %v1227_v23 = vpop.trf.xlu0  ;;  %v1842_v59 = vpop.trf.xlu1 }
 0x243   : > { %3494 = vmatmul.mubr.msk.f32.gmra.mxu1 %vm957_vm0, %v1227_v23  ;;  %3534 = vmatmul.mubr.msk.f32.gmra.mxu0 %vm957_vm0, %v1842_v59 }
 0x244   : > { %1516 = vmatprep.mubr.f32.mxu1 %v6923_v17  ;;  %2111 = vmatprep.mubr.f32.mxu0 %v6923_v17 }
 0x246   : > { %v1244_v14 = vpop.trf.xlu0  ;;  %v1843_v28 = vpop.trf.xlu1 }
 0x247   : > { %3495 = vmatmul.mubr.msk.f32.gmra.mxu1 %vm957_vm0, %v1244_v14  ;;  %3535 = vmatmul.mubr.msk.f32.gmra.mxu0 %vm957_vm0, %v1843_v28 }
 0x248   : > { %1522 = vmatprep.mubr.f32.mxu1 %v6923_v17  ;;  %2117 = vmatprep.mubr.f32.mxu0 %v6923_v17 }
 0x24a   : > { %v1245_v44 = vpop.trf.xlu0  ;;  %v1844_v8 = vpop.trf.xlu1 }
 0x24b   : > { %3496 = vmatmul.mubr.msk.f32.gmra.mxu1 %vm957_vm0, %v1245_v44  ;;  %3536 = vmatmul.mubr.msk.f32.gmra.mxu0 %vm957_vm0, %v1844_v8 }
 0x24c   : > { %1528 = vmatprep.mubr.f32.mxu1 %v6923_v17  ;;  %2123 = vmatprep.mubr.f32.mxu0 %v6923_v17 }
 0x24e   : > { %v1246_v34 = vpop.trf.xlu0  ;;  %v1845_v25 = vpop.trf.xlu1 }
 0x24f   : > { %3497 = vmatmul.mubr.msk.f32.gmra.mxu1 %vm957_vm0, %v1246_v34  ;;  %3537 = vmatmul.mubr.msk.f32.gmra.mxu0 %vm957_vm0, %v1845_v25 }
 0x250   : > { %1534 = vmatprep.mubr.f32.mxu1 %v6923_v17  ;;  %2129 = vmatprep.mubr.f32.mxu0 %v6923_v17 }
 0x252   : > { %v1247_v30 = vpop.trf.xlu0  ;;  %v1846_v2 = vpop.trf.xlu1 }
 0x253   : > { %3498 = vmatmul.mubr.msk.f32.gmra.mxu1 %vm957_vm0, %v1247_v30  ;;  %3538 = vmatmul.mubr.msk.f32.gmra.mxu0 %vm957_vm0, %v1846_v2 }
 0x254   : > { %1540 = vmatprep.mubr.f32.mxu1 %v6923_v17  ;;  %2135 = vmatprep.mubr.f32.mxu0 %v6923_v17 }
 0x256   : > { %v1248_v35 = vpop.trf.xlu0  ;;  %v1863_v22 = vpop.trf.xlu1 }
 0x257   : > { %3499 = vmatmul.mubr.msk.f32.gmra.mxu1 %vm957_vm0, %v1248_v35  ;;  %3539 = vmatmul.mubr.msk.f32.gmra.mxu0 %vm957_vm0, %v1863_v22 }
 0x258   : > { %1546 = vmatprep.mubr.f32.mxu1 %v6923_v17  ;;  %2141 = vmatprep.mubr.f32.mxu0 %v6923_v17 }
 0x25a   : > { %v1249_v12 = vpop.trf.xlu0  ;;  %v1864_v50 = vpop.trf.xlu1 }
 0x25b   : > { %3500 = vmatmul.mubr.msk.f32.gmra.mxu1 %vm957_vm0, %v1249_v12  ;;  %3540 = vmatmul.mubr.msk.f32.gmra.mxu0 %vm957_vm0, %v1864_v50 }
 0x25c   : > { %1552 = vmatprep.mubr.f32.mxu1 %v6923_v17  ;;  %2147 = vmatprep.mubr.f32.mxu0 %v6923_v17 }
 0x25e   : > { %v1250_v5 = vpop.trf.xlu0  ;;  %v1865_v20 = vpop.trf.xlu1 }
 0x25f   : > { %3501 = vmatmul.mubr.msk.f32.gmra.mxu1 %vm957_vm0, %v1250_v5  ;;  %3541 = vmatmul.mubr.msk.f32.gmra.mxu0 %vm957_vm0, %v1865_v20 }
 0x260   : > { %1558 = vmatprep.mubr.f32.mxu1 %v6923_v17  ;;  %2153 = vmatprep.mubr.f32.mxu0 %v6923_v17 }
 0x262   : > { %v1251_v11 = vpop.trf.xlu0  ;;  %v1866_v39 = vpop.trf.xlu1 }
 0x263   : > { %3502 = vmatmul.mubr.msk.f32.gmra.mxu1 %vm957_vm0, %v1251_v11  ;;  %3542 = vmatmul.mubr.msk.f32.gmra.mxu0 %vm957_vm0, %v1866_v39 }
 0x264   : > { %1564 = vmatprep.mubr.f32.mxu1 %v6923_v17  ;;  %2159 = vmatprep.mubr.f32.mxu0 %v6923_v17 }
 0x266   : > { %v1252_v49 = vpop.trf.xlu0  ;;  %v1867_v29 = vpop.trf.xlu1 }
 0x267   : > { %3503 = vmatmul.mubr.msk.f32.gmra.mxu1 %vm957_vm0, %v1252_v49  ;;  %3543 = vmatmul.mubr.msk.f32.gmra.mxu0 %vm957_vm0, %v1867_v29 }
 0x268   : > { %1570 = vmatprep.mubr.f32.mxu1 %v6923_v17  ;;  %2165 = vmatprep.mubr.f32.mxu0 %v6923_v17 }
 0x26a   : > { %v1253_v46 = vpop.trf.xlu0  ;;  %v1868_v27 = vpop.trf.xlu1 }
 0x26b   : > { %3504 = vmatmul.mubr.msk.f32.gmra.mxu1 %vm957_vm0, %v1253_v46  ;;  %3544 = vmatmul.mubr.msk.f32.gmra.mxu0 %vm957_vm0, %v1868_v27 }
 0x26c   : > { %1576 = vmatprep.mubr.f32.mxu1 %v6923_v17  ;;  %2171 = vmatprep.mubr.f32.mxu0 %v6923_v17 }
 0x26e   : > { %v1254_v43 = vpop.trf.xlu0  ;;  %v1869_v38 = vpop.trf.xlu1 }
 0x26f   : > { %3505 = vmatmul.mubr.msk.f32.gmra.mxu1 %vm957_vm0, %v1254_v43  ;;  %3545 = vmatmul.mubr.msk.f32.gmra.mxu0 %vm957_vm0, %v1869_v38 }
 0x270   : > { %1582 = vmatprep.mubr.f32.mxu1 %v6923_v17  ;;  %2177 = vmatprep.mubr.f32.mxu0 %v6923_v17 }
 0x272   : > { %v1255_v15 = vpop.trf.xlu0  ;;  %v1870_v56 = vpop.trf.xlu1 }
 0x273   : > { %3506 = vmatmul.mubr.msk.f32.gmra.mxu1 %vm957_vm0, %v1255_v15  ;;  %3546 = vmatmul.mubr.msk.f32.gmra.mxu0 %vm957_vm0, %v1870_v56 }
 0x274   : > { %1588 = vmatprep.mubr.f32.mxu1 %v6923_v17  ;;  %2183 = vmatprep.mubr.f32.mxu0 %v6923_v17 }
 0x276   : > { %v1256_v10 = vpop.trf.xlu0  ;;  %v1871_v24 = vpop.trf.xlu1 }
 0x277   : > { %3507 = vmatmul.mubr.msk.f32.gmra.mxu1 %vm957_vm0, %v1256_v10  ;;  %3547 = vmatmul.mubr.msk.f32.gmra.mxu0 %vm957_vm0, %v1871_v24 }
 0x278   : > { %1594 = vmatprep.mubr.f32.mxu1 %v6923_v17  ;;  %2189 = vmatprep.mubr.f32.mxu0 %v6923_v17 }
 0x27a   : > { %v1257_v21 = vpop.trf.xlu0  ;;  %v1872_v26 = vpop.trf.xlu1 }
 0x27b   : > { %3508 = vmatmul.mubr.msk.f32.gmra.mxu1 %vm957_vm0, %v1257_v21  ;;  %3548 = vmatmul.mubr.msk.f32.gmra.mxu0 %vm957_vm0, %v1872_v26 }
 0x27c   : > { %1600 = vmatprep.mubr.f32.mxu1 %v6923_v17  ;;  %2195 = vmatprep.mubr.f32.mxu0 %v6923_v17 }
 0x27e   : > { %v1258_v1 = vpop.trf.xlu0  ;;  %v1873_v40 = vpop.trf.xlu1 }
 0x27f   : > { %3509 = vmatmul.mubr.msk.f32.gmra.mxu1 %vm957_vm0, %v1258_v1  ;;  %3549 = vmatmul.mubr.msk.f32.gmra.mxu0 %vm957_vm0, %v1873_v40 }
 0x280   : > { %1606 = vmatprep.mubr.f32.mxu1 %v6923_v17  ;;  %2201 = vmatprep.mubr.f32.mxu0 %v6923_v17 }
 0x282   : > { %v1259_v61 = vpop.trf.xlu0  ;;  %v1874_v33 = vpop.trf.xlu1 }
 0x283   : > { %3510 = vmatmul.mubr.msk.f32.gmra.mxu1 %vm957_vm0, %v1259_v61  ;;  %3550 = vmatmul.mubr.msk.f32.gmra.mxu0 %vm957_vm0, %v1874_v33 }
 0x284   : > { %3000 = vmatprep.mubr.f32.mxu1 %v5020_v45  ;;  %2207 = vmatprep.mubr.f32.mxu0 %v6923_v17 }
 0x286   : > { %v1875_v60 = vpop.trf.xlu1 }
 0x287   : > { %3551 = vmatmul.mubr.msk.f32.gmra.mxu0 %vm957_vm0, %v1875_v60 }
 0x288   : > { %2213 = vmatprep.mubr.f32.mxu0 %v6923_v17 }
 0x28a   : > { %v1876_v51 = vpop.trf.xlu1 }
 0x28b   : > { %3552 = vmatmul.mubr.msk.f32.gmra.mxu0 %vm957_vm0, %v1876_v51 }
 0x28c   : > { %2219 = vmatprep.mubr.f32.mxu0 %v6923_v17 }
 0x28e   : > { %v1877_v19 = vpop.trf.xlu1 }
 0x28f   : > { %3553 = vmatmul.mubr.msk.f32.gmra.mxu0 %vm957_vm0, %v1877_v19 }
 0x290   : > { %2225 = vmatprep.mubr.f32.mxu0 %v6923_v17 }
 0x292   : > { %v1878_v36 = vpop.trf.xlu1 }
 0x293   : > { %3554 = vmatmul.mubr.msk.f32.gmra.mxu0 %vm957_vm0, %v1878_v36 }
 0x294   : > { %3262 = vmatprep.mubr.f32.mxu0 %v5036_v16 }
 0x2c7   : > { %v1422_v45 = vpop.f32.mrf.mxu1 }
 0x2c9   : > { %v1424_v42 = vpop.f32.mrf.mxu1 }
 0x2cb   : > { %v1428_v31 = vpop.f32.mrf.mxu1 }
 0x2cd   : > { %v1430_v18 = vpop.f32.mrf.mxu1 }
 0x2cf   : > { %v1434_v47 = vpop.f32.mrf.mxu1 }
 0x2d1   : > { %v1436_v41 = vpop.f32.mrf.mxu1 }
 0x2d3   : > { %v5178_v3 = vpop.f32.mrf.mxu1 }
 0x2d5   : > { %v5180_v4 = vpop.f32.mrf.mxu1 }
 0x2d7   : > { %v2041_v23 = vpop.f32.mrf.mxu0  ;;  %v5182_v59 = vpop.f32.mrf.mxu1 }
 0x2d8   : > { %v2232_v14 = vmax.f32 %v1422_v45, %v2041_v23 }
 0x2d9   : > { %v2043_v28 = vpop.f32.mrf.mxu0  ;;  %v5184_v44 = vpop.f32.mrf.mxu1 }
 0x2da   : > { %v2296_v8 = vsub.f32 %v1422_v45, %v2232_v14  ;;  %v2488_v34 = vsub.f32 %v2041_v23, %v2232_v14  ;;  %v2233_v16 = vmax.f32 %v1424_v42, %v2043_v28 }
 0x2db   : > { %v2047_v25 = vpop.f32.mrf.mxu0  ;;  %v5186_v30 = vpop.f32.mrf.mxu1 }
 0x2dc   : > { %v2360_v2 = vmul.f32 1.442695, %v2296_v8  ;;  %v2552_v35 = vmul.f32 1.442695, %v2488_v34  ;;  %v2297_v22 = vsub.f32 %v1424_v42, %v2233_v16  ;;  %v2489_v12 = vsub.f32 %v2043_v28, %v2233_v16 }
 0x2dd   : > { %v2234_v50 = vmax.f32 %v1428_v31, %v2047_v25  ;;  %v2049_v5 = vpop.f32.mrf.mxu0  ;;  %v5188_v20 = vpop.f32.mrf.mxu1 }
 0x2de   : > { %3659 = vpow2.f32 %v2360_v2  ;;  %v2362_v11 = vmul.f32 1.442695, %v2297_v22  ;;  %v2554_v39 = vmul.f32 1.442695, %v2489_v12  ;;  %v2235_v49 = vmax.f32 %v1430_v18, %v2049_v5 }
 0x2df   : > { %3661 = vpow2.f32 %v2552_v35  ;;  %v2298_v29 = vsub.f32 %v1428_v31, %v2234_v50  ;;  %v2490_v46 = vsub.f32 %v2047_v25, %v2234_v50  ;;  %v2053_v27 = vpop.f32.mrf.mxu0  ;;  %v5190_v43 = vpop.f32.mrf.mxu1 }
 0x2e0   : > { %3663 = vpow2.f32 %v2362_v11  ;;  %v2299_v38 = vsub.f32 %v1430_v18, %v2235_v49  ;;  %v2491_v15 = vsub.f32 %v2049_v5, %v2235_v49  ;;  %v2236_v56 = vmax.f32 %v1434_v47, %v2053_v27 }
 0x2e1   : > { %3665 = vpow2.f32 %v2554_v39  ;;  %v2364_v10 = vmul.f32 1.442695, %v2298_v29  ;;  %v2556_v24 = vmul.f32 1.442695, %v2490_v46  ;;  %v2055_v21 = vpop.f32.mrf.mxu0  ;;  %v5192_v26 = vpop.f32.mrf.mxu1 }
 0x2e2   : > { %v2366_v1 = vmul.f32 1.442695, %v2299_v38  ;;  %v2558_v40 = vmul.f32 1.442695, %v2491_v15  ;;  %v2300_v61 = vsub.f32 %v1434_v47, %v2236_v56  ;;  %v2492_v33 = vsub.f32 %v2053_v27, %v2236_v56 }
 0x2e3   : > { %3667 = vpow2.f32 %v2364_v10  ;;  %v2237_v60 = vmax.f32 %v1436_v41, %v2055_v21  ;;  %v2059_v51 = vpop.f32.mrf.mxu0  ;;  %v5194_v19 = vpop.f32.mrf.mxu1 }
 0x2e4   : > { %3669 = vpow2.f32 %v2556_v24  ;;  %v2368_v36 = vmul.f32 1.442695, %v2300_v61  ;;  %v2560_v45 = vmul.f32 1.442695, %v2492_v33  ;;  %v2238_v42 = vmax.f32 %v5178_v3, %v2059_v51 }
 0x2e5   : > { %3671 = vpow2.f32 %v2366_v1  ;;  %v2301_v31 = vsub.f32 %v1436_v41, %v2237_v60  ;;  %v2493_v18 = vsub.f32 %v2055_v21, %v2237_v60  ;;  %v2061_v23 = vpop.f32.mrf.mxu0  ;;  %v5197_v14 = vpop.f32.mrf.mxu1 }
 0x2e6   : > { %3673 = vpow2.f32 %v2558_v40  ;;  %v2302_v47 = vsub.f32 %v5178_v3, %v2238_v42  ;;  %v2494_v28 = vsub.f32 %v2059_v51, %v2238_v42  ;;  %v2239_v8 = vmax.f32 %v5180_v4, %v2061_v23 }
 0x2e7   : > { %3675 = vpow2.f32 %v2368_v36  ;;  %v2370_v34 = vmul.f32 1.442695, %v2301_v31  ;;  %v2562_v16 = vmul.f32 1.442695, %v2493_v18  ;;  %v2065_v25 = vpop.f32.mrf.mxu0  ;;  %v5201_v2 = vpop.f32.mrf.mxu1 }
 0x2e8   : > { %3677 = vpow2.f32 %v2560_v45  ;;  %v2372_v35 = vmul.f32 1.442695, %v2302_v47  ;;  %v2564_v22 = vmul.f32 1.442695, %v2494_v28  ;;  %v2303_v41 = vsub.f32 %v5180_v4, %v2239_v8 }
 0x2e9   : > { %3679 = vpow2.f32 %v2370_v34  ;;  %v2495_v12 = vsub.f32 %v2061_v23, %v2239_v8  ;;  %v2240_v50 = vmax.f32 %v5182_v59, %v2065_v25  ;;  %v2067_v5 = vpop.f32.mrf.mxu0  ;;  %v5205_v3 = vpop.f32.mrf.mxu1 }
 0x2ea   : > { %3681 = vpow2.f32 %v2562_v16  ;;  %v2374_v11 = vmul.f32 1.442695, %v2303_v41  ;;  %v2241_v39 = vmax.f32 %v5184_v44, %v2067_v5 }
 0x2eb   : > { %v5208_v49 = vpop.eup %3659  ;;  %3683 = vpow2.f32 %v2372_v35  ;;  %v2566_v29 = vmul.f32 1.442695, %v2495_v12  ;;  %v2304_v46 = vsub.f32 %v5182_v59, %v2240_v50  ;;  %v2496_v27 = vsub.f32 %v2065_v25, %v2240_v50  ;;  %v2071_v38 = vpop.f32.mrf.mxu0 }
 0x2ec   : > { %v5211_v4 = vpop.f32.mrf.mxu1  ;;  %v5213_v15 = vpop.eup %3661  ;;  %3685 = vpow2.f32 %v2564_v22  ;;  %v2305_v56 = vsub.f32 %v5184_v44, %v2241_v39  ;;  %v2497_v10 = vsub.f32 %v2067_v5, %v2241_v39  ;;  %v2242_v24 = vmax.f32 %v5186_v30, %v2071_v38 }
 0x2ed   : > { %6938 = vst [vmem:[#allocation24_spill] sm:$0xff] %v5213_v15  ;;  %v5217_v21 = vpop.eup %3663  ;;  %v2680_v1 = vadd.f32 %v5213_v15, %v5208_v49  ;;  %3687 = vpow2.f32 %v2374_v11  ;;  %v2376_v40 = vmul.f32 1.442695, %v2304_v46  ;;  %v2073_v59 = vpop.f32.mrf.mxu0  ;;  %v2568_v60 = vmul.f32 1.442695, %v2496_v27 }
 0x2ee   : > { %v5221_v61 = vpop.f32.mrf.mxu1  ;;  %v5223_v33 = vpop.eup %3665  ;;  %3689 = vpow2.f32 %v2566_v29  ;;  %v2378_v51 = vmul.f32 1.442695, %v2305_v56  ;;  %v2306_v44 = vsub.f32 %v5186_v30, %v2242_v24  ;;  %v2498_v45 = vsub.f32 %v2071_v38, %v2242_v24 }
 0x2ef   : > { %6939 = vst [vmem:[#allocation25_spill] sm:$0xff] %v5223_v33  ;;  %3691 = vrcp.f32 %v2680_v1  ;;  %v2681_v36 = vadd.f32 %v5223_v33, %v5217_v21  ;;  %v2243_v42 = vmax.f32 %v5188_v20, %v2073_v59  ;;  %v5229_v31 = vpop.f32.mrf.mxu0  ;;  %v2570_v30 = vmul.f32 1.442695, %v2497_v10 }
 0x2f0   : > { %v5231_v18 = vpop.f32.mrf.mxu1  ;;  %v5233_v23 = vpop.eup %3667  ;;  %3693 = vpow2.f32 %v2376_v40  ;;  %v2244_v47 = vmax.f32 %v5190_v43, %v5229_v31  ;;  %v2380_v5 = vmul.f32 1.442695, %v2306_v44 }
 0x2f1   : > { %v5237_v28 = vpop.eup %3669  ;;  %3695 = vrcp.f32 %v2681_v36  ;;  %v2307_v8 = vsub.f32 %v5188_v20, %v2243_v42  ;;  %v2499_v34 = vsub.f32 %v2073_v59, %v2243_v42  ;;  %v5240_v16 = vpop.f32.mrf.mxu0 }
 0x2f2   : > { %6940 = vst [vmem:[#allocation26_spill] sm:$0xff] %v5237_v28  ;;  %v5242_v25 = vpop.f32.mrf.mxu1  ;;  %v5244_v35 = vpop.eup %3671  ;;  %v2682_v22 = vadd.f32 %v5237_v28, %v5233_v23  ;;  %3697 = vpow2.f32 %v2568_v60  ;;  %v2308_v41 = vsub.f32 %v5190_v43, %v2244_v47  ;;  %v2500_v12 = vsub.f32 %v5229_v31, %v2244_v47 }
 0x2f3   : > { %6941 = vst [vmem:[#allocation27_spill] sm:$0xff] %v5244_v35  ;;  %v5250_v50 = vpop.eup %3673  ;;  %3699 = vpow2.f32 %v2378_v51  ;;  %v2245_v20 = vmax.f32 %v5192_v26, %v5240_v16  ;;  %v5254_v11 = vpop.f32.mrf.mxu0  ;;  %v2572_v43 = vmul.f32 1.442695, %v2498_v45  ;;  %v2382_v51 = vmul.f32 1.442695, %v2307_v8 }
 0x2f4   : > { %6942 = vst [vmem:[#allocation28_spill] sm:$0xff] %v5250_v50  ;;  %v5256_v39 = vpop.f32.mrf.mxu1  ;;  %v5258_v29 = vpop.eup %3675  ;;  %3701 = vrcp.f32 %v2682_v22  ;;  %v2683_v46 = vadd.f32 %v5250_v50, %v5244_v35  ;;  %v2246_v10 = vmax.f32 %v5194_v19, %v5254_v11 }
 0x2f5   : > { %6943 = vst [vmem:[#allocation29_spill] sm:$0xff] %v5258_v29  ;;  %v5262_v27 = vpop.eup %3677  ;;  %3703 = vpow2.f32 %v2570_v30  ;;  %v2309_v38 = vsub.f32 %v5192_v26, %v2245_v20  ;;  %v2501_v56 = vsub.f32 %v5240_v16, %v2245_v20  ;;  %v5268_v24 = vpop.f32.mrf.mxu0  ;;  %v2574_v30 = vmul.f32 1.442695, %v2499_v34 }
 0x2f6   : > { %6944 = vst [vmem:[#allocation30_spill] sm:$0xff] %v5262_v27  ;;  %v5270_v1 = vpop.f32.mrf.mxu1  ;;  %v5272_v40 = vpop.eup %3679  ;;  %3705 = vrcp.f32 %v2683_v46  ;;  %v2684_v59 = vadd.f32 %v5262_v27, %v5258_v29  ;;  %v2310_v26 = vsub.f32 %v5194_v19, %v2246_v10  ;;  %v2502_v31 = vsub.f32 %v5254_v11, %v2246_v10 }
 0x2f7   : > { %v5276_v60 = vpop.eup %3681  ;;  %3707 = vpow2.f32 %v2380_v5  ;;  %v5279_v44 = vpop.f32.mrf.mxu0  ;;  %v2247_v5 = vmax.f32 %v5197_v14, %v5268_v24  ;;  %v2384_v11 = vmul.f32 1.442695, %v2308_v41  ;;  %v2386_v52 = vmul.f32 1.442695, %v2309_v38 }
 0x2f8   : > { %6945 = vst [vmem:[#allocation31_spill] sm:$0xff] %v5276_v60  ;;  %v5281_v36 = vpop.f32.mrf.mxu1  ;;  %v5283_v45 = vpop.eup %3683  ;;  %3709 = vrcp.f32 %v2684_v59  ;;  %v2685_v42 = vadd.f32 %v5276_v60, %v5272_v40  ;;  %v2576_v59 = vmul.f32 1.442695, %v2500_v12  ;;  %v2248_v12 = vmax.f32 %v5201_v2, %v5279_v44 }
 0x2f9   : > { %6946 = vst [vmem:[#allocation32_spill] sm:$0xff] %v5283_v45  ;;  %v5288_v47 = vpop.eup %3685  ;;  %3711 = vpow2.f32 %v2572_v43  ;;  %v5290_v16 = vpop.f32.mrf.mxu0  ;;  %v2578_v38 = vmul.f32 1.442695, %v2501_v56 }
 0x2fa   : > { %6947 = vst [vmem:[#allocation33_spill] sm:$0xff] %v5288_v47  ;;  %v5292_v8 = vpop.f32.mrf.mxu1  ;;  %v5294_v19 = vpop.eup %3687  ;;  %3713 = vrcp.f32 %v2685_v42  ;;  %v2686_v22 = vadd.f32 %v5288_v47, %v5283_v45  ;;  %v2249_v56 = vmax.f32 %v5205_v3, %v5290_v16  ;;  %v2312_v7 = vsub.f32 %v5201_v2, %v2248_v12 }
 0x2fb   : > { %v5300_v20 = vpop.eup %3689  ;;  %3715 = vpow2.f32 %v2382_v51  ;;  %v5302_v46 = vpop.f32.mrf.mxu0 }
 0x2fc   : > { %v5304_v34 = vpop.f32.mrf.mxu1  ;;  %v5306_v43 = vpop.eup %3691  ;;  %3717 = vrcp.f32 %v2686_v22  ;;  %v2687_v10 = vadd.f32 %v5300_v20, %v5294_v19  ;;  %v2311_v22 = vsub.f32 %v5197_v14, %v2247_v5  ;;  %v2313_v6 = vsub.f32 %v5205_v3, %v2249_v56 }
 0x2fd   : > { %6948 = vst [vmem:[#allocation34_spill] sm:$0xff] %v5306_v43  ;;  %v5310_v42 = vpop.eup %3693  ;;  %3719 = vpow2.f32 %v2574_v30  ;;  %v5312_v58 = vpop.f32.mrf.mxu0  ;;  %v5318_v41 = vmul.f32 %v5306_v43, %v5208_v49  ;;  %v2388_v30 = vmul.f32 1.442695, %v2310_v26  ;;  %v2505_v48 = vsub.f32 %v5290_v16, %v2249_v56 }
 0x2fe   : > { %6949 = vst [vmem:[#allocation35_spill] sm:$0xff] %v5310_v42  ;;  %v5314_v17 = vpop.f32.mrf.mxu1  ;;  %v5320_v51 = vpop.eup %3695  ;;  %3721 = vrcp.f32 %v2687_v10  ;;  %v2503_v10 = vsub.f32 %v5268_v24, %v2247_v5  ;;  %v2390_v0 = vmul.f32 1.442695, %v2311_v22  ;;  %v2250_v24 = vmax.f32 %v5211_v4, %v5302_v46 }
 0x2ff   : > { %6950 = vst [vmem:[#allocation36_spill] sm:$0xff] %v5318_v41  ;;  %6951 = vst [vmem:[#allocation37_spill] sm:$0xff] %v5320_v51  ;;  %v5325_v57 = vpop.eup %3697  ;;  %3723 = vpow2.f32 %v2384_v11  ;;  %v5327_v37 = vpop.f32.mrf.mxu0  ;;  %v5333_v49 = vmul.f32 %v5320_v51, %v5217_v21  ;;  %v2580_v11 = vmul.f32 1.442695, %v2502_v31  ;;  %v2251_v54 = vmax.f32 %v5221_v61, %v5312_v58 }
 0x300   : > { %6952 = vst [vmem:[#allocation38_spill] sm:$0xff] %v5325_v57  ;;  %v5329_v62 = vpop.f32.mrf.mxu1  ;;  %v5335_v9 = vpop.eup %3699  ;;  %v2688_v14 = vadd.f32 %v5325_v57, %v5310_v42  ;;  %3725 = vpow2.f32 %v2576_v59 }
 0x301   : > { %6953 = vst [vmem:[#allocation39_spill] sm:$0xff] %v5333_v49  ;;  %6954 = vst [vmem:[#allocation40_spill] sm:$0xff] %v5335_v9  ;;  %v5342_v26 = vpop.eup %3701  ;;  %3727 = vpow2.f32 %v2386_v52  ;;  %v5344_v53 = vpop.f32.mrf.mxu0  ;;  %v2504_v52 = vsub.f32 %v5279_v44, %v2248_v12  ;;  %v2315_v16 = vsub.f32 %v5221_v61, %v2251_v54 }
 0x302   : > { %6955 = vst [vmem:[#allocation41_spill] sm:$0xff] %v5342_v26  ;;  %v5346_v55 = vpop.f32.mrf.mxu1  ;;  %v5348_v21 = vpop.eup %3703  ;;  %3729 = vrcp.f32 %v2688_v14  ;;  %v5364_v22 = vmul.f32 %v5342_v26, %v5233_v23  ;;  %v2582_v14 = vmul.f32 1.442695, %v2503_v10  ;;  %v2392_v23 = vmul.f32 1.442695, %v2312_v7 }
 0x303   : > { %6956 = vst [vmem:[#allocation42_spill] sm:$0xff] %v5348_v21  ;;  %v5353_v5 = vpop.eup %3705  ;;  %v2689_v59 = vadd.f32 %v5348_v21, %v5335_v9  ;;  %3731 = vpow2.f32 %v2578_v38  ;;  %v5358_v31 = vpop.f32.mrf.mxu0  ;;  %v2584_v13 = vmul.f32 1.442695, %v2504_v52  ;;  %v2394_v7 = vmul.f32 1.442695, %v2313_v6 }
 0x304   : > { %6957 = vst [vmem:[#allocation43_spill] sm:$0xff] %v5353_v5  ;;  %v5360_v32 = vpop.f32.mrf.mxu1  ;;  %6958 = vst [vmem:[#allocation44_spill] sm:$0xff] %v5364_v22  ;;  %v5366_v2 = vpop.eup %3707  ;;  %3733 = vpow2.f32 %v2388_v30  ;;  %v2314_v30 = vsub.f32 %v5211_v4, %v2250_v24  ;;  %v2252_v4 = vmax.f32 %v5231_v18, %v5327_v37  ;;  %v2586_v6 = vmul.f32 1.442695, %v2505_v48 }
 0x305   : > { %v5371_v38 = vpop.eup %3709  ;;  %3735 = vrcp.f32 %v2689_v59  ;;  %v5373_v44 = vpop.f32.mrf.mxu0  ;;  %v2506_v59 = vsub.f32 %v5302_v46, %v2250_v24  ;;  %v2253_v43 = vmax.f32 %v5242_v25, %v5344_v53  ;;  %v2398_v48 = vmul.f32 1.442695, %v2315_v16 }
 0x306   : > { %6959 = vst [vmem:[#allocation45_spill] sm:$0xff] %v5371_v38  ;;  %v5375_v12 = vpop.f32.mrf.mxu1  ;;  %v5377_v63 = vpop.eup %3711  ;;  %3737 = vpow2.f32 %v2580_v11  ;;  %v2396_v52 = vmul.f32 1.442695, %v2314_v30  ;;  %v2316_v30 = vsub.f32 %v5231_v18, %v2252_v4  ;;  %v2255_v16 = vmax.f32 %v5270_v1, %v5373_v44 }
 0x307   : > { %6960 = vst [vmem:[#allocation46_spill] sm:$0xff] %v5377_v63  ;;  %v5381_v10 = vpop.eup %3713  ;;  %v2690_v3 = vadd.f32 %v5377_v63, %v5366_v2  ;;  %3739 = vpow2.f32 %v2390_v0  ;;  %v5386_v41 = vpop.f32.mrf.mxu0 }
 0x308   : > { %6961 = vst [vmem:[#allocation47_spill] sm:$0xff] %v5381_v10  ;;  %v5388_v49 = vpop.f32.mrf.mxu1  ;;  %v5390_v22 = vpop.eup %3715  ;;  %3741 = vpow2.f32 %v2582_v14  ;;  %v5403_v46 = vmul.f32 %v5381_v10, %v5272_v40  ;;  %v2319_v5 = vsub.f32 %v5270_v1, %v2255_v16 }
 0x309   : > { %6962 = vst [vmem:[#allocation48_spill] sm:$0xff] %v5390_v22  ;;  %v5395_v56 = vpop.eup %3717  ;;  %3743 = vrcp.f32 %v2690_v3  ;;  %v5397_v0 = vpop.f32.mrf.mxu0  ;;  %v2507_v3 = vsub.f32 %v5312_v58, %v2251_v54  ;;  %v2254_v58 = vmax.f32 %v5256_v39, %v5358_v31 }
 0x30a   : > { %6963 = vst [vmem:[#allocation49_spill] sm:$0xff] %v5395_v56  ;;  %v5399_v11 = vpop.f32.mrf.mxu1  ;;  %6964 = vst [vmem:[#allocation50_spill] sm:$0xff] %v5403_v46  ;;  %v5405_v24 = vpop.eup %3719  ;;  %3745 = vpow2.f32 %v2392_v23  ;;  %v2588_v23 = vmul.f32 1.442695, %v2506_v59  ;;  %v2406_v60 = vmul.f32 1.442695, %v2319_v5 }
 0x30b   : > { %6965 = vst [vmem:[#allocation51_spill] sm:$0xff] %v5405_v24  ;;  %v3722_v61 = vpop.eup %3721  ;;  %v2691_v14 = vadd.f32 %v5405_v24, %v5390_v22  ;;  %3747 = vpow2.f32 %v2584_v13  ;;  %v5412_v15 = vpop.f32.mrf.mxu0  ;;  %v2590_v28 = vmul.f32 1.442695, %v2507_v3  ;;  %v2257_v3 = vmax.f32 %v5292_v8, %v5397_v0 }
 0x30c   : > { %v5414_v51 = vpop.f32.mrf.mxu1  ;;  %v5416_v40 = vpop.eup %3723  ;;  %3749 = vpow2.f32 %v2394_v7  ;;  %v5428_v33 = vmul.f32 %v3722_v61, %v5294_v19  ;;  %v5431_v26 = vmul.f32 %v3722_v61, %v5300_v20  ;;  %v2508_v7 = vsub.f32 %v5327_v37, %v2252_v4 }
 0x30d   : > { %6966 = vst [vmem:[#allocation52_spill] sm:$0xff] %v5416_v40  ;;  %v5419_v46 = vpop.eup %3725  ;;  %3751 = vrcp.f32 %v2691_v14  ;;  %v5423_v13 = vpop.f32.mrf.mxu0  ;;  %v2317_v19 = vsub.f32 %v5242_v25, %v2253_v43  ;;  %v2256_v37 = vmax.f32 %v5281_v36, %v5386_v41  ;;  %v2318_v25 = vsub.f32 %v5256_v39, %v2254_v58 }
 0x30e   : > { %6967 = vst [vmem:[#allocation53_spill] sm:$0xff] %v5419_v46  ;;  %v5425_v54 = vpop.f32.mrf.mxu1  ;;  %6968 = vst [vmem:[#allocation54_spill] sm:$0xff] %v5428_v33  ;;  %v5433_v59 = vpop.eup %3727  ;;  %v2692_v18 = vadd.f32 %v5419_v46, %v5416_v40  ;;  %3753 = vpow2.f32 %v2586_v6  ;;  %v2509_v6 = vsub.f32 %v5344_v53, %v2253_v43  ;;  %v2592_v53 = vmul.f32 1.442695, %v2508_v7 }
 0x30f   : > { %6969 = vst [vmem:[#allocation55_spill] sm:$0xff] %v5431_v26  ;;  %v5440_v14 = vpop.eup %3729  ;;  %3755 = vpow2.f32 %v2396_v52  ;;  %v5443_v33 = vpop.f32.mrf.mxu0  ;;  %v2400_v26 = vmul.f32 1.442695, %v2316_v30  ;;  %v2510_v43 = vsub.f32 %v5358_v31, %v2254_v58  ;;  %v2511_v39 = vsub.f32 %v5373_v44, %v2255_v16 }
 0x310   : > { %6970 = vst [vmem:[#allocation56_spill] sm:$0xff] %v5440_v14  ;;  %v5445_v20 = vpop.f32.mrf.mxu1  ;;  %v5447_v61 = vpop.eup %3731  ;;  %3757 = vrcp.f32 %v2692_v18  ;;  %v2258_v27 = vmax.f32 %v5304_v34, %v5412_v15  ;;  %v2320_v31 = vsub.f32 %v5281_v36, %v2256_v37  ;;  %v2512_v1 = vsub.f32 %v5386_v41, %v2256_v37 }
 0x311   : > { %6971 = vst [vmem:[#allocation57_spill] sm:$0xff] %v5447_v61  ;;  %v5452_v4 = vpop.eup %3733  ;;  %v2693_v52 = vadd.f32 %v5447_v61, %v5433_v59  ;;  %3759 = vpow2.f32 %v2588_v23  ;;  %v5459_v50 = vpop.f32.mrf.mxu0  ;;  %v2402_v23 = vmul.f32 1.442695, %v2317_v19  ;;  %v2594_v7 = vmul.f32 1.442695, %v2509_v6 }
 0x312   : > { %v5461_v18 = vpop.f32.mrf.mxu1  ;;  %v5463_v30 = vpop.eup %3735  ;;  %3761 = vpow2.f32 %v2398_v48  ;;  %v2404_v44 = vmul.f32 1.442695, %v2318_v25  ;;  %v2321_v16 = vsub.f32 %v5292_v8, %v2257_v3  ;;  %v2596_v36 = vmul.f32 1.442695, %v2510_v43 }
 0x313   : > { %6972 = vst [vmem:[#allocation58_spill] sm:$0xff] %v5463_v30  ;;  %v5467_v35 = vpop.eup %3737  ;;  %3763 = vrcp.f32 %v2693_v52  ;;  %v5472_v38 = vpop.f32.mrf.mxu0  ;;  %v2322_v6 = vsub.f32 %v5304_v34, %v2258_v27  ;;  %v2408_v47 = vmul.f32 1.442695, %v2320_v31  ;;  %v2600_v43 = vmul.f32 1.442695, %v2512_v1 }
 0x314   : > { %6973 = vst [vmem:[#allocation59_spill] sm:$0xff] %v5467_v35  ;;  %v5474_v29 = vpop.eup %3739  ;;  %v2694_v48 = vadd.f32 %v5467_v35, %v5452_v4  ;;  %3765 = vpow2.f32 %v2590_v28  ;;  %v5485_v52 = vpop.f32.mrf.mxu1  ;;  %v2514_v34 = vsub.f32 %v5412_v15, %v2258_v27  ;;  %v5520_v31 = vmax.f32 %v5329_v62, %v5443_v33 }
 0x315   : > { %6974 = vst [vmem:[#allocation60_spill] sm:$0xff] %v5474_v29  ;;  %v5480_v58 = vpop.eup %3741  ;;  %3767 = vpow2.f32 %v2400_v26  ;;  %v5483_v19 = vpop.f32.mrf.mxu0  ;;  %v2513_v26 = vsub.f32 %v5397_v0, %v2257_v3  ;;  %v5507_v0 = vmul.f32 1.442695, %v2321_v16  ;;  %v5528_v27 = vmul.f32 1.442695, %v2322_v6 }
 0x316   : > { %6975 = vst [vmem:[#allocation61_spill] sm:$0xff] %v5480_v58  ;;  %v5487_v10 = vpop.eup %3743  ;;  %3769 = vrcp.f32 %v2694_v48  ;;  %v2695_v28 = vadd.f32 %v5480_v58, %v5474_v29  ;;  %v2598_v48 = vmul.f32 1.442695, %v2511_v39  ;;  %v2259_v39 = vmax.f32 %v5314_v17, %v5423_v13 }
 0x317   : > { %6976 = vst [vmem:[#allocation62_spill] sm:$0xff] %v5487_v10  ;;  %v5491_v41 = vpop.eup %3745  ;;  %3771 = vpow2.f32 %v2592_v53  ;;  %v5495_v8 = vpop.f32.mrf.mxu0  ;;  %v5499_v37 = vmul.f32 %v5487_v10, %v5366_v2  ;;  %v2602_v15 = vmul.f32 1.442695, %v2513_v26  ;;  %v2604_v26 = vmul.f32 1.442695, %v2514_v34 }
 0x318   : > { %6977 = vst [vmem:[#allocation63_spill] sm:$0xff] %v5491_v41  ;;  %v5501_v25 = vpop.eup %3747  ;;  %3773 = vrcp.f32 %v2695_v28  ;;  %v5512_v2 = vpop.f32.mrf.mxu1  ;;  %v2515_v57 = vsub.f32 %v5423_v13, %v2259_v39  ;;  %v5572_v14 = vmax.f32 %v5346_v55, %v5459_v50  ;;  %v2324_v13 = vsub.f32 %v5329_v62, %v5520_v31 }
 0x319   : > { %6978 = vst [vmem:[#allocation64_spill] sm:$0xff] %v5499_v37  ;;  %6979 = vst [vmem:[#allocation65_spill] sm:$0xff] %v5501_v25  ;;  %v5503_v5 = vpop.eup %3749  ;;  %v2696_v53 = vadd.f32 %v5501_v25, %v5491_v41  ;;  %3775 = vpow2.f32 %v2402_v23  ;;  %v5510_v3 = vpop.f32.mrf.mxu0  ;;  %v5524_v23 = vmax.f32 %v5388_v49, %v5495_v8 }
 0x31a   : > { %6980 = vst [vmem:[#allocation66_spill] sm:$0xff] %v5503_v5  ;;  %v5514_v37 = vpop.eup %3751  ;;  %3777 = vpow2.f32 %v2594_v7  ;;  %v5532_v7 = vmax.f32 %v5399_v11, %v5510_v3  ;;  %v2606_v63 = vmul.f32 1.442695, %v2515_v57 }
 0x31b   : > { %6981 = vst [vmem:[#allocation67_spill] sm:$0xff] %v5514_v37  ;;  %v5526_v1 = vpop.eup %3753  ;;  %3779 = vrcp.f32 %v2696_v53  ;;  %v5534_v16 = vpop.f32.mrf.mxu0  ;;  %v5645_v37 = vmax.f32 %v5360_v32, %v5472_v38 }
 0x31c   : > { %6982 = vst [vmem:[#allocation68_spill] sm:$0xff] %v5526_v1  ;;  %v5536_v28 = vpop.eup %3755  ;;  %v2697_v25 = vadd.f32 %v5526_v1, %v5503_v5  ;;  %3781 = vpow2.f32 %v2404_v44  ;;  %v5552_v45 = vmax.f32 %v5414_v51, %v5534_v16  ;;  %v5556_v1 = vpop.f32.mrf.mxu1 }
 0x31d   : > { %v5544_v6 = vpop.eup %3757  ;;  %3783 = vpow2.f32 %v2596_v36  ;;  %v5554_v44 = vpop.f32.mrf.mxu0  ;;  %v2323_v36 = vsub.f32 %v5314_v17, %v2259_v39  ;;  %v2518_v35 = vsub.f32 %v5472_v38, %v5645_v37 }
 0x31e   : > { %6983 = vst [vmem:[#allocation69_spill] sm:$0xff] %v5544_v6  ;;  %v5558_v41 = vpop.eup %3759  ;;  %3785 = vrcp.f32 %v2697_v25  ;;  %v5563_v53 = vmax.f32 %v5425_v54, %v5554_v44  ;;  %v5594_v30 = vpop.f32.mrf.mxu1 }
 0x31f   : > { %6984 = vst [vmem:[#allocation70_spill] sm:$0xff] %v5558_v41  ;;  %v5565_v5 = vpop.eup %3761  ;;  %v2698_v56 = vadd.f32 %v5558_v41, %v5536_v28  ;;  %3787 = vpow2.f32 %v2406_v60  ;;  %v5574_v25 = vpop.f32.mrf.mxu0  ;;  %v2516_v60 = vsub.f32 %v5443_v33, %v5520_v31  ;;  %v2414_v10 = vmul.f32 1.442695, %v2323_v36 }
 0x320   : > { %6985 = vst [vmem:[#allocation71_spill] sm:$0xff] %v5565_v5  ;;  %v5576_v34 = vpop.eup %3763  ;;  %3789 = vpow2.f32 %v2598_v48  ;;  %v5590_v39 = vmax.f32 %v5445_v20, %v5574_v25  ;;  %v2325_v31 = vsub.f32 %v5346_v55, %v5572_v14 }
 0x321   : > { %6986 = vst [vmem:[#allocation72_spill] sm:$0xff] %v5576_v34  ;;  %v5584_v21 = vpop.eup %3765  ;;  %3791 = vrcp.f32 %v2698_v56  ;;  %v5592_v48 = vpop.f32.mrf.mxu0  ;;  %v5598_v42 = vmul.f32 %v5576_v34, %v5433_v59 }
 0x322   : > { %6987 = vst [vmem:[#allocation73_spill] sm:$0xff] %v5584_v21  ;;  %v5600_v17 = vpop.eup %3767  ;;  %v2699_v56 = vadd.f32 %v5584_v21, %v5565_v5  ;;  %3793 = vpow2.f32 %v2408_v47  ;;  %v5620_v62 = vmax.f32 %v5461_v18, %v5592_v48 }
 0x323   : > { %6988 = vst [vmem:[#allocation74_spill] sm:$0xff] %v5598_v42  ;;  %v5608_v9 = vpop.eup %3769  ;;  %3795 = vpow2.f32 %v2600_v43  ;;  %v5612_v42 = vpop.f32.mrf.mxu0 }
 0x324   : > { %6989 = vst [vmem:[#allocation75_spill] sm:$0xff] %v5608_v9  ;;  %v5614_v24 = vpop.eup %3771  ;;  %3797 = vrcp.f32 %v2699_v56  ;;  %v5624_v33 = vmax.f32 %v5485_v52, %v5612_v42  ;;  %v5635_v56 = vpop.f32.mrf.mxu1  ;;  %v5639_v47 = vmul.f32 %v5608_v9, %v5452_v4  ;;  %v5674_v4 = vmax.f32 %v5375_v12, %v5483_v19 }
 0x325   : > { %6990 = vst [vmem:[#allocation76_spill] sm:$0xff] %v5614_v24  ;;  %v5626_v57 = vpop.eup %3773  ;;  %v2700_v43 = vadd.f32 %v5614_v24, %v5600_v17  ;;  %3799 = vpow2.f32 %v5507_v0  ;;  %v5633_v36 = vpop.f32.mrf.mxu0  ;;  %v2608_v0 = vmul.f32 1.442695, %v2516_v60 }
 0x326   : > { %6991 = vst [vmem:[#allocation77_spill] sm:$0xff] %v5626_v57  ;;  %6992 = vst [vmem:[#allocation78_spill] sm:$0xff] %v5639_v47  ;;  %v5641_v59 = vpop.eup %3775  ;;  %3801 = vpow2.f32 %v2602_v15  ;;  %v5659_v15 = vmax.f32 %v5512_v2, %v5633_v36  ;;  %v2517_v47 = vsub.f32 %v5459_v50, %v5572_v14  ;;  %v5680_v61 = vpop.f32.mrf.mxu1  ;;  %v2519_v29 = vsub.f32 %v5483_v19, %v5674_v4 }
 0x327   : > { %6993 = vst [vmem:[#allocation79_spill] sm:$0xff] %v5641_v59  ;;  %v5651_v22 = vpop.eup %3777  ;;  %3803 = vrcp.f32 %v2700_v43  ;;  %v5661_v46 = vpop.f32.mrf.mxu0  ;;  %v2416_v43 = vmul.f32 1.442695, %v2324_v13 }
 0x328   : > { %6994 = vst [vmem:[#allocation80_spill] sm:$0xff] %v5651_v22  ;;  %v5663_v6 = vpop.eup %3779  ;;  %v2701_v55 = vadd.f32 %v5651_v22, %v5641_v59  ;;  %3805 = vpow2.f32 %v5528_v27  ;;  %v5688_v50 = vmax.f32 %v5556_v1, %v5661_v46  ;;  %v5720_v38 = vpop.f32.mrf.mxu1  ;;  %v2614_v24 = vmul.f32 1.442695, %v2519_v29 }
 0x329   : > { %6995 = vst [vmem:[#allocation81_spill] sm:$0xff] %v5663_v6  ;;  %v5668_v40 = vpop.eup %3781  ;;  %3807 = vpow2.f32 %v2604_v26  ;;  %v5678_v34 = vpop.f32.mrf.mxu0  ;;  %v2418_v6 = vmul.f32 1.442695, %v2325_v31 }
 0x32a   : > { %v5682_v27 = vpop.eup %3783  ;;  %3809 = vrcp.f32 %v2701_v55  ;;  %v5692_v14 = vmax.f32 %v5594_v30, %v5678_v34  ;;  %v2326_v55 = vsub.f32 %v5360_v32, %v5645_v37  ;;  %v2327_v32 = vsub.f32 %v5375_v12, %v5674_v4 }
 0x32b   : > { %6996 = vst [vmem:[#allocation82_spill] sm:$0xff] %v5682_v27  ;;  %v5694_v60 = vpop.eup %3785  ;;  %v2702_v13 = vadd.f32 %v5682_v27, %v5668_v40  ;;  %3811 = vpow2.f32 %v2414_v10  ;;  %v5700_v9 = vpop.f32.mrf.mxu0 }
 0x32c   : > { %6997 = vst [vmem:[#allocation83_spill] sm:$0xff] %v5694_v60  ;;  %v5702_v26 = vpop.eup %3787  ;;  %3813 = vpow2.f32 %v2606_v63  ;;  %v5718_v63 = vmax.f32 %v5635_v56, %v5700_v9  ;;  %v2420_v10 = vmul.f32 1.442695, %v2326_v55  ;;  %v5754_v55 = vpop.f32.mrf.mxu1  ;;  %v2422_v41 = vmul.f32 1.442695, %v2327_v32 }
 0x32d   : > { %6998 = vst [vmem:[#allocation84_spill] sm:$0xff] %v5702_v26  ;;  %v5710_v57 = vpop.eup %3789  ;;  %3815 = vrcp.f32 %v2702_v13  ;;  %v5722_v37 = vpop.f32.mrf.mxu0  ;;  %v2610_v13 = vmul.f32 1.442695, %v2517_v47 }
 0x32e   : > { %6999 = vst [vmem:[#allocation85_spill] sm:$0xff] %v5710_v57  ;;  %v5724_v31 = vpop.eup %3791  ;;  %v2703_v60 = vadd.f32 %v5710_v57, %v5702_v26  ;;  %3817 = vpow2.f32 %v2416_v43  ;;  %v5744_v12 = vmax.f32 %v5680_v61, %v5722_v37  ;;  %v2612_v43 = vmul.f32 1.442695, %v2518_v35  ;;  %v5782_v35 = vpop.f32.mrf.mxu1 }
 0x32f   : > { %v5730_v58 = vpop.eup %3793  ;;  %3819 = vpow2.f32 %v2608_v0  ;;  %v5736_v21 = vpop.f32.mrf.mxu0  ;;  %v7004_v57 = vsub.f32 %v5388_v49, %v5524_v23 }
 0x330   : > { %v5738_v5 = vpop.eup %3795  ;;  %3821 = vrcp.f32 %v2703_v60  ;;  %v5748_v0 = vmax.f32 %v5720_v38, %v5736_v21 }
 0x331   : > { %7000 = vst [vmem:[#allocation86_spill] sm:$0xff] %v5738_v5  ;;  %v5750_v19 = vpop.eup %3797  ;;  %v2704_v4 = vadd.f32 %v5738_v5, %v5730_v58  ;;  %3823 = vpow2.f32 %v2418_v6  ;;  %v5756_v60 = vpop.f32.mrf.mxu0  ;;  %v2424_v26 = vmul.f32 1.442695, %v7004_v57 }
 0x332   : > { %7001 = vst [vmem:[#allocation87_spill] sm:$0xff] %v5750_v19  ;;  %v5758_v47 = vpop.eup %3799  ;;  %3825 = vpow2.f32 %v2610_v13  ;;  %v5772_v59 = vmax.f32 %v5754_v55, %v5756_v60 }
 0x333   : > { %7002 = vst [vmem:[#allocation88_spill] sm:$0xff] %v5758_v47  ;;  %v5764_v19 = vpop.eup %3801  ;;  %3827 = vrcp.f32 %v2704_v4  ;;  %v5774_v32 = vpop.f32.mrf.mxu0 }
 0x334   : > { %7003 = vst [vmem:[#allocation89_spill] sm:$0xff] %v5764_v19  ;;  %v5776_v13 = vpop.eup %3803  ;;  %v2705_v22 = vadd.f32 %v5764_v19, %v5758_v47  ;;  %3829 = vpow2.f32 %v2420_v10  ;;  %v5795_v29 = vmax.f32 %v5782_v35, %v5774_v32 }
 0x335   : > { %v5780_v4 = vpop.eup %3805  ;;  %3831 = vpow2.f32 %v2612_v43 }
 0x336   : > { %v5786_v27 = vpop.eup %3807  ;;  %3833 = vrcp.f32 %v2705_v22  ;;  %v7006_v22 = vsub.f32 %v5495_v8, %v5524_v23 }
 0x337   : > { %v5797_v10 = vpop.eup %3809  ;;  %v2706_v43 = vadd.f32 %v5786_v27, %v5780_v4  ;;  %3835 = vpow2.f32 %v2422_v41 }
 0x338   : > { %7005 = vst [vmem:[#allocation90_spill] sm:$0xff] %v5797_v10  ;;  %v2616_v6 = vmul.f32 1.442695, %v7006_v22  ;;  %v5804_v19 = vpop.eup %3811  ;;  %3837 = vpow2.f32 %v2614_v24  ;;  %v7007_v10 = vsub.f32 %v5399_v11, %v5532_v7  ;;  %v7008_v24 = vsub.f32 %v5510_v3, %v5532_v7 }
 0x339   : > { %v5810_v5 = vpop.eup %3813  ;;  %3839 = vrcp.f32 %v2706_v43  ;;  %v7009_v11 = vsub.f32 %v5414_v51, %v5552_v45  ;;  %v7011_v3 = vsub.f32 %v5534_v16, %v5552_v45  ;;  %v7012_v51 = vsub.f32 %v5425_v54, %v5563_v53 }
 0x33a   : > { %v2426_v41 = vmul.f32 1.442695, %v7007_v10  ;;  %v5815_v47 = vpop.eup %3815  ;;  %v2707_v8 = vadd.f32 %v5810_v5, %v5804_v19  ;;  %3841 = vpow2.f32 %v2424_v26  ;;  %v2618_v23 = vmul.f32 1.442695, %v7008_v24 }
 0x33b   : > { %v5822_v22 = vpop.eup %3817  ;;  %3843 = vpow2.f32 %v2616_v6  ;;  %v2428_v10 = vmul.f32 1.442695, %v7009_v11  ;;  %v2620_v7 = vmul.f32 1.442695, %v7011_v3  ;;  %v7013_v45 = vsub.f32 %v5554_v44, %v5563_v53 }
 0x33c   : > { %v5824_v57 = vpop.eup %3819  ;;  %3845 = vrcp.f32 %v2707_v8  ;;  %v2430_v8 = vmul.f32 1.442695, %v7012_v51  ;;  %v7014_v54 = vsub.f32 %v5445_v20, %v5590_v39  ;;  %v7015_v53 = vsub.f32 %v5574_v25, %v5590_v39 }
 0x33d   : > { %v5829_v43 = vpop.eup %3821  ;;  %v2708_v49 = vadd.f32 %v5824_v57, %v5822_v22  ;;  %3847 = vpow2.f32 %v2426_v41  ;;  %v2622_v16 = vmul.f32 1.442695, %v7013_v45  ;;  %v7016_v20 = vsub.f32 %v5461_v18, %v5620_v62 }
 0x33e   : > { %7010 = vst [vmem:[#allocation91_spill] sm:$0xff] %v5829_v43  ;;  %v5836_v26 = vpop.eup %3823  ;;  %3849 = vpow2.f32 %v2618_v23  ;;  %v2624_v44 = vmul.f32 1.442695, %v7015_v53  ;;  %v7017_v25 = vsub.f32 %v5592_v48, %v5620_v62  ;;  %v7020_v18 = vsub.f32 %v5485_v52, %v5624_v33  ;;  %v5885_v53 = vpop.f32.mrf.mxu0 }
 0x33f   : > { %v5838_v6 = vpop.eup %3825  ;;  %3851 = vrcp.f32 %v2708_v49  ;;  %v2432_v49 = vmul.f32 1.442695, %v7014_v54  ;;  %v7021_v48 = vsub.f32 %v5612_v42, %v5624_v33  ;;  %v7023_v52 = vsub.f32 %v5512_v2, %v5659_v15 }
 0x340   : > { %v5843_v24 = vpop.eup %3827  ;;  %v2709_v11 = vadd.f32 %v5838_v6, %v5836_v26  ;;  %3853 = vpow2.f32 %v2428_v10  ;;  %v2626_v39 = vmul.f32 1.442695, %v7017_v25  ;;  %v7024_v42 = vsub.f32 %v5633_v36, %v5659_v15 }
 0x341   : > { %v5850_v41 = vpop.eup %3829  ;;  %3855 = vpow2.f32 %v2620_v7  ;;  %v2628_v62 = vmul.f32 1.442695, %v7021_v48  ;;  %v7026_v2 = vsub.f32 %v5556_v1, %v5688_v50  ;;  %v7028_v36 = vsub.f32 %v5661_v46, %v5688_v50 }
 0x342   : > { %v5852_v23 = vpop.eup %3831  ;;  %3857 = vrcp.f32 %v2709_v11  ;;  %v2434_v11 = vmul.f32 1.442695, %v7016_v20  ;;  %v2630_v33 = vmul.f32 1.442695, %v7024_v42  ;;  %v7030_v1 = vsub.f32 %v5594_v30, %v5692_v14 }
 0x343   : > { %v5857_v3 = vpop.eup %3833  ;;  %v2710_v51 = vadd.f32 %v5852_v23, %v5850_v41  ;;  %3859 = vpow2.f32 %v2430_v8  ;;  %v2632_v15 = vmul.f32 1.442695, %v7028_v36  ;;  %v7031_v46 = vsub.f32 %v5678_v34, %v5692_v14 }
 0x344   : > { %v5864_v10 = vpop.eup %3835  ;;  %3861 = vpow2.f32 %v2622_v16  ;;  %v7033_v30 = vsub.f32 %v5635_v56, %v5718_v63  ;;  %v5956_v34 = vmul.f32 %v5724_v31, %v5536_v28 }
 0x345   : > { %v5866_v7 = vpop.eup %3837  ;;  %3863 = vrcp.f32 %v2710_v51  ;;  %v2436_v51 = vmul.f32 1.442695, %v7020_v18  ;;  %v2438_v18 = vmul.f32 1.442695, %v7023_v52  ;;  %v2440_v52 = vmul.f32 1.442695, %v7026_v2 }
 0x346   : > { %v5871_v45 = vpop.eup %3839  ;;  %v2711_v54 = vadd.f32 %v5866_v7, %v5864_v10  ;;  %3865 = vpow2.f32 %v2432_v49  ;;  %v2442_v2 = vmul.f32 1.442695, %v7030_v1  ;;  %v2634_v50 = vmul.f32 1.442695, %v7031_v46 }
 0x347   : > { %v5878_v8 = vpop.eup %3841  ;;  %3867 = vpow2.f32 %v2624_v44  ;;  %v7034_v1 = vsub.f32 %v5700_v9, %v5718_v63  ;;  %v7037_v63 = vsub.f32 %v5722_v37, %v5744_v12 }
 0x348   : > { %7018 = vst [vmem:[#allocation92_spill] sm:$0xff] %v5878_v8  ;;  %v5880_v16 = vpop.eup %3843  ;;  %3869 = vrcp.f32 %v2711_v54  ;;  %v5896_v54 = vpop.f32.mrf.mxu1 }
 0x349   : > { %7019 = vst [vmem:[#allocation93_spill] sm:$0xff] %v5880_v16  ;;  %v5887_v20 = vpop.eup %3845  ;;  %v2712_v49 = vadd.f32 %v5880_v16, %v5878_v8  ;;  %3871 = vpow2.f32 %v2434_v11  ;;  %v2279_v46 = vmax.f32 %v5896_v54, %v5885_v53  ;;  %v2638_v28 = vmul.f32 1.442695, %v7037_v63 }
 0x34a   : > { %v5894_v44 = vpop.eup %3847  ;;  %3873 = vpow2.f32 %v2626_v39  ;;  %v5910_v39 = vpop.f32.mrf.mxu0 }
 0x34b   : > { %v5898_v25 = vpop.eup %3849  ;;  %3875 = vrcp.f32 %v2712_v49  ;;  %7025 = vst [vmem:[#allocation95_spill] sm:$0xff] %v5910_v39  ;;  %v5919_v16 = vpop.f32.mrf.mxu1 }
 0x34c   : > { %7022 = vst [vmem:[#allocation94_spill] sm:$0xff] %v5898_v25  ;;  %v5903_v43 = vpop.eup %3851  ;;  %v2713_v11 = vadd.f32 %v5898_v25, %v5894_v44  ;;  %3877 = vpow2.f32 %v2436_v51  ;;  %7027 = vst [vmem:[#allocation96_spill] sm:$0xff] %v5919_v16 }
 0x34d   : > { %v5912_v48 = vpop.eup %3853  ;;  %3879 = vpow2.f32 %v2628_v62  ;;  %v5928_v62 = vpop.f32.mrf.mxu0 }
 0x34e   : > { %v5914_v49 = vpop.eup %3855  ;;  %3881 = vrcp.f32 %v2713_v11  ;;  %7029 = vst [vmem:[#allocation97_spill] sm:$0xff] %v5928_v62  ;;  %v5940_v36 = vpop.f32.mrf.mxu1 }
 0x34f   : > { %v3858_v8 = vpop.eup %3857  ;;  %v2714_v51 = vadd.f32 %v5914_v49, %v5912_v48  ;;  %3883 = vpow2.f32 %v2438_v18  ;;  %7032 = vst [vmem:[#allocation98_spill] sm:$0xff] %v5940_v36  ;;  %v5952_v62 = vpop.f32.mrf.mxu0 }
 0x350   : > { %v5926_v42 = vpop.eup %3859  ;;  %3885 = vpow2.f32 %v2630_v33  ;;  %7035 = vst [vmem:[#allocation99_spill] sm:$0xff] %v5952_v62 }
 0x351   : > { %v5930_v11 = vpop.eup %3861  ;;  %3887 = vrcp.f32 %v2714_v51  ;;  %v2444_v51 = vmul.f32 1.442695, %v7033_v30  ;;  %v5970_v30 = vpop.f32.mrf.mxu1 }
 0x352   : > { %v3864_v16 = vpop.eup %3863  ;;  %v2715_v18 = vadd.f32 %v5930_v11, %v5926_v42  ;;  %3889 = vpow2.f32 %v2440_v52  ;;  %v2636_v52 = vmul.f32 1.442695, %v7034_v1  ;;  %7038 = vst [vmem:[#allocation100_spill] sm:$0xff] %v5970_v30 }
 0x353   : > { %v5942_v33 = vpop.eup %3865  ;;  %3891 = vpow2.f32 %v2632_v15  ;;  %v2902_v36 = vmul.f32 %v3864_v16, %v5850_v41  ;;  %v7040_v41 = vsub.f32 %v5736_v21, %v5748_v0  ;;  %v6008_v21 = vmul.f32 %v5776_v13, %v5600_v17 }
 0x354   : > { %v5944_v39 = vpop.eup %3867  ;;  %3893 = vrcp.f32 %v2715_v18  ;;  %v7036_v18 = vsub.f32 %v5680_v61, %v5744_v12  ;;  %v7039_v61 = vsub.f32 %v5720_v38, %v5748_v0  ;;  %v5985_v12 = vpop.f32.mrf.mxu0 }
 0x355   : > { %v3870_v14 = vpop.eup %3869  ;;  %v2716_v15 = vadd.f32 %v5944_v39, %v5942_v33  ;;  %3895 = vpow2.f32 %v2442_v2 }
 0x356   : > { %v2446_v56 = vmul.f32 1.442695, %v7036_v18  ;;  %v5965_v9 = vpop.eup %3871  ;;  %3897 = vpow2.f32 %v2634_v50  ;;  %v2903_v1 = vmul.f32 %v3870_v14, %v5864_v10  ;;  %v3165_v2 = vmul.f32 %v3870_v14, %v5866_v7 }
 0x357   : > { %v5974_v62 = vpop.eup %3873  ;;  %3899 = vrcp.f32 %v2716_v15  ;;  %v2448_v18 = vmul.f32 1.442695, %v7039_v61  ;;  %v3164_v50 = vmul.f32 %v3864_v16, %v5852_v23  ;;  %v2901_v10 = vmul.f32 %v3858_v8, %v5836_v26  ;;  %v6004_v15 = vpop.f32.mrf.mxu1  ;;  %v7046_v61 = vld [vmem:[#allocation88_spill] sm:$0xff] }
 0x358   : > { %v5981_v25 = vpop.eup %3875  ;;  %v2717_v37 = vadd.f32 %v5974_v62, %v5965_v9  ;;  %3901 = vpow2.f32 %v2444_v51  ;;  %2936 = vmatprep.subr.mxu1 %v2903_v1  ;;  %3198 = vmatprep.subr.mxu0 %v3165_v2  ;;  %v3163_v7 = vmul.f32 %v3858_v8, %v5838_v6  ;;  %v2640_v23 = vmul.f32 1.442695, %v7040_v41  ;;  %v7050_v41 = vld [vmem:[#allocation84_spill] sm:$0xff] }
 0x359   : > { %v5989_v38 = vpop.eup %3877  ;;  %3903 = vpow2.f32 %v2636_v52  ;;  %v2343_v16 = vsub.f32 %v5896_v54, %v2279_v46  ;;  %v2535_v14 = vsub.f32 %v5885_v53, %v2279_v46  ;;  %2937 = vmatpush1.xpose.msra.mxu1 %v2902_v36  ;;  %3199 = vmatpush1.xpose.msra.mxu0 %v3164_v50  ;;  %v7041_v26 = vsub.f32 %v5754_v55, %v5772_v59  ;;  %v6023_v36 = vpop.f32.mrf.mxu0 }
 0x35a   : > { %v5996_v51 = vpop.eup %3879  ;;  %3905 = vrcp.f32 %v2717_v37  ;;  %v7042_v8 = vsub.f32 %v5756_v60, %v5772_v59  ;;  %2938 = vmatprep.subr.mxu1 %v2901_v10  ;;  %3200 = vmatprep.subr.mxu0 %v3163_v7  ;;  %v2900_v55 = vmul.f32 %v5903_v43, %v5822_v22  ;;  %v3162_v59 = vmul.f32 %v5903_v43, %v5824_v57  ;;  %v7048_v37 = vld [vmem:[#allocation89_spill] sm:$0xff]  ;;  %v7049_v10 = vld [vmem:[#allocation86_spill] sm:$0xff] }
 0x35b   : > { %v2450_v6 = vmul.f32 1.442695, %v7041_v26  ;;  %v6010_v0 = vpop.eup %3881  ;;  %v2718_v53 = vadd.f32 %v5996_v51, %v5989_v38  ;;  %3907 = vpow2.f32 %v2446_v56  ;;  %v7043_v54 = vsub.f32 %v5782_v35, %v5795_v29  ;;  %v7053_v26 = vld [vmem:[#allocation82_spill] sm:$0xff] }
 0x35c   : > { %v2642_v52 = vmul.f32 1.442695, %v7042_v8  ;;  %v6018_v60 = vpop.eup %3883  ;;  %3909 = vpow2.f32 %v2638_v28  ;;  %v2899_v46 = vmul.f32 %v5887_v20, %v5804_v19  ;;  %v3161_v56 = vmul.f32 %v5887_v20, %v5810_v5  ;;  %v6042_v5 = vpop.f32.mrf.mxu1 }
 0x35d   : > { %v2452_v17 = vmul.f32 1.442695, %v7043_v54  ;;  %v6029_v63 = vpop.eup %3885  ;;  %3911 = vrcp.f32 %v2718_v53  ;;  %v7044_v57 = vsub.f32 %v5774_v32, %v5795_v29  ;;  %v6034_v43 = vmul.f32 1.442695, %v2343_v16  ;;  %2939 = vmatpush1.xpose.msra.mxu1 %v2900_v55  ;;  %3201 = vmatpush1.xpose.msra.mxu0 %v3162_v59  ;;  %7045 = vst [vmem:[#allocation101_spill] sm:$0xff] %v6042_v5  ;;  %v7055_v53 = vld [vmem:[#allocation79_spill] sm:$0xff] }
 0x35e   : > { %v6036_v28 = vmul.f32 1.442695, %v2535_v14  ;;  %v6038_v35 = vpop.eup %3887  ;;  %v2719_v19 = vadd.f32 %v6029_v63, %v6018_v60  ;;  %3913 = vpow2.f32 %v2448_v18  ;;  %2940 = vmatprep.subr.mxu1 %v2899_v46  ;;  %3202 = vmatprep.subr.mxu0 %v3161_v56  ;;  %v2896_v32 = vmul.f32 %v5843_v24, %v5730_v58  ;;  %v6060_v58 = vpop.f32.mrf.mxu0  ;;  %v7056_v55 = vld [vmem:[#allocation90_spill] sm:$0xff]  ;;  %v7057_v54 = vld [vmem:[#allocation80_spill] sm:$0xff] }
 0x35f   : > { %v2644_v22 = vmul.f32 1.442695, %v7044_v57  ;;  %v6048_v29 = vmul.f32 %v5815_v47, %v5668_v40  ;;  %v6050_v20 = vpop.eup %3889  ;;  %3915 = vpow2.f32 %v2640_v23  ;;  %v2898_v1 = vmul.f32 %v5871_v45, %v5780_v4  ;;  %7047 = vst [vmem:[#allocation88_spill] sm:$0xff] %v6060_v58  ;;  %v7051_v23 = vld [vmem:[#allocation91_spill] sm:$0xff]  ;;  %v7058_v46 = vld [vmem:[#allocation76_spill] sm:$0xff] }
 0x360   : > { %v3160_v2 = vmul.f32 %v5871_v45, %v5786_v27  ;;  %v2897_v18 = vmul.f32 %v5857_v3, %v7046_v61  ;;  %v6058_v50 = vpop.eup %3891  ;;  %3917 = vrcp.f32 %v2719_v19  ;;  %v3159_v40 = vmul.f32 %v5857_v3, %v7048_v37  ;;  %v7052_v45 = vld [vmem:[#allocation85_spill] sm:$0xff]  ;;  %v7060_v19 = vld [vmem:[#allocation87_spill] sm:$0xff]  ;;  %v7062_v61 = vld [vmem:[#allocation70_spill] sm:$0xff] }
 0x361   : > { %v3158_v7 = vmul.f32 %v5843_v24, %v7049_v10  ;;  %v2895_v4 = vmul.f32 %v7051_v23, %v7050_v41  ;;  %v6068_v16 = vpop.eup %3893  ;;  %v2720_v27 = vadd.f32 %v6058_v50, %v6050_v20  ;;  %3919 = vpow2.f32 %v2450_v6  ;;  %2941 = vmatpush1.xpose.msra.mxu1 %v2898_v1  ;;  %v6078_v24 = vpop.f32.mrf.mxu1  ;;  %v7061_v1 = vld [vmem:[#allocation73_spill] sm:$0xff]  ;;  %v7064_v10 = vld [vmem:[#allocation60_spill] sm:$0xff] }
 0x362   : > { %3203 = vmatpush1.xpose.msra.mxu0 %v3160_v2  ;;  %v3157_v14 = vmul.f32 %v7051_v23, %v7052_v45  ;;  %v3156_v3 = vmul.f32 %v5815_v47, %v7053_v26  ;;  %v6076_v8 = vpop.eup %3895  ;;  %3921 = vpow2.f32 %v2642_v52  ;;  %7054 = vst [vmem:[#allocation89_spill] sm:$0xff] %v6078_v24  ;;  %2942 = vmatprep.subr.mxu1 %v2897_v18  ;;  %v7059_v47 = vld [vmem:[#allocation71_spill] sm:$0xff]  ;;  %v7065_v41 = vld [vmem:[#allocation77_spill] sm:$0xff]  ;;  %v7115_v5 = vld [vmem:[#allocation24_spill] sm:$0xff] }
 0x363   : > { %3204 = vmatprep.subr.mxu0 %v3159_v40  ;;  %v2893_v59 = vmul.f32 %v7056_v55, %v7055_v53  ;;  %v3155_v6 = vmul.f32 %v7056_v55, %v7057_v54  ;;  %v6086_v56 = vmul.f32 %v5776_v13, %v7058_v46  ;;  %v6088_v57 = vpop.eup %3897  ;;  %3923 = vrcp.f32 %v2720_v27  ;;  %v6106_v40 = vpop.f32.mrf.mxu0  ;;  %v7066_v27 = vld [vmem:[#allocation61_spill] sm:$0xff]  ;;  %v7068_v53 = vld [vmem:[#allocation75_spill] sm:$0xff]  ;;  %v7070_v54 = vld [vmem:[#allocation72_spill] sm:$0xff] }
 0x364   : > { %v6092_v52 = vmul.f32 %v7060_v19, %v7059_v47  ;;  %v6096_v2 = vmul.f32 %v7060_v19, %v7061_v1  ;;  %v6100_v18 = vmul.f32 %v5724_v31, %v7062_v61  ;;  %v6102_v37 = vpop.eup %3899  ;;  %v2721_v13 = vadd.f32 %v6088_v57, %v6076_v8  ;;  %7063 = vst [vmem:[#allocation86_spill] sm:$0xff] %v6106_v40  ;;  %v7067_v31 = vld [vmem:[#allocation59_spill] sm:$0xff]  ;;  %v7071_v47 = vld [vmem:[#allocation52_spill] sm:$0xff]  ;;  %v7072_v19 = vld [vmem:[#allocation69_spill] sm:$0xff] }
 0x365   : > { %3925 = vpow2.f32 %v2452_v17  ;;  %v6110_v23 = vmul.f32 %v7065_v41, %v7064_v10  ;;  %v6114_v45 = vmul.f32 %v7065_v41, %v7066_v27  ;;  %v6116_v26 = vpop.eup %3901  ;;  %2943 = vmatpush1.xpose.msra.mxu1 %v2896_v32  ;;  %v6120_v55 = vmul.f32 %v7068_v53, %v7067_v31  ;;  %v7069_v17 = vld [vmem:[#allocation57_spill] sm:$0xff]  ;;  %v6132_v10 = vpop.f32.mrf.mxu1  ;;  %v7076_v41 = vld [vmem:[#allocation67_spill] sm:$0xff] }
 0x366   : > { %3927 = vpow2.f32 %v2644_v22  ;;  %3205 = vmatpush1.xpose.msra.mxu0 %v3158_v7  ;;  %v6124_v46 = vmul.f32 %v7070_v54, %v7069_v17  ;;  %v6128_v1 = vmul.f32 %v7072_v19, %v7071_v47  ;;  %v6130_v61 = vpop.eup %3903  ;;  %7073 = vst [vmem:[#allocation84_spill] sm:$0xff] %v6132_v10  ;;  %2944 = vmatprep.subr.mxu1 %v2895_v4  ;;  %v7074_v22 = vld [vmem:[#allocation53_spill] sm:$0xff]  ;;  %v7075_v7 = vld [vmem:[#allocation48_spill] sm:$0xff]  ;;  %v7077_v31 = vld [vmem:[#allocation51_spill] sm:$0xff] }
 0x367   : > { %3929 = vrcp.f32 %v2721_v13  ;;  %3206 = vmatprep.subr.mxu0 %v3157_v14  ;;  %v6136_v32 = vmul.f32 %v7072_v19, %v7074_v22  ;;  %v6140_v27 = vmul.f32 %v7076_v41, %v7075_v7  ;;  %v6144_v53 = vmul.f32 %v7076_v41, %v7077_v31  ;;  %v3906_v17 = vpop.eup %3905  ;;  %v7078_v4 = vld [vmem:[#allocation46_spill] sm:$0xff]  ;;  %v7080_v47 = vld [vmem:[#allocation40_spill] sm:$0xff]  ;;  %v6160_v41 = vpop.f32.mrf.mxu0  ;;  %v7086_v10 = vld [vmem:[#allocation35_spill] sm:$0xff] }
 0x368   : > { %v2722_v13 = vadd.f32 %v6130_v61, %v6116_v26  ;;  %3931 = vpow2.f32 %v6034_v43  ;;  %v7079_v14 = vld [vmem:[#allocation62_spill] sm:$0xff]  ;;  %v6157_v7 = vpop.eup %3907  ;;  %7083 = vst [vmem:[#allocation85_spill] sm:$0xff] %v6160_v41  ;;  %v7087_v43 = vld [vmem:[#allocation56_spill] sm:$0xff]  ;;  %v7092_v24 = vld [vmem:[#allocation49_spill] sm:$0xff] }
 0x369   : > { %v6151_v54 = vmul.f32 %v7079_v14, %v7078_v4  ;;  %v7081_v19 = vld [vmem:[#allocation58_spill] sm:$0xff]  ;;  %3933 = vpow2.f32 %v6036_v28  ;;  %v6168_v40 = vmul.f32 %v7087_v43, %v7086_v10  ;;  %2945 = vmatpush1.xpose.msra.mxu1 %v6048_v29  ;;  %v7091_v28 = vld [vmem:[#allocation32_spill] sm:$0xff]  ;;  %v7096_v10 = vld [vmem:[#allocation31_spill] sm:$0xff] }
 0x36a   : > { %v6155_v22 = vmul.f32 %v7081_v19, %v7080_v47  ;;  %v7084_v31 = vld [vmem:[#allocation42_spill] sm:$0xff]  ;;  %v6174_v47 = vpop.eup %3909  ;;  %3935 = vrcp.f32 %v2722_v13  ;;  %3207 = vmatpush1.xpose.msra.mxu0 %v3156_v3  ;;  %v6179_v58 = vmul.f32 %v7092_v24, %v7091_v28  ;;  %v7097_v41 = vld [vmem:[#allocation47_spill] sm:$0xff]  ;;  %v6191_v13 = vpop.f32.mrf.mxu1  ;;  %2946 = vmatprep.subr.mxu1 %v2893_v59  ;;  %v7100_v29 = vld [vmem:[#allocation29_spill] sm:$0xff] }
 0x36b   : > { %v6164_v30 = vmul.f32 %v7081_v19, %v7084_v31  ;;  %7088 = vst [vmem:[#allocation79_spill] sm:$0xff] %v6168_v40  ;;  %v7089_v4 = vld [vmem:[#allocation38_spill] sm:$0xff]  ;;  %v7094_v19 = vld [vmem:[#allocation33_spill] sm:$0xff]  ;;  %v6187_v40 = vmul.f32 %v7097_v41, %v7096_v10  ;;  %7099 = vst [vmem:[#allocation87_spill] sm:$0xff] %v6191_v13  ;;  %3208 = vmatprep.subr.mxu0 %v3155_v6 }
 0x36c   : > { %7082 = vst [vmem:[#allocation91_spill] sm:$0xff] %v6155_v22  ;;  %v6172_v14 = vmul.f32 %v7087_v43, %v7089_v4  ;;  %7093 = vst [vmem:[#allocation80_spill] sm:$0xff] %v6179_v58  ;;  %v6183_v31 = vmul.f32 %v7092_v24, %v7094_v19  ;;  %v3912_v43 = vpop.eup %3911  ;;  %v2723_v4 = vadd.f32 %v6174_v47, %v6157_v7  ;;  %v7101_v3 = vld [vmem:[#allocation45_spill] sm:$0xff]  ;;  %v7103_v58 = vld [vmem:[#allocation30_spill] sm:$0xff] }
 0x36d   : > { %7085 = vst [vmem:[#allocation82_spill] sm:$0xff] %v6164_v30  ;;  %7098 = vst [vmem:[#allocation71_spill] sm:$0xff] %v6187_v40  ;;  %v6195_v28 = vmul.f32 %v7101_v3, %v7100_v29  ;;  %v6199_v24 = vmul.f32 %v7101_v3, %v7103_v58  ;;  %v6201_v19 = vpop.eup %3913  ;;  %v7105_v41 = vld [vmem:[#allocation66_spill] sm:$0xff]  ;;  %v7106_v10 = vld [vmem:[#allocation83_spill] sm:$0xff]  ;;  %v6219_v58 = vpop.f32.mrf.mxu0  ;;  %2947 = vmatpush1.xpose.msra.mxu1 %v6008_v21 }
 0x36e   : > { %7090 = vst [vmem:[#allocation90_spill] sm:$0xff] %v6172_v14  ;;  %7095 = vst [vmem:[#allocation76_spill] sm:$0xff] %v6183_v31  ;;  %v2889_v40 = vmul.f32 %v7106_v10, %v7105_v41  ;;  %v7107_v31 = vld [vmem:[#allocation27_spill] sm:$0xff]  ;;  %v7110_v13 = vld [vmem:[#allocation28_spill] sm:$0xff]  ;;  %v6217_v22 = vpop.eup %3915  ;;  %3937 = vrcp.f32 %v2723_v4  ;;  %3209 = vmatpush1.xpose.msra.mxu0 %v6086_v56  ;;  %v6237_v4 = vmul.f32 %v3912_v43, %v5996_v51  ;;  %2948 = vmatprep.subr.mxu1 %v6092_v52 }
 0x36f   : > { %7102 = vst [vmem:[#allocation73_spill] sm:$0xff] %v6195_v28  ;;  %7104 = vst [vmem:[#allocation70_spill] sm:$0xff] %v6199_v24  ;;  %v7108_v14 = vld [vmem:[#allocation43_spill] sm:$0xff]  ;;  %v7111_v6 = vld [vmem:[#allocation26_spill] sm:$0xff]  ;;  %3210 = vmatprep.subr.mxu0 %v6096_v2  ;;  %v6255_v51 = vmul.f32 %v3906_v17, %v5974_v62  ;;  %v6265_v52 = vmul.f32 %v6102_v37, %v5944_v39  ;;  %v6273_v2 = vpop.f32.mrf.mxu0  ;;  %v6283_v39 = vmul.f32 %v6038_v35, %v5912_v48 }
 0x370   : > { %v6207_v30 = vmul.f32 %v7108_v14, %v7107_v31  ;;  %v6211_v59 = vmul.f32 %v7108_v14, %v7110_v13  ;;  %v7112_v29 = vld [vmem:[#allocation41_spill] sm:$0xff]  ;;  %v7116_v31 = vld [vmem:[#allocation34_spill] sm:$0xff]  ;;  %v6230_v14 = vmul.f32 %v3912_v43, %v5989_v38  ;;  %v3918_v13 = vpop.eup %3917 }
 0x371   : > { %v6215_v28 = vmul.f32 %v7112_v29, %v7111_v6  ;;  %v7113_v3 = vld [vmem:[#allocation25_spill] sm:$0xff]  ;;  %v2724_v6 = vadd.f32 %v6217_v22, %v6201_v19  ;;  %v6242_v29 = vpop.eup %3919  ;;  %v6249_v38 = vmul.f32 %v3918_v13, %v6018_v60  ;;  %v6252_v21 = vmul.f32 %v3918_v13, %v6029_v63  ;;  %7117 = vst [vmem:[#allocation77_spill] sm:$0xff] %v6255_v51 }
 0x372   : > { %7109 = vst [vmem:[#allocation60_spill] sm:$0xff] %v6207_v30  ;;  %v7114_v24 = vld [vmem:[#allocation37_spill] sm:$0xff]  ;;  %v6227_v30 = vmul.f32 %v7116_v31, %v7115_v5  ;;  %v6244_v5 = vpop.f32.mrf.mxu1  ;;  %v6257_v56 = vpop.eup %3921  ;;  %7119 = vst [vmem:[#allocation59_spill] sm:$0xff] %v6265_v52  ;;  %v6269_v60 = vmul.f32 %v6068_v16, %v5926_v42  ;;  %2949 = vmatpush1.xpose.msra.mxu1 %v5956_v34  ;;  %3211 = vmatpush1.xpose.msra.mxu0 %v6100_v18  ;;  %v7130_v31 = vld [vmem:[#allocation63_spill] sm:$0xff] }
 0x373   : > { %v6223_v41 = vmul.f32 %v7114_v24, %v7113_v3  ;;  %v6240_v24 = vmul.f32 %v3906_v17, %v5965_v9  ;;  %3939 = vrcp.f32 %v2724_v6  ;;  %v6261_v9 = vmul.f32 %v6102_v37, %v5942_v33  ;;  %v3924_v63 = vpop.eup %3923  ;;  %v7121_v17 = vld [vmem:[#allocation68_spill] sm:$0xff]  ;;  %7123 = vst [vmem:[#allocation72_spill] sm:$0xff] %v6283_v39  ;;  %2950 = vmatprep.subr.mxu1 %v2889_v40  ;;  %v7131_v13 = vld [vmem:[#allocation81_spill] sm:$0xff]  ;;  %v7145_v39 = vld [vmem:[#allocation54_spill] sm:$0xff] }
 0x374   : > { %7120 = vst [vmem:[#allocation75_spill] sm:$0xff] %v6269_v60  ;;  %v2725_v62 = vadd.f32 %v6257_v56, %v6242_v29  ;;  %v3151_v43 = vmul.f32 %v7106_v10, %v7121_v17  ;;  %v6279_v33 = vmul.f32 %v6068_v16, %v5930_v11  ;;  %v6285_v37 = vpop.eup %3925  ;;  %v6290_v42 = vmul.f32 %v3924_v63, %v6050_v20  ;;  %v6301_v48 = vpop.f32.mrf.mxu1  ;;  %v7126_v20 = vld [vmem:[#allocation94_spill] sm:$0xff]  ;;  %v7132_v6 = vld [vmem:[#allocation65_spill] sm:$0xff]  ;;  %v7147_v52 = vld [vmem:[#allocation80_spill] sm:$0xff] }
 0x375   : > { %7118 = vst [vmem:[#allocation61_spill] sm:$0xff] %v6261_v9  ;;  %v6293_v3 = vmul.f32 %v3924_v63, %v6058_v50  ;;  %v6297_v11 = vmul.f32 %v6038_v35, %v5914_v49  ;;  %v6299_v16 = vpop.eup %3927  ;;  %v6305_v34 = vmul.f32 %v6010_v0, %v5894_v44  ;;  %v6309_v18 = vmul.f32 %v6010_v0, %v7126_v20  ;;  %v7128_v50 = vld [vmem:[#allocation92_spill] sm:$0xff]  ;;  %v7133_v44 = vld [vmem:[#allocation93_spill] sm:$0xff]  ;;  %v6327_v17 = vpop.f32.mrf.mxu0 }
 0x376   : > { %7122 = vst [vmem:[#allocation57_spill] sm:$0xff] %v6279_v33  ;;  %3941 = vrcp.f32 %v2725_v62  ;;  %3212 = vmatprep.subr.mxu0 %v3151_v43  ;;  %v6313_v10 = vmul.f32 %v5981_v25, %v7128_v50  ;;  %v3930_v49 = vpop.eup %3929  ;;  %v2726_v35 = vadd.f32 %v6299_v16, %v6285_v37  ;;  %v2888_v40 = vmul.f32 %v7131_v13, %v7130_v31 }
 0x377   : > { %7124 = vst [vmem:[#allocation52_spill] sm:$0xff] %v6297_v11  ;;  %7125 = vst [vmem:[#allocation69_spill] sm:$0xff] %v6305_v34  ;;  %v3150_v63 = vmul.f32 %v7131_v13, %v7132_v6  ;;  %v6323_v62 = vmul.f32 %v5981_v25, %v7133_v44  ;;  %v6325_v0 = vpop.eup %3931  ;;  %v6330_v43 = vmul.f32 %v3930_v49, %v6076_v8  ;;  %v6336_v6 = vpop.f32.mrf.mxu1  ;;  %v7143_v11 = vld [vmem:[#allocation79_spill] sm:$0xff] }
 0x378   : > { %7127 = vst [vmem:[#allocation53_spill] sm:$0xff] %v6309_v18  ;;  %7129 = vst [vmem:[#allocation48_spill] sm:$0xff] %v6313_v10  ;;  %v6333_v20 = vmul.f32 %v3930_v49, %v6088_v57  ;;  %v3934_v50 = vpop.eup %3933  ;;  %3943 = vrcp.f32 %v2726_v35  ;;  %2951 = vmatpush1.xpose.msra.mxu1 %v2888_v40  ;;  %v6346_v57 = vpop.f32.mrf.mxu0  ;;  %v7135_v35 = vld [vmem:[#allocation78_spill] sm:$0xff] }
 0x379   : > { %7134 = vst [vmem:[#allocation67_spill] sm:$0xff] %v6323_v62  ;;  %3213 = vmatpush1.xpose.msra.mxu0 %v3150_v63  ;;  %v3936_v31 = vpop.eup %3935  ;;  %v2727_v13 = vadd.f32 %v3934_v50, %v6325_v0  ;;  %2952 = vmatprep.subr.mxu1 %v6110_v23  ;;  %v6350_v40 = vpop.f32.mrf.mxu1  ;;  %v7136_v63 = vld [vmem:[#allocation74_spill] sm:$0xff]  ;;  %v7141_v62 = vld [vmem:[#allocation91_spill] sm:$0xff] }
 0x37a   : > { %3214 = vmatprep.subr.mxu0 %v6114_v45  ;;  %v6341_v25 = vmul.f32 %v3936_v31, %v6116_v26  ;;  %v6344_v8 = vmul.f32 %v3936_v31, %v6130_v61  ;;  %v6360_v61 = vpop.f32.mrf.mxu0  ;;  %v7138_v31 = vld [vmem:[#allocation98_spill] sm:$0xff] }
 0x37b   : > { %3945 = vrcp.f32 %v2727_v13  ;;  %v3938_v49 = vpop.eup %3937  ;;  %v6372_v13 = vpop.f32.mrf.mxu1  ;;  %v7142_v10 = vld [vmem:[#allocation82_spill] sm:$0xff] }
 0x37c   : > { %2953 = vmatpush1.xpose.msra.mxu1 %v7135_v35  ;;  %v6355_v23 = vmul.f32 %v3938_v49, %v6157_v7  ;;  %v6358_v45 = vmul.f32 %v3938_v49, %v6174_v47  ;;  %v7139_v49 = vld [vmem:[#allocation64_spill] sm:$0xff] }
 0x37d   : > { %3215 = vmatpush1.xpose.msra.mxu0 %v6120_v55  ;;  %2954 = vmatprep.subr.mxu1 %v7136_v63 }
 0x37e   : > { %3216 = vmatprep.subr.mxu0 %v6124_v46  ;;  %v7137_v46 = vld [vmem:[#allocation97_spill] sm:$0xff] }
 0x37f   : > { %v2281_v7 = vmax.f32 %v7138_v31, %v7137_v46 }
 0x380   : > { %v3940_v26 = vpop.eup %3939  ;;  %2955 = vmatpush1.xpose.msra.mxu1 %v6128_v1  ;;  %v2283_v1 = vmax.f32 %v6004_v15, %v5985_v12 }
 0x381   : > { %3217 = vmatpush1.xpose.msra.mxu0 %v6136_v32  ;;  %v6365_v55 = vmul.f32 %v3940_v26, %v6201_v19  ;;  %v6368_v44 = vmul.f32 %v3940_v26, %v6217_v22  ;;  %2956 = vmatprep.subr.mxu1 %v6140_v27  ;;  %v2223_v32 = vpop.f32.mrf.mxu0  ;;  %v2345_v27 = vsub.f32 %v7138_v31, %v2281_v7  ;;  %v1604_v26 = vpop.f32.mrf.mxu1 }
 0x382   : > { %3218 = vmatprep.subr.mxu0 %v6144_v53  ;;  %v7140_v53 = vld [vmem:[#allocation101_spill] sm:$0xff]  ;;  %v2347_v31 = vsub.f32 %v6004_v15, %v2283_v1  ;;  %v2539_v34 = vsub.f32 %v5985_v12, %v2283_v1 }
 0x383   : > { %v3942_v47 = vpop.eup %3941  ;;  %v6389_v63 = vmax.f32 %v7140_v53, %v6023_v36 }
 0x384   : > { %v6379_v19 = vmul.f32 %v3942_v47, %v6242_v29  ;;  %v6382_v22 = vmul.f32 %v3942_v47, %v6257_v56  ;;  %2957 = vmatpush1.xpose.msra.mxu1 %v7139_v49  ;;  %v2537_v29 = vsub.f32 %v7137_v46, %v2281_v7  ;;  %v2291_v56 = vmax.f32 %v6350_v40, %v6346_v57  ;;  %v2227_v49 = vpop.f32.mrf.mxu0 }
 0x385   : > { %3219 = vmatpush1.xpose.msra.mxu0 %v6151_v54  ;;  %v3944_v35 = vpop.eup %3943  ;;  %2958 = vmatprep.subr.mxu1 %v7141_v62  ;;  %v2293_v62 = vmax.f32 %v1604_v26, %v2223_v32  ;;  %v2458_v46 = vmul.f32 1.442695, %v2345_v27  ;;  %v2348_v7 = vsub.f32 %v7140_v53, %v6389_v63  ;;  %v2462_v27 = vmul.f32 1.442695, %v2347_v31 }
 0x386   : > { %3220 = vmatprep.subr.mxu0 %v7142_v10  ;;  %v6397_v47 = vmul.f32 %v3944_v35, %v6285_v37  ;;  %v6400_v54 = vmul.f32 %v3944_v35, %v6299_v16  ;;  %v7144_v10 = vld [vmem:[#allocation90_spill] sm:$0xff]  ;;  %v1608_v37 = vpop.f32.mrf.mxu1  ;;  %v7146_v16 = vld [vmem:[#allocation55_spill] sm:$0xff]  ;;  %v2650_v12 = vmul.f32 1.442695, %v2537_v29  ;;  %v2355_v1 = vsub.f32 %v6350_v40, %v2291_v56  ;;  %v2229_v33 = vpop.f32.mrf.mxu0 }
 0x387   : > { %v2294_v53 = vmax.f32 %v1608_v37, %v2227_v49  ;;  %v2654_v60 = vmul.f32 1.442695, %v2539_v34  ;;  %3947 = vpow2.f32 %v2458_v46  ;;  %v7149_v29 = vld [vmem:[#allocation50_spill] sm:$0xff]  ;;  %v7150_v40 = vld [vmem:[#allocation71_spill] sm:$0xff] }
 0x388   : > { %v3946_v18 = vpop.eup %3945  ;;  %2959 = vmatpush1.xpose.msra.mxu1 %v7143_v11  ;;  %v2292_v11 = vmax.f32 %v6372_v13, %v6360_v61  ;;  %3949 = vpow2.f32 %v2650_v12  ;;  %v2478_v31 = vmul.f32 1.442695, %v2355_v1  ;;  %v2290_v12 = vmax.f32 %v6336_v6, %v6327_v17 }
 0x389   : > { %3221 = vmatpush1.xpose.msra.mxu0 %v7144_v10  ;;  %2960 = vmatprep.subr.mxu1 %v7145_v39  ;;  %v6411_v15 = vmul.f32 %v3946_v18, %v6325_v0  ;;  %v6413_v35 = vmul.f32 %v3946_v18, %v3934_v50  ;;  %v2547_v10 = vsub.f32 %v6346_v57, %v2291_v56  ;;  %v2464_v18 = vmul.f32 1.442695, %v2348_v7  ;;  %v1610_v50 = vpop.f32.mrf.mxu1 }
 0x38a   : > { %3222 = vmatprep.subr.mxu0 %v7146_v16  ;;  %v2357_v39 = vsub.f32 %v1604_v26, %v2293_v62  ;;  %v7148_v16 = vld [vmem:[#allocation76_spill] sm:$0xff]  ;;  %v2549_v0 = vsub.f32 %v2223_v32, %v2293_v62  ;;  %v2356_v57 = vsub.f32 %v6372_v13, %v2292_v11  ;;  %v2295_v56 = vmax.f32 %v1610_v50, %v2229_v33  ;;  %v7151_v32 = vld [vmem:[#allocation73_spill] sm:$0xff]  ;;  %v7152_v62 = vld [vmem:[#allocation70_spill] sm:$0xff] }
 0x38b   : > { %3951 = vpow2.f32 %v2462_v27  ;;  %v2670_v34 = vmul.f32 1.442695, %v2547_v10  ;;  %v2358_v26 = vsub.f32 %v1608_v37, %v2294_v53  ;;  %v2550_v7 = vsub.f32 %v2227_v49, %v2294_v53  ;;  %v7153_v27 = vld [vmem:[#allocation60_spill] sm:$0xff]  ;;  %v7154_v53 = vld [vmem:[#allocation85_spill] sm:$0xff] }
 0x38c   : > { %2961 = vmatpush1.xpose.msra.mxu1 %v7147_v52  ;;  %3953 = vpow2.f32 %v2654_v60  ;;  %v2289_v52 = vmax.f32 %v6301_v48, %v6273_v2  ;;  %v2482_v46 = vmul.f32 1.442695, %v2357_v39  ;;  %v2548_v13 = vsub.f32 %v6360_v61, %v2292_v11  ;;  %v7155_v39 = vld [vmem:[#allocation87_spill] sm:$0xff] }
 0x38d   : > { %3223 = vmatpush1.xpose.msra.mxu0 %v7148_v16  ;;  %2962 = vmatprep.subr.mxu1 %v7149_v29  ;;  %3955 = vpow2.f32 %v2464_v18  ;;  %v2674_v1 = vmul.f32 1.442695, %v2549_v0  ;;  %v2480_v60 = vmul.f32 1.442695, %v2356_v57  ;;  %v2359_v37 = vsub.f32 %v1610_v50, %v2295_v56  ;;  %v7157_v0 = vld [vmem:[#allocation39_spill] sm:$0xff]  ;;  %v7159_v57 = vld [vmem:[#allocation89_spill] sm:$0xff] }
 0x38e   : > { %3224 = vmatprep.subr.mxu0 %v7150_v40  ;;  %3957 = vpow2.f32 %v2478_v31  ;;  %v2484_v49 = vmul.f32 1.442695, %v2358_v26  ;;  %v2551_v10 = vsub.f32 %v2229_v33, %v2295_v56  ;;  %v2287_v16 = vmax.f32 %v7155_v39, %v7154_v53  ;;  %v7156_v40 = vld [vmem:[#allocation44_spill] sm:$0xff] }
 0x38f   : > { %3959 = vpow2.f32 %v2670_v34  ;;  %v2353_v18 = vsub.f32 %v6301_v48, %v2289_v52  ;;  %v2676_v29 = vmul.f32 1.442695, %v2550_v7  ;;  %v2354_v61 = vsub.f32 %v6336_v6, %v2290_v12  ;;  %v7160_v26 = vld [vmem:[#allocation36_spill] sm:$0xff] }
 0x390   : > { %2963 = vmatpush1.xpose.msra.mxu1 %v7151_v32  ;;  %3961 = vpow2.f32 %v2482_v46  ;;  %v2672_v11 = vmul.f32 1.442695, %v2548_v13  ;;  %v2546_v33 = vsub.f32 %v6327_v17, %v2290_v12  ;;  %v2486_v48 = vmul.f32 1.442695, %v2359_v37  ;;  %v7162_v46 = vld [vmem:[#allocation84_spill] sm:$0xff] }
 0x391   : > { %3225 = vmatpush1.xpose.msra.mxu0 %v7152_v62  ;;  %2964 = vmatprep.subr.mxu1 %v7153_v27  ;;  %3963 = vpow2.f32 %v2674_v1  ;;  %v2545_v50 = vsub.f32 %v6273_v2, %v2289_v52  ;;  %v2678_v31 = vmul.f32 1.442695, %v2551_v10  ;;  %v2351_v34 = vsub.f32 %v7155_v39, %v2287_v16 }
 0x392   : > { %3226 = vmatprep.subr.mxu0 %v6211_v59  ;;  %v2288_v59 = vmax.f32 %v6244_v5, %v6219_v58  ;;  %3965 = vpow2.f32 %v2480_v60  ;;  %v2474_v6 = vmul.f32 1.442695, %v2353_v18  ;;  %v2476_v32 = vmul.f32 1.442695, %v2354_v61 }
 0x393   : > { %3967 = vpow2.f32 %v2484_v49  ;;  %v2668_v62 = vmul.f32 1.442695, %v2546_v33  ;;  %v2543_v13 = vsub.f32 %v7154_v53, %v2287_v16  ;;  %v2666_v1 = vmul.f32 1.442695, %v2545_v50 }
 0x394   : > { %2965 = vmatpush1.xpose.msra.mxu1 %v7156_v40  ;;  %3969 = vpow2.f32 %v2676_v29  ;;  %v2352_v7 = vsub.f32 %v6244_v5, %v2288_v59  ;;  %v6453_v2 = vpop.eup %3947  ;;  %v2544_v52 = vsub.f32 %v6219_v58, %v2288_v59  ;;  %v2470_v60 = vmul.f32 1.442695, %v2351_v34  ;;  %v7163_v40 = vld [vmem:[#allocation99_spill] sm:$0xff]  ;;  %v7164_v59 = vld [vmem:[#allocation100_spill] sm:$0xff] }
 0x395   : > { %3227 = vmatpush1.xpose.msra.mxu0 %v6215_v28  ;;  %2966 = vmatprep.subr.mxu1 %v7157_v0  ;;  %v7158_v28 = vld [vmem:[#allocation88_spill] sm:$0xff]  ;;  %3971 = vpow2.f32 %v2672_v11  ;;  %v6456_v12 = vpop.eup %3949  ;;  %v2662_v18 = vmul.f32 1.442695, %v2543_v13  ;;  %v2282_v61 = vmax.f32 %v7164_v59, %v7163_v40  ;;  %v2540_v11 = vsub.f32 %v6023_v36, %v6389_v63  ;;  %v7165_v34 = vld [vmem:[#allocation95_spill] sm:$0xff] }
 0x396   : > { %3228 = vmatprep.subr.mxu0 %v6223_v41  ;;  %v2285_v56 = vmax.f32 %v7159_v57, %v7158_v28  ;;  %v7161_v41 = vld [vmem:[#allocation86_spill] sm:$0xff]  ;;  %3973 = vpow2.f32 %v2486_v48  ;;  %v2472_v49 = vmul.f32 1.442695, %v2352_v7  ;;  %v2664_v39 = vmul.f32 1.442695, %v2544_v52 }
 0x397   : > { %v2286_v17 = vmax.f32 %v7162_v46, %v7161_v41  ;;  %3975 = vpow2.f32 %v2678_v31  ;;  %v2346_v36 = vsub.f32 %v7164_v59, %v2282_v61  ;;  %v2656_v63 = vmul.f32 1.442695, %v2540_v11 }
 0x398   : > { %2967 = vmatpush1.xpose.msra.mxu1 %v7160_v26  ;;  %v2349_v27 = vsub.f32 %v7159_v57, %v2285_v56  ;;  %3977 = vpow2.f32 %v2474_v6  ;;  %v2541_v16 = vsub.f32 %v7158_v28, %v2285_v56  ;;  %v7166_v6 = vld [vmem:[#allocation96_spill] sm:$0xff] }
 0x399   : > { %3229 = vmatpush1.xpose.msra.mxu0 %v6227_v30  ;;  %v6459_v30 = vpop.eup %3951  ;;  %v2350_v37 = vsub.f32 %v7162_v46, %v2286_v17  ;;  %3979 = vpow2.f32 %v2476_v32  ;;  %v2542_v10 = vsub.f32 %v7161_v41, %v2286_v17  ;;  %v2280_v26 = vmax.f32 %v7166_v6, %v7165_v34 }
 0x39a   : > { %v6462_v5 = vpop.eup %3953  ;;  %3981 = vpow2.f32 %v2668_v62  ;;  %v2466_v0 = vmul.f32 1.442695, %v2349_v27  ;;  %v2658_v57 = vmul.f32 1.442695, %v2541_v16  ;;  %v2538_v46 = vsub.f32 %v7163_v40, %v2282_v61 }
 0x39b   : > { %v6465_v58 = vpop.eup %3955  ;;  %3983 = vpow2.f32 %v2666_v1  ;;  %v2468_v48 = vmul.f32 1.442695, %v2350_v37  ;;  %v2660_v31 = vmul.f32 1.442695, %v2542_v10  ;;  %v2344_v13 = vsub.f32 %v7166_v6, %v2280_v26 }
 0x39c   : > { %v6468_v53 = vpop.eup %3957  ;;  %3985 = vpow2.f32 %v2470_v60  ;;  %v2460_v1 = vmul.f32 1.442695, %v2346_v36  ;;  %v2536_v60 = vsub.f32 %v7165_v34, %v2280_v26  ;;  %v2652_v37 = vmul.f32 1.442695, %v2538_v46 }
 0x39d   : > { %v6471_v29 = vpop.eup %3959  ;;  %3987 = vpow2.f32 %v2472_v49  ;;  %v2456_v59 = vmul.f32 1.442695, %v2344_v13  ;;  %v2731_v51 = vadd.f32 %v6462_v5, %v6459_v30 }
 0x39e   : > { %v6477_v33 = vpop.eup %3961  ;;  %3989 = vpow2.f32 %v2664_v39  ;;  %v2648_v11 = vmul.f32 1.442695, %v2536_v60 }
 0x39f   : > { %v6479_v50 = vpop.eup %3963  ;;  %3991 = vpow2.f32 %v2662_v18  ;;  %v2739_v18 = vadd.f32 %v6471_v29, %v6468_v53 }
 0x3a0   : > { %v6481_v28 = vpop.eup %3965  ;;  %3993 = vpow2.f32 %v2466_v0  ;;  %v2741_v17 = vadd.f32 %v6479_v50, %v6477_v33 }
 0x3a1   : > { %v6483_v56 = vpop.eup %3967  ;;  %3995 = vpow2.f32 %v2468_v48 }
 0x3a2   : > { %v3970_v41 = vpop.eup %3969  ;;  %3997 = vpow2.f32 %v2660_v31 }
 0x3a3   : > { %v6491_v7 = vpop.eup %3971  ;;  %v2742_v32 = vadd.f32 %v3970_v41, %v6483_v56  ;;  %3999 = vpow2.f32 %v2658_v57 }
 0x3a4   : > { %v3974_v52 = vpop.eup %3973  ;;  %4001 = vpow2.f32 %v2656_v63  ;;  %v2740_v39 = vadd.f32 %v6491_v7, %v6481_v28 }
 0x3a5   : > { %v3976_v62 = vpop.eup %3975  ;;  %4003 = vrcp.f32 %v2741_v17 }
 0x3a6   : > { %v6495_v27 = vpop.eup %3977  ;;  %v2743_v49 = vadd.f32 %v3976_v62, %v3974_v52  ;;  %4005 = vrcp.f32 %v2742_v32 }
 0x3a7   : > { %v6498_v10 = vpop.eup %3979 }
 0x3a8   : > { %v6502_v16 = vpop.eup %3981  ;;  %4007 = vrcp.f32 %v2743_v49 }
 0x3a9   : > { %v6506_v40 = vpop.eup %3983  ;;  %4009 = vpow2.f32 %v2460_v1  ;;  %v2738_v48 = vadd.f32 %v6502_v16, %v6498_v10 }
 0x3aa   : > { %v6508_v61 = vpop.eup %3985  ;;  %4011 = vpow2.f32 %v2652_v37  ;;  %v2737_v57 = vadd.f32 %v6506_v40, %v6495_v27 }
 0x3ab   : > { %v6510_v0 = vpop.eup %3987  ;;  %4013 = vrcp.f32 %v2740_v39 }
 0x3ac   : > { %v6514_v31 = vpop.eup %3989  ;;  %4015 = vrcp.f32 %v2739_v18 }
 0x3ad   : > { %v6518_v34 = vpop.eup %3991  ;;  %4017 = vpow2.f32 %v2456_v59  ;;  %v2736_v36 = vadd.f32 %v6514_v31, %v6510_v0 }
 0x3ae   : > { %v6520_v6 = vpop.eup %3993  ;;  %4019 = vpow2.f32 %v2648_v11  ;;  %v2735_v46 = vadd.f32 %v6518_v34, %v6508_v61 }
 0x3af   : > { %v6522_v26 = vpop.eup %3995  ;;  %4021 = vrcp.f32 %v2738_v48 }
 0x3b0   : > { %v6526_v63 = vpop.eup %3997  ;;  %4023 = vrcp.f32 %v2737_v57 }
 0x3b1   : > { %v6530_v17 = vpop.eup %3999  ;;  %v2734_v1 = vadd.f32 %v6526_v63, %v6522_v26  ;;  %4025 = vrcp.f32 %v2736_v36 }
 0x3b2   : > { %v6532_v32 = vpop.eup %4001  ;;  %v2733_v37 = vadd.f32 %v6530_v17, %v6520_v6  ;;  %4027 = vrcp.f32 %v2735_v46 }
 0x3b3   : > { %v4004_v13 = vpop.eup %4003  ;;  %v2732_v48 = vadd.f32 %v6532_v32, %v6465_v58  ;;  %4029 = vrcp.f32 %v2734_v1 }
 0x3b4   : > { %v4006_v60 = vpop.eup %4005  ;;  %4031 = vrcp.f32 %v2733_v37  ;;  %v2933_v46 = vmul.f32 %v4004_v13, %v6477_v33 }
 0x3b5   : > { %v4008_v49 = vpop.eup %4007  ;;  %v2934_v57 = vmul.f32 %v4006_v60, %v6483_v56  ;;  %v3196_v9 = vmul.f32 %v4006_v60, %v3970_v41  ;;  %4033 = vrcp.f32 %v2732_v48 }
 0x3b6   : > { %v6538_v39 = vpop.eup %4009  ;;  %v2935_v18 = vmul.f32 %v4008_v49, %v3974_v52  ;;  %v3197_v59 = vmul.f32 %v4008_v49, %v3976_v62  ;;  %v3195_v52 = vmul.f32 %v4004_v13, %v6479_v50  ;;  %v2729_v50 = vadd.f32 %v6456_v12, %v6453_v2 }
 0x3b7   : > { %v6540_v11 = vpop.eup %4011  ;;  %4035 = vrcp.f32 %v2731_v51 }
 0x3b8   : > { %v4014_v36 = vpop.eup %4013  ;;  %2968 = vmatprep.subr.mxu1 %v2935_v18  ;;  %3230 = vmatprep.subr.mxu0 %v3197_v59  ;;  %v2730_v41 = vadd.f32 %v6540_v11, %v6538_v39 }
 0x3b9   : > { %v4016_v62 = vpop.eup %4015  ;;  %2969 = vmatpush2.xpose.msra.mxu1 %v2934_v57  ;;  %3231 = vmatpush2.xpose.msra.mxu0 %v3196_v9  ;;  %v2932_v1 = vmul.f32 %v4014_v36, %v6481_v28  ;;  %v3194_v60 = vmul.f32 %v4014_v36, %v6491_v7 }
 0x3ba   : > { %v6549_v49 = vpop.eup %4017  ;;  %2970 = vmatprep.subr.mxu1 %v2933_v46  ;;  %3232 = vmatprep.subr.mxu0 %v3195_v52  ;;  %v2931_v9 = vmul.f32 %v4016_v62, %v6468_v53  ;;  %v3193_v13 = vmul.f32 %v4016_v62, %v6471_v29  ;;  %4037 = vrcp.f32 %v2730_v41 }
 0x3bb   : > { %v6551_v56 = vpop.eup %4019  ;;  %4039 = vrcp.f32 %v2729_v50 }
 0x3bc   : > { %v4022_v33 = vpop.eup %4021  ;;  %v2728_v18 = vadd.f32 %v6551_v56, %v6549_v49 }
 0x3bd   : > { %v4024_v37 = vpop.eup %4023  ;;  %2971 = vmatpush2.xpose.msra.mxu1 %v2932_v1  ;;  %3233 = vmatpush2.xpose.msra.mxu0 %v3194_v60  ;;  %v2930_v28 = vmul.f32 %v4022_v33, %v6498_v10  ;;  %v3192_v7 = vmul.f32 %v4022_v33, %v6502_v16 }
 0x3be   : > { %2972 = vmatprep.subr.mxu1 %v2931_v9  ;;  %3234 = vmatprep.subr.mxu0 %v3193_v13  ;;  %v4026_v59 = vpop.eup %4025  ;;  %v2929_v51 = vmul.f32 %v4024_v37, %v6495_v27  ;;  %v3191_v53 = vmul.f32 %v4024_v37, %v6506_v40  ;;  %4041 = vrcp.f32 %v2728_v18 }
 0x3bf   : > { %v4028_v29 = vpop.eup %4027  ;;  %v2928_v48 = vmul.f32 %v4026_v59, %v6510_v0  ;;  %v3190_v57 = vmul.f32 %v4026_v59, %v6514_v31 }
 0x3c0   : > { %v4030_v36 = vpop.eup %4029  ;;  %v2927_v10 = vmul.f32 %v4028_v29, %v6508_v61  ;;  %v3189_v16 = vmul.f32 %v4028_v29, %v6518_v34 }
 0x3c1   : > { %2973 = vmatpush2.xpose.msra.mxu1 %v2930_v28  ;;  %3235 = vmatpush2.xpose.msra.mxu0 %v3192_v7  ;;  %v4032_v46 = vpop.eup %4031  ;;  %v2926_v27 = vmul.f32 %v4030_v36, %v6522_v26  ;;  %v3188_v40 = vmul.f32 %v4030_v36, %v6526_v63  ;;  %v953_v36 = vld [vmem:[%s6815_s4] sm:$0xff] }
 0x3c2   : > { %2974 = vmatprep.subr.mxu1 %v2929_v51  ;;  %3236 = vmatprep.subr.mxu0 %v3191_v53  ;;  %v4034_v52 = vpop.eup %4033  ;;  %v2925_v62 = vmul.f32 %v4032_v46, %v6520_v6  ;;  %v3187_v0 = vmul.f32 %v4032_v46, %v6530_v17  ;;  %v955_v46 = vld [vmem:[%s6815_s4 + $0x10] sm:$0xff] }
 0x3c3   : > { %v2924_v61 = vmul.f32 %v4034_v52, %v6465_v58  ;;  %v3186_v34 = vmul.f32 %v4034_v52, %v6532_v32  ;;  %v7190_v32 = vld [vmem:[#allocation15_spill] sm:$0xff]  ;;  %v7193_v52 = vld [vmem:[#allocation8_spill] sm:$0xff] }
 0x3c4   : > { %v4036_v31 = vpop.eup %4035 }
 0x3c5   : > { %2975 = vmatpush2.xpose.msra.mxu1 %v2928_v48  ;;  %3237 = vmatpush2.xpose.msra.mxu0 %v3190_v57  ;;  %v2923_v1 = vmul.f32 %v4036_v31, %v6459_v30  ;;  %v3185_v26 = vmul.f32 %v4036_v31, %v6462_v5  ;;  %v7194_v31 = vld [vmem:[#allocation9_spill] sm:$0xff] }
 0x3c6   : > { %2976 = vmatprep.subr.mxu1 %v2927_v10  ;;  %3238 = vmatprep.subr.mxu0 %v3189_v16  ;;  %v954_v16 = vld [vmem:[%s6815_s4 + $0x8] sm:$0xff] }
 0x3c7   : > { %v4038_v41 = vpop.eup %4037 }
 0x3c8   : > { %v4040_v63 = vpop.eup %4039  ;;  %v2922_v6 = vmul.f32 %v4038_v41, %v6538_v39  ;;  %v3184_v17 = vmul.f32 %v4038_v41, %v6540_v11  ;;  %v7191_v39 = vld [vmem:[#allocation22_spill] sm:$0xff]  ;;  %v7192_v11 = vmov 0.0  }
 0x3c9   : > { %2977 = vmatpush2.xpose.msra.mxu1 %v2926_v27  ;;  %3239 = vmatpush2.xpose.msra.mxu0 %v3188_v40  ;;  %v2921_v33 = vmul.f32 %v4040_v63, %v6453_v2  ;;  %v3183_v58 = vmul.f32 %v4040_v63, %v6456_v12  ;;  %v7188_v2 = vld [vmem:[#allocation16_spill] sm:$0xff]  ;;  %v7189_v12 = vld [vmem:[#allocation23_spill] sm:$0xff] }
 0x3ca   : > { %2978 = vmatprep.subr.mxu1 %v2925_v62  ;;  %3240 = vmatprep.subr.mxu0 %v3187_v0  ;;  %v956_v27 = vld [vmem:[%s6815_s4 + $0x18] sm:$0xff]  ;;  %v4043_v40 = vld [vmem:[%s6811_s0] sm:$0xff] }
 0x3cb   : > { %v4042_v60 = vpop.eup %4041  ;;  %v893_v62 = vmul.f32 %v4043_v40, %v7193_v52  ;;  %v4044_v0 = vld [vmem:[#allocation2] sm:$0xff] }
 0x3cc   : > { %v2920_v30 = vmul.f32 %v4042_v60, %v6549_v49  ;;  %v3182_v5 = vmul.f32 %v4042_v60, %v6551_v56  ;;  %v4048_v60 = vld [vmem:[#allocation2 + $0x10] sm:$0xff] }
 0x3cd   : > { %2979 = vmatpush2.xpose.msra.mxu1 %v2924_v61  ;;  %3241 = vmatpush2.xpose.msra.mxu0 %v3186_v34  ;;  %v909_v61 = vmul.f32 %v4044_v0, %v7194_v31  ;;  %v4045_v34 = vld [vmem:[%s6811_s0 + $0x8] sm:$0xff] }
 0x3ce   : > { %2980 = vmatprep.subr.mxu1 %v2923_v1  ;;  %3242 = vmatprep.subr.mxu0 %v3185_v26  ;;  %v894_v41 = vmul.f32 %v4045_v34, %v7193_v52  ;;  %v4046_v1 = vld [vmem:[#allocation2 + $0x8] sm:$0xff] }
 0x3cf   : > { %v910_v26 = vmul.f32 %v4046_v1, %v7194_v31  ;;  %v925_v63 = vadd.f32 %v909_v61, %v893_v62  ;;  %v4063_v62 = vld [vmem:[%s6811_s0 + $0x50] sm:$0xff] }
 0x3d0   : > { %v903_v0 = vmul.f32 %v4063_v62, %v7193_v52  ;;  %v4064_v61 = vld [vmem:[#allocation2 + $0x50] sm:$0xff] }
 0x3d1   : > { %2981 = vmatpush2.xpose.msra.mxu1 %v2922_v6  ;;  %3243 = vmatpush2.xpose.msra.mxu0 %v3184_v17  ;;  %v4047_v6 = vld [vmem:[%s6811_s0 + $0x10] sm:$0xff]  ;;  %v919_v34 = vmul.f32 %v4064_v61, %v7194_v31 }
 0x3d2   : > { %2982 = vmatprep.subr.mxu1 %v2921_v33  ;;  %3244 = vmatprep.subr.mxu0 %v3183_v58  ;;  %v895_v17 = vmul.f32 %v4047_v6, %v7193_v52  ;;  %v911_v33 = vmul.f32 %v4048_v60, %v7194_v31  ;;  %v926_v58 = vadd.f32 %v910_v26, %v894_v41 }
 0x3d5   : > { %2983 = vmatpush2.xpose.msra.mxu1 %v2920_v30  ;;  %3245 = vmatpush2.xpose.msra.mxu0 %v3182_v5  ;;  %v4049_v30 = vld [vmem:[%s6811_s0 + $0x18] sm:$0xff] }
 0x3d6   : > { %2984 = vmatprep.subr.mxu1 %v6411_v15  ;;  %3246 = vmatprep.subr.mxu0 %v6413_v35  ;;  %v7186_v15 = vld [vmem:[#allocation13_spill] sm:$0xff]  ;;  %v7187_v35 = vld [vmem:[#allocation20_spill] sm:$0xff]  ;;  %v896_v5 = vmul.f32 %v4049_v30, %v7193_v52  ;;  %v935_v30 = vadd.f32 %v919_v34, %v903_v0 }
 0x3d9   : > { %2985 = vmatpush2.xpose.msra.mxu1 %v6397_v47  ;;  %3247 = vmatpush2.xpose.msra.mxu0 %v6400_v54  ;;  %v7184_v47 = vld [vmem:[#allocation14_spill] sm:$0xff]  ;;  %v7185_v54 = vld [vmem:[#allocation21_spill] sm:$0xff] }
 0x3da   : > { %2986 = vmatprep.subr.mxu1 %v6379_v19  ;;  %3248 = vmatprep.subr.mxu0 %v6382_v22  ;;  %v7182_v19 = vld [vmem:[#allocation12_spill] sm:$0xff]  ;;  %v7183_v22 = vld [vmem:[#allocation18_spill] sm:$0xff] }
 0x3dd   : > { %2987 = vmatpush2.xpose.msra.mxu1 %v6365_v55  ;;  %3249 = vmatpush2.xpose.msra.mxu0 %v6368_v44  ;;  %v7180_v55 = vld [vmem:[#allocation11_spill] sm:$0xff] }
 0x3de   : > { %2988 = vmatprep.subr.mxu1 %v6355_v23  ;;  %3250 = vmatprep.subr.mxu0 %v6358_v45  ;;  %v7178_v23 = vld [vmem:[#allocation10_spill] sm:$0xff]  ;;  %v7179_v45 = vld [vmem:[#allocation17_spill] sm:$0xff]  ;;  %v7181_v44 = vld [vmem:[#allocation19_spill] sm:$0xff] }
 0x3e1   : > { %2989 = vmatpush2.xpose.msra.mxu1 %v6341_v25  ;;  %3251 = vmatpush2.xpose.msra.mxu0 %v6344_v8  ;;  %v7167_v25 = vld [vmem:[#allocation77_spill] sm:$0xff] }
 0x3e2   : > { %2990 = vmatprep.subr.mxu1 %v6330_v43  ;;  %3252 = vmatprep.subr.mxu0 %v6333_v20  ;;  %v7168_v8 = vld [vmem:[#allocation61_spill] sm:$0xff]  ;;  %v7169_v43 = vld [vmem:[#allocation59_spill] sm:$0xff] }
 0x3e3   : > { %v7170_v20 = vld [vmem:[#allocation75_spill] sm:$0xff] }
 0x3e5   : > { %2991 = vmatpush2.xpose.msra.mxu1 %v6290_v42  ;;  %3253 = vmatpush2.xpose.msra.mxu0 %v6293_v3  ;;  %v7171_v42 = vld [vmem:[#allocation57_spill] sm:$0xff]  ;;  %v7172_v3 = vld [vmem:[#allocation72_spill] sm:$0xff] }
 0x3e6   : > { %2992 = vmatprep.subr.mxu1 %v6249_v38  ;;  %3254 = vmatprep.subr.mxu0 %v6252_v21  ;;  %v7173_v38 = vld [vmem:[#allocation52_spill] sm:$0xff]  ;;  %v7174_v21 = vld [vmem:[#allocation69_spill] sm:$0xff] }
 0x3e9   : > { %2993 = vmatpush2.xpose.msra.mxu1 %v6230_v14  ;;  %3255 = vmatpush2.xpose.msra.mxu0 %v6237_v4  ;;  %v7175_v14 = vld [vmem:[#allocation53_spill] sm:$0xff]  ;;  %v7176_v4 = vld [vmem:[#allocation48_spill] sm:$0xff] }
 0x3ea   : > { %2994 = vmatprep.subr.mxu1 %v6240_v24  ;;  %3256 = vmatprep.subr.mxu0 %v7167_v25  ;;  %v7177_v24 = vld [vmem:[#allocation67_spill] sm:$0xff] }
 0x3eb   : > { %v4050_v25 = vld [vmem:[#allocation2 + $0x18] sm:$0xff] }
 0x3ed   : > { %2995 = vmatpush2.xpose.msra.mxu1 %v7168_v8  ;;  %3257 = vmatpush2.xpose.msra.mxu0 %v7169_v43  ;;  %v912_v8 = vmul.f32 %v4050_v25, %v7194_v31 }
 0x3ee   : > { %2996 = vmatprep.subr.mxu1 %v7170_v20  ;;  %3258 = vmatprep.subr.mxu0 %v7171_v42  ;;  %v927_v42 = vadd.f32 %v911_v33, %v895_v17  ;;  %v4066_v17 = vld [vmem:[#allocation2 + $0x58] sm:$0xff] }
 0x3ef   : > { %v920_v60 = vmul.f32 %v4066_v17, %v7194_v31 }
 0x3f1   : > { %2997 = vmatpush2.xpose.msra.mxu1 %v7172_v3  ;;  %3259 = vmatpush2.xpose.msra.mxu0 %v7173_v38  ;;  %v4051_v3 = vld [vmem:[%s6811_s0 + $0x20] sm:$0xff] }
 0x3f2   : > { %2998 = vmatprep.subr.mxu1 %v7174_v21  ;;  %3260 = vmatprep.subr.mxu0 %v7175_v14  ;;  %v897_v38 = vmul.f32 %v4051_v3, %v7193_v52  ;;  %v4052_v21 = vld [vmem:[#allocation2 + $0x20] sm:$0xff] }
 0x3f3   : > { %v913_v14 = vmul.f32 %v4052_v21, %v7194_v31 }
 0x3f5   : > { %2999 = vmatpush2.xpose.msra.mxu1 %v7176_v4  ;;  %3261 = vmatpush2.xpose.msra.mxu0 %v7177_v24 }
 0x3f8   : > { %3001 = vmatmul.mubr.f32.vlgmr.msra.gmra.mxu1 %v7178_v23  ;;  %3263 = vmatmul.mubr.f32.vlgmr.msra.gmra.mxu0 %v7179_v45  ;;  %v928_v23 = vadd.f32 %v912_v8, %v896_v5  ;;  %v4053_v45 = vld [vmem:[%s6811_s0 + $0x28] sm:$0xff]  ;;  %v4067_v5 = vld [vmem:[%s6811_s0 + $0x60] sm:$0xff] }
 0x3f9   : > { %3006 = vmatprep.mubr.f32.mxu1 %v7180_v55  ;;  %3268 = vmatprep.mubr.f32.mxu0 %v7181_v44  ;;  %v898_v55 = vmul.f32 %v4053_v45, %v7193_v52  ;;  %v4054_v44 = vld [vmem:[#allocation2 + $0x28] sm:$0xff]  ;;  %v905_v25 = vmul.f32 %v4067_v5, %v7193_v52  ;;  %v4068_v8 = vld [vmem:[#allocation2 + $0x60] sm:$0xff] }
 0x3fc   : > { %3007 = vmatmul.mubr.f32.gmra.mxu1 %v7182_v19  ;;  %3269 = vmatmul.mubr.f32.gmra.mxu0 %v7183_v22  ;;  %v914_v19 = vmul.f32 %v4054_v44, %v7194_v31 }
 0x3fd   : > { %3012 = vmatprep.mubr.f32.mxu1 %v7184_v47  ;;  %3274 = vmatprep.mubr.f32.mxu0 %v7185_v54  ;;  %v929_v54 = vadd.f32 %v913_v14, %v897_v38  ;;  %v4069_v38 = vld [vmem:[%s6811_s0 + $0x68] sm:$0xff] }
 0x3fe   : > { %v906_v21 = vmul.f32 %v4069_v38, %v7193_v52  ;;  %v4070_v14 = vld [vmem:[#allocation2 + $0x68] sm:$0xff] }
 0x400   : > { %3013 = vmatmul.mubr.f32.gmra.mxu1 %v7186_v15  ;;  %3275 = vmatmul.mubr.f32.gmra.mxu0 %v7187_v35  ;;  %v4055_v15 = vld [vmem:[%s6811_s0 + $0x30] sm:$0xff] }
 0x401   : > { %3018 = vmatprep.mubr.f32.mxu1 %v7188_v2  ;;  %3280 = vmatprep.mubr.f32.mxu0 %v7189_v12  ;;  %v899_v35 = vmul.f32 %v4055_v15, %v7193_v52  ;;  %v4056_v2 = vld [vmem:[#allocation2 + $0x30] sm:$0xff] }
 0x402   : > { %v915_v12 = vmul.f32 %v4056_v2, %v7194_v31 }
 0x404   : > { %3019 = vmatmul.mubr.f32.gmra.mxu1 %v7190_v32  ;;  %3281 = vmatmul.mubr.f32.gmra.mxu0 %v7191_v39 }
 0x405   : > { %3101 = vmatprep.mubr.f32.mxu1 %v7192_v11 }
 0x4b8   : > { %v3002_v49 = vpop.f32.mrf.mxu1  ;;  %v3264_v56 = vpop.f32.mrf.mxu0 }
 0x4ba   : > { %v3004_v50 = vpop.f32.mrf.mxu1  ;;  %v3266_v9 = vpop.f32.mrf.mxu0 }
 0x4bc   : > { %v3008_v13 = vpop.f32.mrf.mxu1  ;;  %v3270_v37 = vpop.f32.mrf.mxu0 }
 0x4be   : > { %v3010_v18 = vpop.f32.mrf.mxu1  ;;  %v3272_v28 = vpop.f32.mrf.mxu0 }
 0x4c0   : > { %v3014_v7 = vpop.f32.mrf.mxu1  ;;  %v3276_v59 = vpop.f32.mrf.mxu0 }
 0x4c2   : > { %v3016_v51 = vpop.f32.mrf.mxu1  ;;  %v3278_v29 = vpop.f32.mrf.mxu0 }
 0x4c4   : > { %v3020_v53 = vpop.f32.mrf.mxu1  ;;  %v3282_v57 = vpop.f32.mrf.mxu0 }
 0x4c6   : > { %v3022_v48 = vpop.f32.mrf.mxu1  ;;  %v3284_v10 = vpop.f32.mrf.mxu0 }
 0x4c7   : > { %3061 = vmatprep.subr.mxu1 %v3022_v48 }
 0x4c8   : > { %3062 = vmatpush1.msra.mxu1 %v3020_v53 }
 0x4c9   : > { %3063 = vmatprep.subr.mxu1 %v3016_v51 }
 0x4ca   : > { %3064 = vmatpush1.msra.mxu1 %v3014_v7 }
 0x4cb   : > { %3065 = vmatprep.subr.mxu1 %v3010_v18  ;;  %v931_v18 = vadd.f32 %v915_v12, %v899_v35  ;;  %v4073_v35 = vld [vmem:[%s6811_s0 + $0x78] sm:$0xff] }
 0x4cc   : > { %3066 = vmatpush1.msra.mxu1 %v3008_v13  ;;  %v908_v2 = vmul.f32 %v4073_v35, %v7193_v52  ;;  %v4074_v12 = vld [vmem:[#allocation2 + $0x78] sm:$0xff] }
 0x4cd   : > { %3067 = vmatprep.subr.mxu1 %v3004_v50  ;;  %v4058_v50 = vld [vmem:[#allocation2 + $0x38] sm:$0xff] }
 0x4ce   : > { %3068 = vmatpush1.msra.mxu1 %v3002_v49  ;;  %v4057_v49 = vld [vmem:[%s6811_s0 + $0x38] sm:$0xff] }
 0x4cf   : > { %3311 = vmatprep.subr.mxu1 %v3284_v10  ;;  %3555 = vmatmul.mubr.msk.f32.vlgmr.msra.gmra.mxu1 %vm957_vm0, %v953_v36  ;;  %v4062_v10 = vld [vmem:[#allocation2 + $0x48] sm:$0xff] }
 0x4d0   : > { %3312 = vmatpush1.msra.mxu1 %v3282_v57  ;;  %3107 = vmatprep.mubr.f32.mxu1 %v7192_v11  ;;  %v4061_v57 = vld [vmem:[%s6811_s0 + $0x48] sm:$0xff] }
 0x4d1   : > { %3313 = vmatprep.subr.mxu1 %v3278_v29 }
 0x4d2   : > { %3314 = vmatpush1.msra.mxu1 %v3276_v59  ;;  %v4060_v59 = vld [vmem:[#allocation2 + $0x40] sm:$0xff] }
 0x4d3   : > { %3315 = vmatprep.subr.mxu1 %v3272_v28  ;;  %3556 = vmatmul.mubr.msk.f32.gmra.mxu1 %vm957_vm0, %v954_v16  ;;  %v4059_v28 = vld [vmem:[%s6811_s0 + $0x40] sm:$0xff]  ;;  %v917_v51 = vmul.f32 %v4060_v59, %v7194_v31 }
 0x4d4   : > { %3316 = vmatpush1.msra.mxu1 %v3270_v37  ;;  %3113 = vmatprep.mubr.f32.mxu1 %v7192_v11  ;;  %v901_v7 = vmul.f32 %v4059_v28, %v7193_v52 }
 0x4d5   : > { %3317 = vmatprep.subr.mxu1 %v3266_v9  ;;  %v916_v9 = vmul.f32 %v4058_v50, %v7194_v31 }
 0x4d6   : > { %3318 = vmatpush1.msra.mxu1 %v3264_v56  ;;  %v900_v56 = vmul.f32 %v4057_v49, %v7193_v52  ;;  %v933_v40 = vadd.f32 %v917_v51, %v901_v7 }
 0x4d7   : > { %3557 = vmatmul.mubr.msk.f32.gmra.mxu1 %vm957_vm0, %v955_v46 }
 0x4d8   : > { %3119 = vmatprep.mubr.f32.mxu1 %v7192_v11  ;;  %v932_v48 = vadd.f32 %v916_v9, %v900_v56 }
 0x4db   : > { %3558 = vmatmul.mubr.msk.f32.gmra.mxu1 %vm957_vm0, %v956_v27 }
 0x4dc   : > { %3351 = vmatprep.mubr.f32.mxu1 %v7192_v11 }
 0x4df   : > { %3559 = vmatmul.mubr.msk.f32.vlgmr.msra.gmra.mxu1 %vm957_vm0, %v953_v36  ;;  %v902_v36 = vmul.f32 %v4061_v57, %v7193_v52 }
 0x4e0   : > { %3357 = vmatprep.mubr.f32.mxu1 %v7192_v11 }
 0x4e3   : > { %3560 = vmatmul.mubr.msk.f32.gmra.mxu1 %vm957_vm0, %v954_v16  ;;  %v918_v16 = vmul.f32 %v4062_v10, %v7194_v31 }
 0x4e4   : > { %3363 = vmatprep.mubr.f32.mxu1 %v7192_v11 }
 0x4e5   : > { %v934_v26 = vadd.f32 %v918_v16, %v902_v36 }
 0x4e7   : > { %3561 = vmatmul.mubr.msk.f32.gmra.mxu1 %vm957_vm0, %v955_v46 }
 0x4e8   : > { %3369 = vmatprep.mubr.f32.mxu1 %v7192_v11  ;;  %v930_v11 = vadd.f32 %v914_v19, %v898_v55  ;;  %v4071_v55 = vld [vmem:[%s6811_s0 + $0x70] sm:$0xff] }
 0x4e9   : > { %v907_v44 = vmul.f32 %v4071_v55, %v7193_v52  ;;  %v4072_v19 = vld [vmem:[#allocation2 + $0x70] sm:$0xff] }
 0x4eb   : > { %3562 = vmatmul.mubr.msk.f32.gmra.mxu1 %vm957_vm0, %v956_v27 }
 0x58f   : > { %v3103_v43 = vpop.f32.mrf.mxu1 }
 0x590   : > { %v3104_v20 = vadd.f32 %v3103_v43, %v925_v63  ;;  %v4065_v63 = vld [vmem:[%s6811_s0 + $0x58] sm:$0xff]  ;;  %v921_v43 = vmul.f32 %v4068_v8, %v7194_v31 }
 0x591   : > { %v3105_v4 = vpop.f32.mrf.mxu1  ;;  %v904_v6 = vmul.f32 %v4065_v63, %v7193_v52 }
 0x592   : > { %3126 = vst [vmem:[%s6687_s17] sm:$0xff] %v3104_v20  ;;  %v3106_v24 = vadd.f32 %v3105_v4, %v926_v58  ;;  %v922_v4 = vmul.f32 %v4070_v14, %v7194_v31  ;;  %v937_v45 = vadd.f32 %v921_v43, %v905_v25 }
 0x593   : > { %v3109_v22 = vpop.f32.mrf.mxu1  ;;  %v936_v3 = vadd.f32 %v920_v60, %v904_v6 }
 0x594   : > { %3127 = vst [vmem:[%s6687_s17 + $0x8] sm:$0xff] %v3106_v24  ;;  %v3110_v47 = vadd.f32 %v3109_v22, %v927_v42  ;;  %v923_v22 = vmul.f32 %v4072_v19, %v7194_v31  ;;  %v938_v15 = vadd.f32 %v922_v4, %v906_v21 }
 0x595   : > { %v3111_v32 = vpop.f32.mrf.mxu1 }
 0x596   : > { %3128 = vst [vmem:[%s6687_s17 + $0x10] sm:$0xff] %v3110_v47  ;;  %v3112_v39 = vadd.f32 %v3111_v32, %v928_v23  ;;  %v924_v32 = vmul.f32 %v4074_v12, %v7194_v31  ;;  %v939_v49 = vadd.f32 %v923_v22, %v907_v44 }
 0x597   : > { %v3115_v13 = vpop.f32.mrf.mxu1 }
 0x598   : > { %3129 = vst [vmem:[%s6687_s17 + $0x18] sm:$0xff] %v3112_v39  ;;  %v3116_v37 = vadd.f32 %v3115_v13, %v929_v54  ;;  %v940_v9 = vadd.f32 %v924_v32, %v908_v2 }
 0x599   : > { %v3117_v53 = vpop.f32.mrf.mxu1 }
 0x59a   : > { %3130 = vst [vmem:[%s6687_s17 + $0x20] sm:$0xff] %v3116_v37  ;;  %v3118_v29 = vadd.f32 %v3117_v53, %v930_v11 }
 0x59b   : > { %v3121_v46 = vpop.f32.mrf.mxu1 }
 0x59c   : > { %3131 = vst [vmem:[%s6687_s17 + $0x28] sm:$0xff] %v3118_v29  ;;  %v3122_v27 = vadd.f32 %v3121_v46, %v931_v18 }
 0x59d   : > { %v3123_v41 = vpop.f32.mrf.mxu1 }
 0x59e   : > { %3132 = vst [vmem:[%s6687_s17 + $0x30] sm:$0xff] %v3122_v27  ;;  %v3124_v1 = vadd.f32 %v3123_v41, %v932_v48 }
 0x59f   : > { %v3353_v33 = vpop.f32.mrf.mxu1 }
 0x5a0   : > { %3133 = vst [vmem:[%s6687_s17 + $0x38] sm:$0xff] %v3124_v1  ;;  %v3354_v58 = vadd.f32 %v3353_v33, %v933_v40 }
 0x5a1   : > { %v3355_v20 = vpop.f32.mrf.mxu1 }
 0x5a2   : > { %3563 = vst [vmem:[%s6687_s17 + $0x40] sm:$0xff] %v3354_v58  ;;  %v3356_v42 = vadd.f32 %v3355_v20, %v934_v26 }
 0x5a3   : > { %v3359_v24 = vpop.f32.mrf.mxu1 }
 0x5a4   : > { %3564 = vst [vmem:[%s6687_s17 + $0x48] sm:$0xff] %v3356_v42  ;;  %v3360_v23 = vadd.f32 %v3359_v24, %v935_v30 }
 0x5a5   : > { %v3361_v47 = vpop.f32.mrf.mxu1 }
 0x5a6   : > { %3565 = vst [vmem:[%s6687_s17 + $0x50] sm:$0xff] %v3360_v23  ;;  %v3362_v54 = vadd.f32 %v3361_v47, %v936_v3 }
 0x5a7   : > { %v3365_v39 = vpop.f32.mrf.mxu1 }
 0x5a8   : > { %3566 = vst [vmem:[%s6687_s17 + $0x58] sm:$0xff] %v3362_v54  ;;  %v3366_v11 = vadd.f32 %v3365_v39, %v937_v45 }
 0x5a9   : > { %v3367_v56 = vpop.f32.mrf.mxu1 }
 0x5aa   : > { %3567 = vst [vmem:[%s6687_s17 + $0x60] sm:$0xff] %v3366_v11  ;;  %v3368_v50 = vadd.f32 %v3367_v56, %v938_v15 }
 0x5ab   : > { %v3371_v13 = vpop.f32.mrf.mxu1 }
 0x5ac   : > { %3568 = vst [vmem:[%s6687_s17 + $0x68] sm:$0xff] %v3368_v50  ;;  %v3372_v52 = vadd.f32 %v3371_v13, %v939_v49 }
 0x5ad   : > { %v3373_v37 = vpop.f32.mrf.mxu1 }
 0x5ae   : > { %3569 = vst [vmem:[%s6687_s17 + $0x70] sm:$0xff] %v3372_v52  ;;  %v3374_v31 = vadd.f32 %v3373_v37, %v940_v9 }
 0x5b0   : > { %3570 = vst [vmem:[%s6687_s17 + $0x78] sm:$0xff] %v3374_v31 }
 0x5b1   : > { %4114 = shalt.err (!%p4111_p13)
}
 0x5b2   : > { %s4115_s22 = scalar_lea.hbm %s6763_s28, 2048  ;;  %s4119_s24 = scalar_lea.hbm %s6820_s9, 4096 }
 0x5b3   : > { %p4116_p0 = scmp.ne.s32.totalorder %s6763_s28, %s4115_s22  ;;  %p4120_p3 = scmp.lt.s32.totalorder %s6763_s28, %s6820_s9 }
 0x5b4   : > { %p4121_p4 = scmp.lt.s32.totalorder %s4119_s24, %s4115_s22 }
 0x5b5   : > { %p4117_p1 = pnand %p4116_p0, %p4263_p5 }
 0x5b6   : > { %p4122_p7 = por %p4121_p4, %p4120_p3 }
 0x5b7   : > { %p4118_p2 = pneg %p4117_p1 }
 0x5b9   : > { %p4123_p6 = pnand %p4122_p7, %p4118_p2 }
 0x5bb   : > { %4126 = shalt.err (!%p4123_p6)
}
 0x5bc   : > { %s4173_s29 = smov 256   ;;  %s4174_s14 = smov 16  }
 0x5bd   : > { %3589 = dma.vmem_to_hbm [thread:$0]  (%p4263_p5), %s6765_s25, 2048, %s6763_s28, %s6771_s13, %s4173_s29, %s4173_s29, %s4174_s14  }
 0x5be PF: > { %p3601_p8 = scmp.ge.s32.totalorder %s4165_s12, 2  ;;  %s3414_s16 = sand.u32 1, %s4153_s30  }
 0x5bf   : > { %p7195_p9 = scmp.ne.s32.totalorder %s6909_s20, 0  ;;  %s3415_s21 = scalar_lea.sflag [#allocation4], %s3414_s16 }
 0x5c1   : > { %p3596_p10 = pnand %p3601_p8, %p7195_p9 }
 0x5c3   : > { %p3597_p11 = pneg %p3596_p10 }
 0x5c5   : > { %4148 = dma.done.wait (%p3597_p11), %s3415_s21, 2048  }
 0x5c6   : > { %4150 = vsyncadd (%p3597_p11), %s3415_s21, 4294965248  ;;  %p20_p12 = scmp.ge.s32.totalorder %s4250_s15, 4   ;;  %s7196_s30 = smov %s4157_s10 }
 0x5c7   : > { %s7197_s10 = smov %s4161_s11  ;;  %s7198_s11 = smov %s4261_s18 }
 0x5c8   : > { %s7199_s12 = smov %s4250_s15  ;;  %22 = sbr.rel (!%p20_p12) target bundleno = 4 (0x4), region = 94 }
 0x5cd   :  { %3420 = vsyncpa [#allocation3], 1 }
 0x5ce   :  { %3422 = vsyncpa [#allocation3 + $0x1], 1 }
 0x5cf   :  { %3423 = vsyncpa [#allocation4], 1 }
 0x5d0   :  { %3425 = vsyncpa [#allocation4 + $0x1], 1 }

</bundles_post_ra>
